<compile_context>
chip_gen: v7x
topology: tpu7x:2x2x1
jax: 0.10.0
libtpu: 0.0.40
codegen_flags: <defaults>
</compile_context>

<pallas_src>
import functools

import numpy as np
import jax
import jax.numpy as jnp
from jax import lax
from jax.experimental import pallas as pl
from jax.experimental.pallas import tpu as pltpu

EPS = 1e-5  # nn.GroupNorm default eps


def _vmem_limit_bytes():
    """Per-generation VMEM limit: ~100 MiB on 128-MiB chips, 48 MiB on v7x."""
    try:
        kind = jax.devices()[0].device_kind.lower()
    except Exception:  # pragma: no cover - non-TPU fallback
        return 64 * 1024 * 1024
    if "v7" in kind:
        return 48 * 1024 * 1024
    return 100 * 1024 * 1024


# ----------------------------------------------------------------------------
# In-kernel helpers (traced inside the Pallas kernels below)
# ----------------------------------------------------------------------------
def _silu(y):
    # SiLU = y * sigmoid(y); sigmoid(y) = 0.5*(tanh(0.5*y)+1) -> one EUP op.
    return 0.5 * y * (jnp.tanh(0.5 * y) + 1.0)


def _gn_silu_cf(x, gamma, beta, groups):
    """GroupNorm(min(C,32) groups) + SiLU on a channel-first (C, H*W) f32 tile.

    Statistics: lane-reduce x and x*x to (C,1), group-reduce the tiny (C,1)
    tensors, broadcast mean/rstd back per-channel, and normalize on the
    original (C, HW) layout (no reshape/relayout of the big tile).
    """
    C, HW = x.shape
    gsz = C // groups
    n = float(gsz * HW)
    s_c = jnp.sum(x, axis=1, keepdims=True)                      # (C, 1)
    ss_c = jnp.sum(x * x, axis=1, keepdims=True)                 # (C, 1)
    s_g = jnp.sum(s_c.reshape(groups, gsz), axis=1, keepdims=True)    # (G, 1)
    ss_g = jnp.sum(ss_c.reshape(groups, gsz), axis=1, keepdims=True)  # (G, 1)
    mean_g = s_g / n
    # E[x^2] - mean^2 can go slightly negative from cancellation; clamp at 0.
    var_g = jnp.maximum(ss_g / n - mean_g * mean_g, 0.0)
    inv_g = lax.rsqrt(var_g + EPS)
    mean_c = jnp.broadcast_to(mean_g, (groups, gsz)).reshape(C, 1)
    inv_c = jnp.broadcast_to(inv_g, (groups, gsz)).reshape(C, 1)
    a_c = inv_c * gamma                                          # (C, 1)
    b_c = beta - mean_c * a_c                                    # (C, 1)
    return _silu(x * a_c + b_c)


def _conv3x3_cf(a, w_ref, bias, mask, W):
    """3x3 'SAME' conv on a channel-first (C, H*W) f32 tile.

    Nine per-tap bf16 MXU dots (Cout,C)@(C,HW) accumulated in f32 -- no
    (9*C, HW) im2col buffer.  Taps are lane rotations (pltpu.roll, XLU) of
    `a`, zeroed at image borders with the precomputed 0/1 `mask` (9, HW).
    w_ref is a (9, Cout, C) bf16 ref (tap-major), bias is f32 (Cout, 1).
    """
    C, HW = a.shape
    Cout = w_ref.shape[1]
    acc = jnp.zeros((Cout, HW), jnp.float32)
    for k in range(9):
        dy, dx = k // 3 - 1, k % 3 - 1
        off = dy * W + dx
        t = a if off == 0 else pltpu.roll(a, shift=(-off) % HW, axis=1)
        if k != 4:  # center tap is always fully in-image
            t = t * mask[k:k + 1, :]
        acc = acc + jnp.dot(w_ref[k], t.astype(jnp.bfloat16),
                            preferred_element_type=jnp.float32)
    return acc + bias


def _make_tap_mask(H, W):
    """(9, H*W) float32 validity mask for the 3x3 taps (computed host-side)."""
    yy, xx = np.meshgrid(np.arange(H), np.arange(W), indexing="ij")
    yy = yy.reshape(-1)
    xx = xx.reshape(-1)
    rows = []
    for k in range(9):
        dy, dx = k // 3 - 1, k % 3 - 1
        valid = (yy + dy >= 0) & (yy + dy < H) & (xx + dx >= 0) & (xx + dx < W)
        rows.append(valid.astype(np.float32))
    return jnp.asarray(np.stack(rows))


# ----------------------------------------------------------------------------
# Fused kernel: GN1+SiLU+Conv3x3+FiLM + GN2+SiLU+Conv3x3 + 1x1 residual,
# one image per grid step; the intermediate h never leaves VMEM.
# ----------------------------------------------------------------------------
def fused_kernel(x_ref, g1_ref, b1g_ref, cw1_ref, cb1_ref, scale_ref,
                 shift_ref, g2_ref, b2g_ref, cw2_ref, cb2_ref, wr_ref, br_ref,
                 m_ref, o_ref, *, groups1, groups2, W):
    x = x_ref[0]                                                  # (Cin, HW) f32
    mask = m_ref[...]

    # block1: GN1 + SiLU + conv3x3, then FiLM (scale/shift from conditioning).
    a1 = _gn_silu_cf(x, g1_ref[...], b1g_ref[...], groups1)
    h = _conv3x3_cf(a1, cw1_ref, cb1_ref[...], mask, W)           # (Cout, HW) f32
    h = h * scale_ref[0] + shift_ref[0]

    # block2: GN2 + SiLU + (Dropout=identity in eval) + zero-init conv3x3.
    a2 = _gn_silu_cf(h, g2_ref[...], b2g_ref[...], groups2)
    y = _conv3x3_cf(a2, cw2_ref, cb2_ref[...], mask, W)

    # Residual 1x1 conv on the original input (bf16 MXU, f32 accumulate).
    res = jnp.dot(wr_ref[...], x.astype(jnp.bfloat16),
                  preferred_element_type=jnp.float32) + br_ref[...]
    o_ref[0] = y + res


def fused_call(x, scale3, shift3, pk, groups1, groups2, W):
    B, Cin, HW = x.shape
    Cout = pk["cb1"].shape[0]
    kern = functools.partial(fused_kernel, groups1=groups1, groups2=groups2, W=W)
    return pl.pallas_call(
        kern,
        out_shape=jax.ShapeDtypeStruct((B, Cout, HW), jnp.float32),
        grid=(B,),
        in_specs=[
            pl.BlockSpec((1, Cin, HW), lambda b: (b, 0, 0)),        # x
            pl.BlockSpec((Cin, 1), lambda b: (0, 0)),               # gn1 gamma
            pl.BlockSpec((Cin, 1), lambda b: (0, 0)),               # gn1 beta
            pl.BlockSpec((9, Cout, Cin), lambda b: (0, 0, 0)),      # conv1 w (bf16)
            pl.BlockSpec((Cout, 1), lambda b: (0, 0)),              # conv1 b
            pl.BlockSpec((1, Cout, 1), lambda b: (b, 0, 0)),        # scale
            pl.BlockSpec((1, Cout, 1), lambda b: (b, 0, 0)),        # shift
            pl.BlockSpec((Cout, 1), lambda b: (0, 0)),              # gn2 gamma
            pl.BlockSpec((Cout, 1), lambda b: (0, 0)),              # gn2 beta
            pl.BlockSpec((9, Cout, Cout), lambda b: (0, 0, 0)),     # conv2 w (bf16)
            pl.BlockSpec((Cout, 1), lambda b: (0, 0)),              # conv2 b
            pl.BlockSpec((Cout, Cin), lambda b: (0, 0)),            # res w (bf16)
            pl.BlockSpec((Cout, 1), lambda b: (0, 0)),              # res b
            pl.BlockSpec((9, HW), lambda b: (0, 0)),                # tap mask
        ],
        out_specs=pl.BlockSpec((1, Cout, HW), lambda b: (b, 0, 0)),
        compiler_params=pltpu.CompilerParams(
            dimension_semantics=("parallel",),
            vmem_limit_bytes=_vmem_limit_bytes()),
    )(x, pk["gn1_g"], pk["gn1_b"], pk["cw1"], pk["cb1"], scale3, shift3,
      pk["gn2_g"], pk["gn2_b"], pk["cw2"], pk["cb2"], pk["wres"], pk["bres"],
      pk["tap_mask"])


# ----------------------------------------------------------------------------
# Conditioning MLPs (tiny; bf16 weights, f32 accumulate; runs once per fwd)
#   shift = Linear(SiLU(time_emb))                       (time_mlp)
#   scale = Linear(Linear(Linear(SiLU(text_condition)))) (pcd_mlp)
# ----------------------------------------------------------------------------
def cond_mlp_kernel(t_ref, wt_ref, bt_ref, tc_ref, w1_ref, b1_ref, w2_ref,
                    b2_ref, w3_ref, b3_ref, shift_ref, scale_ref):
    st = _silu(t_ref[...]).astype(jnp.bfloat16)
    shift_ref[...] = jnp.dot(st, wt_ref[...],
                             preferred_element_type=jnp.float32) + bt_ref[...]
    s = _silu(tc_ref[...]).astype(jnp.bfloat16)
    h1 = jnp.dot(s, w1_ref[...], preferred_element_type=jnp.float32) + b1_ref[...]
    h2 = jnp.dot(h1.astype(jnp.bfloat16), w2_ref[...],
                 preferred_element_type=jnp.float32) + b2_ref[...]
    scale_ref[...] = jnp.dot(h2.astype(jnp.bfloat16), w3_ref[...],
                             preferred_element_type=jnp.float32) + b3_ref[...]


def cond_mlp(t_emb, wt, bt, tc, w1, b1, w2, b2, w3, b3):
    B = t_emb.shape[0]
    dim_out = wt.shape[1]
    args = (t_emb, wt, bt, tc, w1, b1, w2, b2, w3, b3)
    in_specs = [pl.BlockSpec(a.shape, lambda i: (0, 0)) for a in args]
    shift, scale = pl.pallas_call(
        cond_mlp_kernel,
        out_shape=(jax.ShapeDtypeStruct((B, dim_out), jnp.float32),
                   jax.ShapeDtypeStruct((B, dim_out), jnp.float32)),
        grid=(1,),
        in_specs=in_specs,
        out_specs=(pl.BlockSpec((B, dim_out), lambda i: (0, 0)),
                   pl.BlockSpec((B, dim_out), lambda i: (0, 0))),
        compiler_params=pltpu.CompilerParams(
            vmem_limit_bytes=_vmem_limit_bytes()),
    )(*args)
    return shift, scale


# ----------------------------------------------------------------------------
# One-time parameter packing (weight repack / bf16 cast / tap mask hoisted
# out of the forward pass)
# ----------------------------------------------------------------------------
def prepare_params(p, H, W):
    return {
        "gn1_g": p["gn1_g"], "gn1_b": p["gn1_b"],
        "gn2_g": p["gn2_g"], "gn2_b": p["gn2_b"],
        # conv weights tap-major as (9, Cout, Cin) bf16
        "cw1": jnp.transpose(p["conv1_w"], (0, 2, 1)).astype(jnp.bfloat16),
        "cb1": p["conv1_b"],
        "cw2": jnp.transpose(p["conv2_w"], (0, 2, 1)).astype(jnp.bfloat16),
        "cb2": p["conv2_b"],
        "wres": p["res_w"].astype(jnp.bfloat16),
        "bres": p["res_b"],
        # conditioning MLP weights (bf16) / biases (f32)
        "wt": p["wt"].astype(jnp.bfloat16), "bt": p["bt"],
        "pw1": p["w1"].astype(jnp.bfloat16), "pb1": p["b1"],
        "pw2": p["w2"].astype(jnp.bfloat16), "pb2": p["b2"],
        "pw3": p["w3"].astype(jnp.bfloat16), "pb3": p["b3"],
        "tap_mask": _make_tap_mask(H, W),
    }


# ----------------------------------------------------------------------------
# Full ResnetBlock forward (wrapper = glue only, no activation-sized XLA ops)
# ----------------------------------------------------------------------------
def resnet_block_forward(x_nchw, time_emb, text_condition, pk):
    B, Cin, H, W = x_nchw.shape
    HW = H * W
    Cout = pk["cb1"].shape[0]
    groups1 = min(Cin, 32)
    groups2 = min(Cout, 32)

    x = x_nchw.reshape(B, Cin, HW).astype(jnp.float32)   # channel-first, lane-dense

    shift, scale = cond_mlp(time_emb, pk["wt"], pk["bt"], text_condition,
                            pk["pw1"], pk["pb1"], pk["pw2"], pk["pb2"],
                            pk["pw3"], pk["pb3"])
    scale3 = scale[:, :, None]
    shift3 = shift[:, :, None]

    out = fused_call(x, scale3, shift3, pk, groups1, groups2, W)
    return out.reshape(B, Cout, H, W)                     # already NCHW


# ----------------------------------------------------------------------------
# Deterministic parameter init (shapes from ResnetBlock.__init__)
# ----------------------------------------------------------------------------
def init_params(key, dim_in, dim_out, emb_dim):
    ks = jax.random.split(key, 12)
    p = {}
    # block1: GroupNorm(min(dim_in,32), dim_in) (weight=1, bias=0), conv3x3
    p["gn1_g"] = jnp.ones((dim_in, 1), jnp.float32)
    p["gn1_b"] = jnp.zeros((dim_in, 1), jnp.float32)
    p["conv1_w"] = 0.1 * jax.random.normal(ks[0], (9, dim_in, dim_out), jnp.float32)
    p["conv1_b"] = 0.1 * jax.random.normal(ks[1], (dim_out, 1), jnp.float32)
    # block2: GroupNorm(min(dim_out,32), dim_out), zero_module(conv3x3)
    p["gn2_g"] = jnp.ones((dim_out, 1), jnp.float32)
    p["gn2_b"] = jnp.zeros((dim_out, 1), jnp.float32)
    p["conv2_w"] = jnp.zeros((9, dim_out, dim_out), jnp.float32)
    p["conv2_b"] = jnp.zeros((dim_out, 1), jnp.float32)
    # res_conv: 1x1 conv if dim_in != dim_out else identity
    if dim_in != dim_out:
        p["res_w"] = 0.1 * jax.random.normal(ks[2], (dim_out, dim_in), jnp.float32)
        p["res_b"] = 0.1 * jax.random.normal(ks[3], (dim_out, 1), jnp.float32)
    else:
        p["res_w"] = jnp.eye(dim_in, dtype=jnp.float32)
        p["res_b"] = jnp.zeros((dim_out, 1), jnp.float32)
    # time_mlp: SiLU -> Linear(emb_dim, dim_out)
    p["wt"] = 0.1 * jax.random.normal(ks[4], (emb_dim, dim_out), jnp.float32)
    p["bt"] = 0.1 * jax.random.normal(ks[5], (1, dim_out), jnp.float32)
    # pcd_mlp: SiLU -> Linear(1280,512) -> Linear(512,256) -> Linear(256,dim_out)
    p["w1"] = 0.05 * jax.random.normal(ks[6], (1280, 512), jnp.float32)
    p["b1"] = 0.05 * jax.random.normal(ks[7], (1, 512), jnp.float32)
    p["w2"] = 0.05 * jax.random.normal(ks[8], (512, 256), jnp.float32)
    p["b2"] = 0.05 * jax.random.normal(ks[9], (1, 256), jnp.float32)
    p["w3"] = 0.05 * jax.random.normal(ks[10], (256, dim_out), jnp.float32)
    p["b3"] = 0.05 * jax.random.normal(ks[11], (1, dim_out), jnp.float32)
    return p


# ----------------------------------------------------------------------------
# Pure-JAX reference (NCHW, lax.conv, f32) for verification
# ----------------------------------------------------------------------------
def ref_forward(x, t_emb, tc, p):
    x = x.astype(jnp.float32)
    Cin = x.shape[1]
    Cout = p["conv1_w"].shape[-1]

    def silu(v):
        return v * jax.nn.sigmoid(v)

    def gn(v, gamma, beta, groups):
        B, C, H, W = v.shape
        vg = v.reshape(B, groups, C // groups, H * W)
        mean = vg.mean(axis=(2, 3), keepdims=True)
        var = vg.var(axis=(2, 3), keepdims=True)
        vg = (vg - mean) / jnp.sqrt(var + EPS)
        return (vg.reshape(B, C, H, W) * gamma.reshape(1, C, 1, 1)
                + beta.reshape(1, C, 1, 1))

    def conv3(v, w9, b):
        ci, co = w9.shape[1], w9.shape[2]
        w = jnp.transpose(w9, (2, 1, 0)).reshape(co, ci, 3, 3)   # OIHW
        y = lax.conv_general_dilated(v, w, (1, 1), "SAME",
                                     dimension_numbers=("NCHW", "OIHW", "NCHW"))
        return y + b.reshape(1, co, 1, 1)

    shift = silu(t_emb) @ p["wt"] + p["bt"]
    scale = ((silu(tc) @ p["w1"] + p["b1"]) @ p["w2"] + p["b2"]) @ p["w3"] + p["b3"]
    h = conv3(silu(gn(x, p["gn1_g"], p["gn1_b"], min(Cin, 32))),
              p["conv1_w"], p["conv1_b"])
    h = h * scale[:, :, None, None] + shift[:, :, None, None]
    h2 = conv3(silu(gn(h, p["gn2_g"], p["gn2_b"], min(Cout, 32))),
               p["conv2_w"], p["conv2_b"])
    res = jnp.einsum("oc,bchw->bohw", p["res_w"], x) + p["res_b"].reshape(1, Cout, 1, 1)
    return h2 + res


if __name__ == "__main__":
    B, dim_in, dim_out, emb_dim, H, W = 2, 4, 8, 32, 16, 16
    key = jax.random.PRNGKey(0)
    kx, kt, kc, kp, kw, kb = jax.random.split(key, 6)

    x = jax.random.normal(kx, (B, dim_in, H, W), jnp.float32)      # NCHW like PyTorch
    time_emb = jax.random.normal(kt, (B, emb_dim), jnp.float32)
    text_condition = jax.random.normal(kc, (B, 1280), jnp.float32)
    params = init_params(kp, dim_in, dim_out, emb_dim)
    packed = prepare_params(params, H, W)                          # one-time repack

    fwd = jax.jit(resnet_block_forward)

    out = jax.block_until_ready(fwd(x, time_emb, text_condition, packed))
    assert out.shape == (B, dim_out, H, W)
    ref = jax.block_until_ready(ref_forward(x, time_emb, text_condition, params))
    np.testing.assert_allclose(np.asarray(out), np.asarray(ref), rtol=2e-2, atol=2e-2)

    # Extra check with non-zero block2 conv weights (the faithful zero_module
    # init would otherwise hide that conv's matmul path).
    params_nz = dict(params)
    params_nz["conv2_w"] = 0.1 * jax.random.normal(kw, (9, dim_out, dim_out), jnp.float32)
    params_nz["conv2_b"] = 0.1 * jax.random.normal(kb, (dim_out, 1), jnp.float32)
    packed_nz = prepare_params(params_nz, H, W)
    out2 = jax.block_until_ready(fwd(x, time_emb, text_condition, packed_nz))
    ref2 = jax.block_until_ready(ref_forward(x, time_emb, text_condition, params_nz))
    np.testing.assert_allclose(np.asarray(out2), np.asarray(ref2), rtol=2e-2, atol=2e-2)

    print("KERNEL_OK")
</pallas_src>

<mosaic_0001>
module attributes {stable_mosaic.version = 11 : i64} {
  func.func @cond_mlp_kernel(%arg0: i32, %arg1: memref<2x32xf32, #tpu.memory_space<vmem>>, %arg2: memref<32x8xbf16, #tpu.memory_space<vmem>>, %arg3: memref<1x8xf32, #tpu.memory_space<vmem>>, %arg4: memref<2x1280xf32, #tpu.memory_space<vmem>>, %arg5: memref<1280x512xbf16, #tpu.memory_space<vmem>>, %arg6: memref<1x512xf32, #tpu.memory_space<vmem>>, %arg7: memref<512x256xbf16, #tpu.memory_space<vmem>>, %arg8: memref<1x256xf32, #tpu.memory_space<vmem>>, %arg9: memref<256x8xbf16, #tpu.memory_space<vmem>>, %arg10: memref<1x8xf32, #tpu.memory_space<vmem>>, %arg11: memref<2x8xf32, #tpu.memory_space<vmem>>, %arg12: memref<2x8xf32, #tpu.memory_space<vmem>>) attributes {dimension_semantics = [#tpu.dimension_semantics<arbitrary>], iteration_bounds = array<i64: 1>, scalar_prefetch = 0 : i64, scratch_operands = 0 : i64, tpu.core_type = #tpu.core_type<tc>, window_params = [{pipeline_mode = #tpu.pipeline_mode<synchronous>, transform_indices = @transform_0, window_bounds = array<i64: 2, 32>}, {pipeline_mode = #tpu.pipeline_mode<synchronous>, transform_indices = @transform_1, window_bounds = array<i64: 32, 8>}, {pipeline_mode = #tpu.pipeline_mode<synchronous>, transform_indices = @transform_2, window_bounds = array<i64: 1, 8>}, {pipeline_mode = #tpu.pipeline_mode<synchronous>, transform_indices = @transform_3, window_bounds = array<i64: 2, 1280>}, {pipeline_mode = #tpu.pipeline_mode<synchronous>, transform_indices = @transform_4, window_bounds = array<i64: 1280, 512>}, {pipeline_mode = #tpu.pipeline_mode<synchronous>, transform_indices = @transform_5, window_bounds = array<i64: 1, 512>}, {pipeline_mode = #tpu.pipeline_mode<synchronous>, transform_indices = @transform_6, window_bounds = array<i64: 512, 256>}, {pipeline_mode = #tpu.pipeline_mode<synchronous>, transform_indices = @transform_7, window_bounds = array<i64: 1, 256>}, {pipeline_mode = #tpu.pipeline_mode<synchronous>, transform_indices = @transform_8, window_bounds = array<i64: 256, 8>}, {pipeline_mode = #tpu.pipeline_mode<synchronous>, transform_indices = @transform_9, window_bounds = array<i64: 1, 8>}, {pipeline_mode = #tpu.pipeline_mode<synchronous>, transform_indices = @transform_10, window_bounds = array<i64: 2, 8>}, {pipeline_mode = #tpu.pipeline_mode<synchronous>, transform_indices = @transform_11, window_bounds = array<i64: 2, 8>}]} {
    %c0 = arith.constant 0 : index
    %c0_0 = arith.constant 0 : index
    %0 = vector.load %arg1[%c0, %c0_0] : memref<2x32xf32, #tpu.memory_space<vmem>>, vector<2x32xf32>
    %cst = arith.constant 5.000000e-01 : f32
    %1 = vector.broadcast %cst : f32 to vector<2x32xf32>
    %2 = arith.mulf %1, %0 : vector<2x32xf32>
    %cst_1 = arith.constant 5.000000e-01 : f32
    %3 = vector.broadcast %cst_1 : f32 to vector<2x32xf32>
    %4 = arith.mulf %3, %0 : vector<2x32xf32>
    %5 = math.tanh %4 : vector<2x32xf32>
    %cst_2 = arith.constant 1.000000e+00 : f32
    %6 = vector.broadcast %cst_2 : f32 to vector<2x32xf32>
    %7 = arith.addf %5, %6 : vector<2x32xf32>
    %8 = arith.mulf %2, %7 : vector<2x32xf32>
    %9 = arith.truncf %8 : vector<2x32xf32> to vector<2x32xbf16>
    %c0_3 = arith.constant 0 : index
    %c0_4 = arith.constant 0 : index
    %10 = vector.load %arg2[%c0_3, %c0_4] : memref<32x8xbf16, #tpu.memory_space<vmem>>, vector<32x8xbf16>
    %cst_5 = arith.constant dense<0.000000e+00> : vector<2x8xf32>
    %11 = tpu.matmul %9, %10, %cst_5 {dimension_numbers = #tpu.dot_dimension_numbers<[1], [0], [0], [1], [0, 0, 1, 1], [], []>} : vector<2x32xbf16>, vector<32x8xbf16>, vector<2x8xf32> -> vector<2x8xf32>
    %c0_6 = arith.constant 0 : index
    %c0_7 = arith.constant 0 : index
    %12 = vector.load %arg3[%c0_6, %c0_7] : memref<1x8xf32, #tpu.memory_space<vmem>>, vector<1x8xf32>
    %13 = vector.broadcast %12 : vector<1x8xf32> to vector<2x8xf32>
    %14 = arith.addf %11, %13 : vector<2x8xf32>
    %c0_8 = arith.constant 0 : index
    %c0_9 = arith.constant 0 : index
    %15 = vector.load %arg11[%c0_8, %c0_9] : memref<2x8xf32, #tpu.memory_space<vmem>>, vector<2x8xf32>
    tpu.vector_store %arg11[%c0_8, %c0_9], %14 {strides = array<i32>} : memref<2x8xf32, #tpu.memory_space<vmem>>, vector<2x8xf32>,
    %c0_10 = arith.constant 0 : index
    %c0_11 = arith.constant 0 : index
    %16 = vector.load %arg4[%c0_10, %c0_11] : memref<2x1280xf32, #tpu.memory_space<vmem>>, vector<2x1280xf32>
    %cst_12 = arith.constant 5.000000e-01 : f32
    %17 = vector.broadcast %cst_12 : f32 to vector<2x1280xf32>
    %18 = arith.mulf %17, %16 : vector<2x1280xf32>
    %cst_13 = arith.constant 5.000000e-01 : f32
    %19 = vector.broadcast %cst_13 : f32 to vector<2x1280xf32>
    %20 = arith.mulf %19, %16 : vector<2x1280xf32>
    %21 = math.tanh %20 : vector<2x1280xf32>
    %cst_14 = arith.constant 1.000000e+00 : f32
    %22 = vector.broadcast %cst_14 : f32 to vector<2x1280xf32>
    %23 = arith.addf %21, %22 : vector<2x1280xf32>
    %24 = arith.mulf %18, %23 : vector<2x1280xf32>
    %25 = arith.truncf %24 : vector<2x1280xf32> to vector<2x1280xbf16>
    %c0_15 = arith.constant 0 : index
    %c0_16 = arith.constant 0 : index
    %26 = vector.load %arg5[%c0_15, %c0_16] : memref<1280x512xbf16, #tpu.memory_space<vmem>>, vector<1280x512xbf16>
    %cst_17 = arith.constant dense<0.000000e+00> : vector<2x512xf32>
    %27 = tpu.matmul %25, %26, %cst_17 {dimension_numbers = #tpu.dot_dimension_numbers<[1], [0], [0], [1], [0, 0, 1, 1], [], []>} : vector<2x1280xbf16>, vector<1280x512xbf16>, vector<2x512xf32> -> vector<2x512xf32>
    %c0_18 = arith.constant 0 : index
    %c0_19 = arith.constant 0 : index
    %28 = vector.load %arg6[%c0_18, %c0_19] : memref<1x512xf32, #tpu.memory_space<vmem>>, vector<1x512xf32>
    %29 = vector.broadcast %28 : vector<1x512xf32> to vector<2x512xf32>
    %30 = arith.addf %27, %29 : vector<2x512xf32>
    %31 = arith.truncf %30 : vector<2x512xf32> to vector<2x512xbf16>
    %c0_20 = arith.constant 0 : index
    %c0_21 = arith.constant 0 : index
    %32 = vector.load %arg7[%c0_20, %c0_21] : memref<512x256xbf16, #tpu.memory_space<vmem>>, vector<512x256xbf16>
    %cst_22 = arith.constant dense<0.000000e+00> : vector<2x256xf32>
    %33 = tpu.matmul %31, %32, %cst_22 {dimension_numbers = #tpu.dot_dimension_numbers<[1], [0], [0], [1], [0, 0, 1, 1], [], []>} : vector<2x512xbf16>, vector<512x256xbf16>, vector<2x256xf32> -> vector<2x256xf32>
    %c0_23 = arith.constant 0 : index
    %c0_24 = arith.constant 0 : index
    %34 = vector.load %arg8[%c0_23, %c0_24] : memref<1x256xf32, #tpu.memory_space<vmem>>, vector<1x256xf32>
    %35 = vector.broadcast %34 : vector<1x256xf32> to vector<2x256xf32>
    %36 = arith.addf %33, %35 : vector<2x256xf32>
    %37 = arith.truncf %36 : vector<2x256xf32> to vector<2x256xbf16>
    %c0_25 = arith.constant 0 : index
    %c0_26 = arith.constant 0 : index
    %38 = vector.load %arg9[%c0_25, %c0_26] : memref<256x8xbf16, #tpu.memory_space<vmem>>, vector<256x8xbf16>
    %cst_27 = arith.constant dense<0.000000e+00> : vector<2x8xf32>
    %39 = tpu.matmul %37, %38, %cst_27 {dimension_numbers = #tpu.dot_dimension_numbers<[1], [0], [0], [1], [0, 0, 1, 1], [], []>} : vector<2x256xbf16>, vector<256x8xbf16>, vector<2x8xf32> -> vector<2x8xf32>
    %c0_28 = arith.constant 0 : index
    %c0_29 = arith.constant 0 : index
    %40 = vector.load %arg10[%c0_28, %c0_29] : memref<1x8xf32, #tpu.memory_space<vmem>>, vector<1x8xf32>
    %41 = vector.broadcast %40 : vector<1x8xf32> to vector<2x8xf32>
    %42 = arith.addf %39, %41 : vector<2x8xf32>
    %c0_30 = arith.constant 0 : index
    %c0_31 = arith.constant 0 : index
    %43 = vector.load %arg12[%c0_30, %c0_31] : memref<2x8xf32, #tpu.memory_space<vmem>>, vector<2x8xf32>
    tpu.vector_store %arg12[%c0_30, %c0_31], %42 {strides = array<i32>} : memref<2x8xf32, #tpu.memory_space<vmem>>, vector<2x8xf32>,
    return
  }
  func.func @transform_0(%arg0: i32) -> (i32, i32) {
    %c0_i32 = arith.constant 0 : i32
    %c0_i32_0 = arith.constant 0 : i32
    %c0_i32_1 = arith.constant 0 : i32
    return %c0_i32, %c0_i32_0 : i32, i32
  }
  func.func @transform_1(%arg0: i32) -> (i32, i32) {
    %c0_i32 = arith.constant 0 : i32
    %c0_i32_0 = arith.constant 0 : i32
    %c0_i32_1 = arith.constant 0 : i32
    return %c0_i32, %c0_i32_0 : i32, i32
  }
  func.func @transform_2(%arg0: i32) -> (i32, i32) {
    %c0_i32 = arith.constant 0 : i32
    %c0_i32_0 = arith.constant 0 : i32
    %c0_i32_1 = arith.constant 0 : i32
    return %c0_i32, %c0_i32_0 : i32, i32
  }
  func.func @transform_3(%arg0: i32) -> (i32, i32) {
    %c0_i32 = arith.constant 0 : i32
    %c0_i32_0 = arith.constant 0 : i32
    %c0_i32_1 = arith.constant 0 : i32
    return %c0_i32, %c0_i32_0 : i32, i32
  }
  func.func @transform_4(%arg0: i32) -> (i32, i32) {
    %c0_i32 = arith.constant 0 : i32
    %c0_i32_0 = arith.constant 0 : i32
    %c0_i32_1 = arith.constant 0 : i32
    return %c0_i32, %c0_i32_0 : i32, i32
  }
  func.func @transform_5(%arg0: i32) -> (i32, i32) {
    %c0_i32 = arith.constant 0 : i32
    %c0_i32_0 = arith.constant 0 : i32
    %c0_i32_1 = arith.constant 0 : i32
    return %c0_i32, %c0_i32_0 : i32, i32
  }
  func.func @transform_6(%arg0: i32) -> (i32, i32) {
    %c0_i32 = arith.constant 0 : i32
    %c0_i32_0 = arith.constant 0 : i32
    %c0_i32_1 = arith.constant 0 : i32
    return %c0_i32, %c0_i32_0 : i32, i32
  }
  func.func @transform_7(%arg0: i32) -> (i32, i32) {
    %c0_i32 = arith.constant 0 : i32
    %c0_i32_0 = arith.constant 0 : i32
    %c0_i32_1 = arith.constant 0 : i32
    return %c0_i32, %c0_i32_0 : i32, i32
  }
  func.func @transform_8(%arg0: i32) -> (i32, i32) {
    %c0_i32 = arith.constant 0 : i32
    %c0_i32_0 = arith.constant 0 : i32
    %c0_i32_1 = arith.constant 0 : i32
    return %c0_i32, %c0_i32_0 : i32, i32
  }
  func.func @transform_9(%arg0: i32) -> (i32, i32) {
    %c0_i32 = arith.constant 0 : i32
    %c0_i32_0 = arith.constant 0 : i32
    %c0_i32_1 = arith.constant 0 : i32
    return %c0_i32, %c0_i32_0 : i32, i32
  }
  func.func @transform_10(%arg0: i32) -> (i32, i32) {
    %c0_i32 = arith.constant 0 : i32
    %c0_i32_0 = arith.constant 0 : i32
    %c0_i32_1 = arith.constant 0 : i32
    return %c0_i32, %c0_i32_0 : i32, i32
  }
  func.func @transform_11(%arg0: i32) -> (i32, i32) {
    %c0_i32 = arith.constant 0 : i32
    %c0_i32_0 = arith.constant 0 : i32
    %c0_i32_1 = arith.constant 0 : i32
    return %c0_i32, %c0_i32_0 : i32, i32
  }
}

module attributes {stable_mosaic.version = 11 : i64} {
  func.func @fused_kernel(%arg0: i32, %arg1: memref<1x4x256xf32, #tpu.memory_space<vmem>>, %arg2: memref<4x1xf32, #tpu.memory_space<vmem>>, %arg3: memref<4x1xf32, #tpu.memory_space<vmem>>, %arg4: memref<9x8x4xbf16, #tpu.memory_space<vmem>>, %arg5: memref<8x1xf32, #tpu.memory_space<vmem>>, %arg6: memref<1x8x1xf32, #tpu.memory_space<vmem>>, %arg7: memref<1x8x1xf32, #tpu.memory_space<vmem>>, %arg8: memref<8x1xf32, #tpu.memory_space<vmem>>, %arg9: memref<8x1xf32, #tpu.memory_space<vmem>>, %arg10: memref<9x8x8xbf16, #tpu.memory_space<vmem>>, %arg11: memref<8x1xf32, #tpu.memory_space<vmem>>, %arg12: memref<8x4xbf16, #tpu.memory_space<vmem>>, %arg13: memref<8x1xf32, #tpu.memory_space<vmem>>, %arg14: memref<9x256xf32, #tpu.memory_space<vmem>>, %arg15: memref<1x8x256xf32, #tpu.memory_space<vmem>>) attributes {dimension_semantics = [#tpu.dimension_semantics<parallel>], iteration_bounds = array<i64: 2>, scalar_prefetch = 0 : i64, scratch_operands = 0 : i64, tpu.core_type = #tpu.core_type<tc>, window_params = [{transform_indices = @transform_0, window_bounds = array<i64: 1, 4, 256>}, {pipeline_mode = #tpu.pipeline_mode<synchronous>, transform_indices = @transform_1, window_bounds = array<i64: 4, 1>}, {pipeline_mode = #tpu.pipeline_mode<synchronous>, transform_indices = @transform_2, window_bounds = array<i64: 4, 1>}, {pipeline_mode = #tpu.pipeline_mode<synchronous>, transform_indices = @transform_3, window_bounds = array<i64: 9, 8, 4>}, {pipeline_mode = #tpu.pipeline_mode<synchronous>, transform_indices = @transform_4, window_bounds = array<i64: 8, 1>}, {transform_indices = @transform_5, window_bounds = array<i64: 1, 8, 1>}, {transform_indices = @transform_6, window_bounds = array<i64: 1, 8, 1>}, {pipeline_mode = #tpu.pipeline_mode<synchronous>, transform_indices = @transform_7, window_bounds = array<i64: 8, 1>}, {pipeline_mode = #tpu.pipeline_mode<synchronous>, transform_indices = @transform_8, window_bounds = array<i64: 8, 1>}, {pipeline_mode = #tpu.pipeline_mode<synchronous>, transform_indices = @transform_9, window_bounds = array<i64: 9, 8, 8>}, {pipeline_mode = #tpu.pipeline_mode<synchronous>, transform_indices = @transform_10, window_bounds = array<i64: 8, 1>}, {pipeline_mode = #tpu.pipeline_mode<synchronous>, transform_indices = @transform_11, window_bounds = array<i64: 8, 4>}, {pipeline_mode = #tpu.pipeline_mode<synchronous>, transform_indices = @transform_12, window_bounds = array<i64: 8, 1>}, {pipeline_mode = #tpu.pipeline_mode<synchronous>, transform_indices = @transform_13, window_bounds = array<i64: 9, 256>}, {transform_indices = @transform_14, window_bounds = array<i64: 1, 8, 256>}]} {
    %c0 = arith.constant 0 : index
    %c0_0 = arith.constant 0 : index
    %c0_1 = arith.constant 0 : index
    %0 = vector.load %arg1[%c0, %c0_0, %c0_1] : memref<1x4x256xf32, #tpu.memory_space<vmem>>, vector<1x4x256xf32>
    %1 = vector.shape_cast %0 : vector<1x4x256xf32> to vector<4x256xf32>
    %c0_2 = arith.constant 0 : index
    %c0_3 = arith.constant 0 : index
    %2 = vector.load %arg14[%c0_2, %c0_3] : memref<9x256xf32, #tpu.memory_space<vmem>>, vector<9x256xf32>
    %c0_4 = arith.constant 0 : index
    %c0_5 = arith.constant 0 : index
    %3 = vector.load %arg2[%c0_4, %c0_5] : memref<4x1xf32, #tpu.memory_space<vmem>>, vector<4x1xf32>
    %c0_6 = arith.constant 0 : index
    %c0_7 = arith.constant 0 : index
    %4 = vector.load %arg3[%c0_6, %c0_7] : memref<4x1xf32, #tpu.memory_space<vmem>>, vector<4x1xf32>
    %cst = arith.constant dense<0.000000e+00> : vector<4xf32>
    %5 = vector.multi_reduction <add>, %1, %cst [1] : vector<4x256xf32> to vector<4xf32>
    %6 = vector.shape_cast %5 : vector<4xf32> to vector<4x1xf32>
    %7 = arith.mulf %1, %1 : vector<4x256xf32>
    %cst_8 = arith.constant dense<0.000000e+00> : vector<4xf32>
    %8 = vector.multi_reduction <add>, %7, %cst_8 [1] : vector<4x256xf32> to vector<4xf32>
    %9 = vector.shape_cast %8 : vector<4xf32> to vector<4x1xf32>
    %cst_9 = arith.constant dense<0.000000e+00> : vector<4xf32>
    %10 = vector.multi_reduction <add>, %6, %cst_9 [1] : vector<4x1xf32> to vector<4xf32>
    %11 = vector.shape_cast %10 : vector<4xf32> to vector<4x1xf32>
    %cst_10 = arith.constant dense<0.000000e+00> : vector<4xf32>
    %12 = vector.multi_reduction <add>, %9, %cst_10 [1] : vector<4x1xf32> to vector<4xf32>
    %13 = vector.shape_cast %12 : vector<4xf32> to vector<4x1xf32>
    %cst_11 = arith.constant 2.560000e+02 : f32
    %14 = vector.broadcast %cst_11 : f32 to vector<4x1xf32>
    %15 = arith.divf %11, %14 : vector<4x1xf32>
    %cst_12 = arith.constant 2.560000e+02 : f32
    %16 = vector.broadcast %cst_12 : f32 to vector<4x1xf32>
    %17 = arith.divf %13, %16 : vector<4x1xf32>
    %18 = arith.mulf %15, %15 : vector<4x1xf32>
    %19 = arith.subf %17, %18 : vector<4x1xf32>
    %cst_13 = arith.constant 0.000000e+00 : f32
    %20 = vector.broadcast %cst_13 : f32 to vector<4x1xf32>
    %21 = arith.maximumf %19, %20 : vector<4x1xf32>
    %cst_14 = arith.constant 9.99999974E-6 : f32
    %22 = vector.broadcast %cst_14 : f32 to vector<4x1xf32>
    %23 = arith.addf %21, %22 : vector<4x1xf32>
    %24 = math.rsqrt %23 : vector<4x1xf32>
    %25 = arith.mulf %24, %3 : vector<4x1xf32>
    %26 = arith.mulf %15, %25 : vector<4x1xf32>
    %27 = arith.subf %4, %26 : vector<4x1xf32>
    %28 = vector.broadcast %25 : vector<4x1xf32> to vector<4x256xf32>
    %29 = arith.mulf %1, %28 : vector<4x256xf32>
    %30 = vector.broadcast %27 : vector<4x1xf32> to vector<4x256xf32>
    %31 = arith.addf %29, %30 : vector<4x256xf32>
    %cst_15 = arith.constant 5.000000e-01 : f32
    %32 = vector.broadcast %cst_15 : f32 to vector<4x256xf32>
    %33 = arith.mulf %32, %31 : vector<4x256xf32>
    %cst_16 = arith.constant 5.000000e-01 : f32
    %34 = vector.broadcast %cst_16 : f32 to vector<4x256xf32>
    %35 = arith.mulf %34, %31 : vector<4x256xf32>
    %36 = math.tanh %35 : vector<4x256xf32>
    %cst_17 = arith.constant 1.000000e+00 : f32
    %37 = vector.broadcast %cst_17 : f32 to vector<4x256xf32>
    %38 = arith.addf %36, %37 : vector<4x256xf32>
    %39 = arith.mulf %33, %38 : vector<4x256xf32>
    %c0_18 = arith.constant 0 : index
    %c0_19 = arith.constant 0 : index
    %40 = vector.load %arg5[%c0_18, %c0_19] : memref<8x1xf32, #tpu.memory_space<vmem>>, vector<8x1xf32>
    %cst_20 = arith.constant 0.000000e+00 : f32
    %41 = vector.broadcast %cst_20 : f32 to vector<8x256xf32>
    %c17_i32 = arith.constant 17 : i32
    %42 = tpu.dynamic_rotate %39 by %c17_i32 dim 1 : vector<4x256xf32>, i32 -> vector<4x256xf32>
    %43 = vector.extract_strided_slice %2 {offsets = [0, 0], sizes = [1, 256], strides = [1, 1]} : vector<9x256xf32> to vector<1x256xf32>
    %44 = vector.broadcast %43 : vector<1x256xf32> to vector<4x256xf32>
    %45 = arith.mulf %42, %44 : vector<4x256xf32>
    %c0_21 = arith.constant 0 : index
    %c0_22 = arith.constant 0 : index
    %c0_23 = arith.constant 0 : index
    %46 = vector.load %arg4[%c0_21, %c0_22, %c0_23] : memref<9x8x4xbf16, #tpu.memory_space<vmem>>, vector<1x8x4xbf16>
    %47 = vector.shape_cast %46 : vector<1x8x4xbf16> to vector<8x4xbf16>
    %48 = arith.truncf %45 : vector<4x256xf32> to vector<4x256xbf16>
    %cst_24 = arith.constant dense<0.000000e+00> : vector<8x256xf32>
    %49 = tpu.matmul %47, %48, %cst_24 {dimension_numbers = #tpu.dot_dimension_numbers<[1], [0], [0], [1], [0, 0, 1, 1], [], []>} : vector<8x4xbf16>, vector<4x256xbf16>, vector<8x256xf32> -> vector<8x256xf32>
    %50 = arith.addf %41, %49 : vector<8x256xf32>
    %c16_i32 = arith.constant 16 : i32
    %51 = tpu.dynamic_rotate %39 by %c16_i32 dim 1 : vector<4x256xf32>, i32 -> vector<4x256xf32>
    %52 = vector.extract_strided_slice %2 {offsets = [1, 0], sizes = [1, 256], strides = [1, 1]} : vector<9x256xf32> to vector<1x256xf32>
    %53 = vector.broadcast %52 : vector<1x256xf32> to vector<4x256xf32>
    %54 = arith.mulf %51, %53 : vector<4x256xf32>
    %c1 = arith.constant 1 : index
    %c0_25 = arith.constant 0 : index
    %c0_26 = arith.constant 0 : index
    %55 = vector.load %arg4[%c1, %c0_25, %c0_26] : memref<9x8x4xbf16, #tpu.memory_space<vmem>>, vector<1x8x4xbf16>
    %56 = vector.shape_cast %55 : vector<1x8x4xbf16> to vector<8x4xbf16>
    %57 = arith.truncf %54 : vector<4x256xf32> to vector<4x256xbf16>
    %cst_27 = arith.constant dense<0.000000e+00> : vector<8x256xf32>
    %58 = tpu.matmul %56, %57, %cst_27 {dimension_numbers = #tpu.dot_dimension_numbers<[1], [0], [0], [1], [0, 0, 1, 1], [], []>} : vector<8x4xbf16>, vector<4x256xbf16>, vector<8x256xf32> -> vector<8x256xf32>
    %59 = arith.addf %50, %58 : vector<8x256xf32>
    %c15_i32 = arith.constant 15 : i32
    %60 = tpu.dynamic_rotate %39 by %c15_i32 dim 1 : vector<4x256xf32>, i32 -> vector<4x256xf32>
    %61 = vector.extract_strided_slice %2 {offsets = [2, 0], sizes = [1, 256], strides = [1, 1]} : vector<9x256xf32> to vector<1x256xf32>
    %62 = vector.broadcast %61 : vector<1x256xf32> to vector<4x256xf32>
    %63 = arith.mulf %60, %62 : vector<4x256xf32>
    %c2 = arith.constant 2 : index
    %c0_28 = arith.constant 0 : index
    %c0_29 = arith.constant 0 : index
    %64 = vector.load %arg4[%c2, %c0_28, %c0_29] : memref<9x8x4xbf16, #tpu.memory_space<vmem>>, vector<1x8x4xbf16>
    %65 = vector.shape_cast %64 : vector<1x8x4xbf16> to vector<8x4xbf16>
    %66 = arith.truncf %63 : vector<4x256xf32> to vector<4x256xbf16>
    %cst_30 = arith.constant dense<0.000000e+00> : vector<8x256xf32>
    %67 = tpu.matmul %65, %66, %cst_30 {dimension_numbers = #tpu.dot_dimension_numbers<[1], [0], [0], [1], [0, 0, 1, 1], [], []>} : vector<8x4xbf16>, vector<4x256xbf16>, vector<8x256xf32> -> vector<8x256xf32>
    %68 = arith.addf %59, %67 : vector<8x256xf32>
    %c1_i32 = arith.constant 1 : i32
    %69 = tpu.dynamic_rotate %39 by %c1_i32 dim 1 : vector<4x256xf32>, i32 -> vector<4x256xf32>
    %70 = vector.extract_strided_slice %2 {offsets = [3, 0], sizes = [1, 256], strides = [1, 1]} : vector<9x256xf32> to vector<1x256xf32>
    %71 = vector.broadcast %70 : vector<1x256xf32> to vector<4x256xf32>
    %72 = arith.mulf %69, %71 : vector<4x256xf32>
    %c3 = arith.constant 3 : index
    %c0_31 = arith.constant 0 : index
    %c0_32 = arith.constant 0 : index
    %73 = vector.load %arg4[%c3, %c0_31, %c0_32] : memref<9x8x4xbf16, #tpu.memory_space<vmem>>, vector<1x8x4xbf16>
    %74 = vector.shape_cast %73 : vector<1x8x4xbf16> to vector<8x4xbf16>
    %75 = arith.truncf %72 : vector<4x256xf32> to vector<4x256xbf16>
    %cst_33 = arith.constant dense<0.000000e+00> : vector<8x256xf32>
    %76 = tpu.matmul %74, %75, %cst_33 {dimension_numbers = #tpu.dot_dimension_numbers<[1], [0], [0], [1], [0, 0, 1, 1], [], []>} : vector<8x4xbf16>, vector<4x256xbf16>, vector<8x256xf32> -> vector<8x256xf32>
    %77 = arith.addf %68, %76 : vector<8x256xf32>
    %c4 = arith.constant 4 : index
    %c0_34 = arith.constant 0 : index
    %c0_35 = arith.constant 0 : index
    %78 = vector.load %arg4[%c4, %c0_34, %c0_35] : memref<9x8x4xbf16, #tpu.memory_space<vmem>>, vector<1x8x4xbf16>
    %79 = vector.shape_cast %78 : vector<1x8x4xbf16> to vector<8x4xbf16>
    %80 = arith.truncf %39 : vector<4x256xf32> to vector<4x256xbf16>
    %cst_36 = arith.constant dense<0.000000e+00> : vector<8x256xf32>
    %81 = tpu.matmul %79, %80, %cst_36 {dimension_numbers = #tpu.dot_dimension_numbers<[1], [0], [0], [1], [0, 0, 1, 1], [], []>} : vector<8x4xbf16>, vector<4x256xbf16>, vector<8x256xf32> -> vector<8x256xf32>
    %82 = arith.addf %77, %81 : vector<8x256xf32>
    %c255_i32 = arith.constant 255 : i32
    %83 = tpu.dynamic_rotate %39 by %c255_i32 dim 1 : vector<4x256xf32>, i32 -> vector<4x256xf32>
    %84 = vector.extract_strided_slice %2 {offsets = [5, 0], sizes = [1, 256], strides = [1, 1]} : vector<9x256xf32> to vector<1x256xf32>
    %85 = vector.broadcast %84 : vector<1x256xf32> to vector<4x256xf32>
    %86 = arith.mulf %83, %85 : vector<4x256xf32>
    %c5 = arith.constant 5 : index
    %c0_37 = arith.constant 0 : index
    %c0_38 = arith.constant 0 : index
    %87 = vector.load %arg4[%c5, %c0_37, %c0_38] : memref<9x8x4xbf16, #tpu.memory_space<vmem>>, vector<1x8x4xbf16>
    %88 = vector.shape_cast %87 : vector<1x8x4xbf16> to vector<8x4xbf16>
    %89 = arith.truncf %86 : vector<4x256xf32> to vector<4x256xbf16>
    %cst_39 = arith.constant dense<0.000000e+00> : vector<8x256xf32>
    %90 = tpu.matmul %88, %89, %cst_39 {dimension_numbers = #tpu.dot_dimension_numbers<[1], [0], [0], [1], [0, 0, 1, 1], [], []>} : vector<8x4xbf16>, vector<4x256xbf16>, vector<8x256xf32> -> vector<8x256xf32>
    %91 = arith.addf %82, %90 : vector<8x256xf32>
    %c241_i32 = arith.constant 241 : i32
    %92 = tpu.dynamic_rotate %39 by %c241_i32 dim 1 : vector<4x256xf32>, i32 -> vector<4x256xf32>
    %93 = vector.extract_strided_slice %2 {offsets = [6, 0], sizes = [1, 256], strides = [1, 1]} : vector<9x256xf32> to vector<1x256xf32>
    %94 = vector.broadcast %93 : vector<1x256xf32> to vector<4x256xf32>
    %95 = arith.mulf %92, %94 : vector<4x256xf32>
    %c6 = arith.constant 6 : index
    %c0_40 = arith.constant 0 : index
    %c0_41 = arith.constant 0 : index
    %96 = vector.load %arg4[%c6, %c0_40, %c0_41] : memref<9x8x4xbf16, #tpu.memory_space<vmem>>, vector<1x8x4xbf16>
    %97 = vector.shape_cast %96 : vector<1x8x4xbf16> to vector<8x4xbf16>
    %98 = arith.truncf %95 : vector<4x256xf32> to vector<4x256xbf16>
    %cst_42 = arith.constant dense<0.000000e+00> : vector<8x256xf32>
    %99 = tpu.matmul %97, %98, %cst_42 {dimension_numbers = #tpu.dot_dimension_numbers<[1], [0], [0], [1], [0, 0, 1, 1], [], []>} : vector<8x4xbf16>, vector<4x256xbf16>, vector<8x256xf32> -> vector<8x256xf32>
    %100 = arith.addf %91, %99 : vector<8x256xf32>
    %c240_i32 = arith.constant 240 : i32
    %101 = tpu.dynamic_rotate %39 by %c240_i32 dim 1 : vector<4x256xf32>, i32 -> vector<4x256xf32>
    %102 = vector.extract_strided_slice %2 {offsets = [7, 0], sizes = [1, 256], strides = [1, 1]} : vector<9x256xf32> to vector<1x256xf32>
    %103 = vector.broadcast %102 : vector<1x256xf32> to vector<4x256xf32>
    %104 = arith.mulf %101, %103 : vector<4x256xf32>
    %c7 = arith.constant 7 : index
    %c0_43 = arith.constant 0 : index
    %c0_44 = arith.constant 0 : index
    %105 = vector.load %arg4[%c7, %c0_43, %c0_44] : memref<9x8x4xbf16, #tpu.memory_space<vmem>>, vector<1x8x4xbf16>
    %106 = vector.shape_cast %105 : vector<1x8x4xbf16> to vector<8x4xbf16>
    %107 = arith.truncf %104 : vector<4x256xf32> to vector<4x256xbf16>
    %cst_45 = arith.constant dense<0.000000e+00> : vector<8x256xf32>
    %108 = tpu.matmul %106, %107, %cst_45 {dimension_numbers = #tpu.dot_dimension_numbers<[1], [0], [0], [1], [0, 0, 1, 1], [], []>} : vector<8x4xbf16>, vector<4x256xbf16>, vector<8x256xf32> -> vector<8x256xf32>
    %109 = arith.addf %100, %108 : vector<8x256xf32>
    %c239_i32 = arith.constant 239 : i32
    %110 = tpu.dynamic_rotate %39 by %c239_i32 dim 1 : vector<4x256xf32>, i32 -> vector<4x256xf32>
    %111 = vector.extract_strided_slice %2 {offsets = [8, 0], sizes = [1, 256], strides = [1, 1]} : vector<9x256xf32> to vector<1x256xf32>
    %112 = vector.broadcast %111 : vector<1x256xf32> to vector<4x256xf32>
    %113 = arith.mulf %110, %112 : vector<4x256xf32>
    %c8 = arith.constant 8 : index
    %c0_46 = arith.constant 0 : index
    %c0_47 = arith.constant 0 : index
    %114 = vector.load %arg4[%c8, %c0_46, %c0_47] : memref<9x8x4xbf16, #tpu.memory_space<vmem>>, vector<1x8x4xbf16>
    %115 = vector.shape_cast %114 : vector<1x8x4xbf16> to vector<8x4xbf16>
    %116 = arith.truncf %113 : vector<4x256xf32> to vector<4x256xbf16>
    %cst_48 = arith.constant dense<0.000000e+00> : vector<8x256xf32>
    %117 = tpu.matmul %115, %116, %cst_48 {dimension_numbers = #tpu.dot_dimension_numbers<[1], [0], [0], [1], [0, 0, 1, 1], [], []>} : vector<8x4xbf16>, vector<4x256xbf16>, vector<8x256xf32> -> vector<8x256xf32>
    %118 = arith.addf %109, %117 : vector<8x256xf32>
    %119 = vector.broadcast %40 : vector<8x1xf32> to vector<8x256xf32>
    %120 = arith.addf %118, %119 : vector<8x256xf32>
    %c0_49 = arith.constant 0 : index
    %c0_50 = arith.constant 0 : index
    %c0_51 = arith.constant 0 : index
    %121 = vector.load %arg6[%c0_49, %c0_50, %c0_51] : memref<1x8x1xf32, #tpu.memory_space<vmem>>, vector<1x8x1xf32>
    %122 = vector.shape_cast %121 : vector<1x8x1xf32> to vector<8x1xf32>
    %123 = vector.broadcast %122 : vector<8x1xf32> to vector<8x256xf32>
    %124 = arith.mulf %120, %123 : vector<8x256xf32>
    %c0_52 = arith.constant 0 : index
    %c0_53 = arith.constant 0 : index
    %c0_54 = arith.constant 0 : index
    %125 = vector.load %arg7[%c0_52, %c0_53, %c0_54] : memref<1x8x1xf32, #tpu.memory_space<vmem>>, vector<1x8x1xf32>
    %126 = vector.shape_cast %125 : vector<1x8x1xf32> to vector<8x1xf32>
    %127 = vector.broadcast %126 : vector<8x1xf32> to vector<8x256xf32>
    %128 = arith.addf %124, %127 : vector<8x256xf32>
    %c0_55 = arith.constant 0 : index
    %c0_56 = arith.constant 0 : index
    %129 = vector.load %arg8[%c0_55, %c0_56] : memref<8x1xf32, #tpu.memory_space<vmem>>, vector<8x1xf32>
    %c0_57 = arith.constant 0 : index
    %c0_58 = arith.constant 0 : index
    %130 = vector.load %arg9[%c0_57, %c0_58] : memref<8x1xf32, #tpu.memory_space<vmem>>, vector<8x1xf32>
    %cst_59 = arith.constant dense<0.000000e+00> : vector<8xf32>
    %131 = vector.multi_reduction <add>, %128, %cst_59 [1] : vector<8x256xf32> to vector<8xf32>
    %132 = vector.shape_cast %131 : vector<8xf32> to vector<8x1xf32>
    %133 = arith.mulf %128, %128 : vector<8x256xf32>
    %cst_60 = arith.constant dense<0.000000e+00> : vector<8xf32>
    %134 = vector.multi_reduction <add>, %133, %cst_60 [1] : vector<8x256xf32> to vector<8xf32>
    %135 = vector.shape_cast %134 : vector<8xf32> to vector<8x1xf32>
    %cst_61 = arith.constant dense<0.000000e+00> : vector<8xf32>
    %136 = vector.multi_reduction <add>, %132, %cst_61 [1] : vector<8x1xf32> to vector<8xf32>
    %137 = vector.shape_cast %136 : vector<8xf32> to vector<8x1xf32>
    %cst_62 = arith.constant dense<0.000000e+00> : vector<8xf32>
    %138 = vector.multi_reduction <add>, %135, %cst_62 [1] : vector<8x1xf32> to vector<8xf32>
    %139 = vector.shape_cast %138 : vector<8xf32> to vector<8x1xf32>
    %cst_63 = arith.constant 2.560000e+02 : f32
    %140 = vector.broadcast %cst_63 : f32 to vector<8x1xf32>
    %141 = arith.divf %137, %140 : vector<8x1xf32>
    %cst_64 = arith.constant 2.560000e+02 : f32
    %142 = vector.broadcast %cst_64 : f32 to vector<8x1xf32>
    %143 = arith.divf %139, %142 : vector<8x1xf32>
    %144 = arith.mulf %141, %141 : vector<8x1xf32>
    %145 = arith.subf %143, %144 : vector<8x1xf32>
    %cst_65 = arith.constant 0.000000e+00 : f32
    %146 = vector.broadcast %cst_65 : f32 to vector<8x1xf32>
    %147 = arith.maximumf %145, %146 : vector<8x1xf32>
    %cst_66 = arith.constant 9.99999974E-6 : f32
    %148 = vector.broadcast %cst_66 : f32 to vector<8x1xf32>
    %149 = arith.addf %147, %148 : vector<8x1xf32>
    %150 = math.rsqrt %149 : vector<8x1xf32>
    %151 = arith.mulf %150, %129 : vector<8x1xf32>
    %152 = arith.mulf %141, %151 : vector<8x1xf32>
    %153 = arith.subf %130, %152 : vector<8x1xf32>
    %154 = vector.broadcast %151 : vector<8x1xf32> to vector<8x256xf32>
    %155 = arith.mulf %128, %154 : vector<8x256xf32>
    %156 = vector.broadcast %153 : vector<8x1xf32> to vector<8x256xf32>
    %157 = arith.addf %155, %156 : vector<8x256xf32>
    %cst_67 = arith.constant 5.000000e-01 : f32
    %158 = vector.broadcast %cst_67 : f32 to vector<8x256xf32>
    %159 = arith.mulf %158, %157 : vector<8x256xf32>
    %cst_68 = arith.constant 5.000000e-01 : f32
    %160 = vector.broadcast %cst_68 : f32 to vector<8x256xf32>
    %161 = arith.mulf %160, %157 : vector<8x256xf32>
    %162 = math.tanh %161 : vector<8x256xf32>
    %cst_69 = arith.constant 1.000000e+00 : f32
    %163 = vector.broadcast %cst_69 : f32 to vector<8x256xf32>
    %164 = arith.addf %162, %163 : vector<8x256xf32>
    %165 = arith.mulf %159, %164 : vector<8x256xf32>
    %c0_70 = arith.constant 0 : index
    %c0_71 = arith.constant 0 : index
    %166 = vector.load %arg11[%c0_70, %c0_71] : memref<8x1xf32, #tpu.memory_space<vmem>>, vector<8x1xf32>
    %cst_72 = arith.constant 0.000000e+00 : f32
    %167 = vector.broadcast %cst_72 : f32 to vector<8x256xf32>
    %c17_i32_73 = arith.constant 17 : i32
    %168 = tpu.dynamic_rotate %165 by %c17_i32_73 dim 1 : vector<8x256xf32>, i32 -> vector<8x256xf32>
    %169 = vector.extract_strided_slice %2 {offsets = [0, 0], sizes = [1, 256], strides = [1, 1]} : vector<9x256xf32> to vector<1x256xf32>
    %170 = vector.broadcast %169 : vector<1x256xf32> to vector<8x256xf32>
    %171 = arith.mulf %168, %170 : vector<8x256xf32>
    %c0_74 = arith.constant 0 : index
    %c0_75 = arith.constant 0 : index
    %c0_76 = arith.constant 0 : index
    %172 = vector.load %arg10[%c0_74, %c0_75, %c0_76] : memref<9x8x8xbf16, #tpu.memory_space<vmem>>, vector<1x8x8xbf16>
    %173 = vector.shape_cast %172 : vector<1x8x8xbf16> to vector<8x8xbf16>
    %174 = arith.truncf %171 : vector<8x256xf32> to vector<8x256xbf16>
    %cst_77 = arith.constant dense<0.000000e+00> : vector<8x256xf32>
    %175 = tpu.matmul %173, %174, %cst_77 {dimension_numbers = #tpu.dot_dimension_numbers<[1], [0], [0], [1], [0, 0, 1, 1], [], []>} : vector<8x8xbf16>, vector<8x256xbf16>, vector<8x256xf32> -> vector<8x256xf32>
    %176 = arith.addf %167, %175 : vector<8x256xf32>
    %c16_i32_78 = arith.constant 16 : i32
    %177 = tpu.dynamic_rotate %165 by %c16_i32_78 dim 1 : vector<8x256xf32>, i32 -> vector<8x256xf32>
    %178 = vector.extract_strided_slice %2 {offsets = [1, 0], sizes = [1, 256], strides = [1, 1]} : vector<9x256xf32> to vector<1x256xf32>
    %179 = vector.broadcast %178 : vector<1x256xf32> to vector<8x256xf32>
    %180 = arith.mulf %177, %179 : vector<8x256xf32>
    %c1_79 = arith.constant 1 : index
    %c0_80 = arith.constant 0 : index
    %c0_81 = arith.constant 0 : index
    %181 = vector.load %arg10[%c1_79, %c0_80, %c0_81] : memref<9x8x8xbf16, #tpu.memory_space<vmem>>, vector<1x8x8xbf16>
    %182 = vector.shape_cast %181 : vector<1x8x8xbf16> to vector<8x8xbf16>
    %183 = arith.truncf %180 : vector<8x256xf32> to vector<8x256xbf16>
    %cst_82 = arith.constant dense<0.000000e+00> : vector<8x256xf32>
    %184 = tpu.matmul %182, %183, %cst_82 {dimension_numbers = #tpu.dot_dimension_numbers<[1], [0], [0], [1], [0, 0, 1, 1], [], []>} : vector<8x8xbf16>, vector<8x256xbf16>, vector<8x256xf32> -> vector<8x256xf32>
    %185 = arith.addf %176, %184 : vector<8x256xf32>
    %c15_i32_83 = arith.constant 15 : i32
    %186 = tpu.dynamic_rotate %165 by %c15_i32_83 dim 1 : vector<8x256xf32>, i32 -> vector<8x256xf32>
    %187 = vector.extract_strided_slice %2 {offsets = [2, 0], sizes = [1, 256], strides = [1, 1]} : vector<9x256xf32> to vector<1x256xf32>
    %188 = vector.broadcast %187 : vector<1x256xf32> to vector<8x256xf32>
    %189 = arith.mulf %186, %188 : vector<8x256xf32>
    %c2_84 = arith.constant 2 : index
    %c0_85 = arith.constant 0 : index
    %c0_86 = arith.constant 0 : index
    %190 = vector.load %arg10[%c2_84, %c0_85, %c0_86] : memref<9x8x8xbf16, #tpu.memory_space<vmem>>, vector<1x8x8xbf16>
    %191 = vector.shape_cast %190 : vector<1x8x8xbf16> to vector<8x8xbf16>
    %192 = arith.truncf %189 : vector<8x256xf32> to vector<8x256xbf16>
    %cst_87 = arith.constant dense<0.000000e+00> : vector<8x256xf32>
    %193 = tpu.matmul %191, %192, %cst_87 {dimension_numbers = #tpu.dot_dimension_numbers<[1], [0], [0], [1], [0, 0, 1, 1], [], []>} : vector<8x8xbf16>, vector<8x256xbf16>, vector<8x256xf32> -> vector<8x256xf32>
    %194 = arith.addf %185, %193 : vector<8x256xf32>
    %c1_i32_88 = arith.constant 1 : i32
    %195 = tpu.dynamic_rotate %165 by %c1_i32_88 dim 1 : vector<8x256xf32>, i32 -> vector<8x256xf32>
    %196 = vector.extract_strided_slice %2 {offsets = [3, 0], sizes = [1, 256], strides = [1, 1]} : vector<9x256xf32> to vector<1x256xf32>
    %197 = vector.broadcast %196 : vector<1x256xf32> to vector<8x256xf32>
    %198 = arith.mulf %195, %197 : vector<8x256xf32>
    %c3_89 = arith.constant 3 : index
    %c0_90 = arith.constant 0 : index
    %c0_91 = arith.constant 0 : index
    %199 = vector.load %arg10[%c3_89, %c0_90, %c0_91] : memref<9x8x8xbf16, #tpu.memory_space<vmem>>, vector<1x8x8xbf16>
    %200 = vector.shape_cast %199 : vector<1x8x8xbf16> to vector<8x8xbf16>
    %201 = arith.truncf %198 : vector<8x256xf32> to vector<8x256xbf16>
    %cst_92 = arith.constant dense<0.000000e+00> : vector<8x256xf32>
    %202 = tpu.matmul %200, %201, %cst_92 {dimension_numbers = #tpu.dot_dimension_numbers<[1], [0], [0], [1], [0, 0, 1, 1], [], []>} : vector<8x8xbf16>, vector<8x256xbf16>, vector<8x256xf32> -> vector<8x256xf32>
    %203 = arith.addf %194, %202 : vector<8x256xf32>
    %c4_93 = arith.constant 4 : index
    %c0_94 = arith.constant 0 : index
    %c0_95 = arith.constant 0 : index
    %204 = vector.load %arg10[%c4_93, %c0_94, %c0_95] : memref<9x8x8xbf16, #tpu.memory_space<vmem>>, vector<1x8x8xbf16>
    %205 = vector.shape_cast %204 : vector<1x8x8xbf16> to vector<8x8xbf16>
    %206 = arith.truncf %165 : vector<8x256xf32> to vector<8x256xbf16>
    %cst_96 = arith.constant dense<0.000000e+00> : vector<8x256xf32>
    %207 = tpu.matmul %205, %206, %cst_96 {dimension_numbers = #tpu.dot_dimension_numbers<[1], [0], [0], [1], [0, 0, 1, 1], [], []>} : vector<8x8xbf16>, vector<8x256xbf16>, vector<8x256xf32> -> vector<8x256xf32>
    %208 = arith.addf %203, %207 : vector<8x256xf32>
    %c255_i32_97 = arith.constant 255 : i32
    %209 = tpu.dynamic_rotate %165 by %c255_i32_97 dim 1 : vector<8x256xf32>, i32 -> vector<8x256xf32>
    %210 = vector.extract_strided_slice %2 {offsets = [5, 0], sizes = [1, 256], strides = [1, 1]} : vector<9x256xf32> to vector<1x256xf32>
    %211 = vector.broadcast %210 : vector<1x256xf32> to vector<8x256xf32>
    %212 = arith.mulf %209, %211 : vector<8x256xf32>
    %c5_98 = arith.constant 5 : index
    %c0_99 = arith.constant 0 : index
    %c0_100 = arith.constant 0 : index
    %213 = vector.load %arg10[%c5_98, %c0_99, %c0_100] : memref<9x8x8xbf16, #tpu.memory_space<vmem>>, vector<1x8x8xbf16>
    %214 = vector.shape_cast %213 : vector<1x8x8xbf16> to vector<8x8xbf16>
    %215 = arith.truncf %212 : vector<8x256xf32> to vector<8x256xbf16>
    %cst_101 = arith.constant dense<0.000000e+00> : vector<8x256xf32>
    %216 = tpu.matmul %214, %215, %cst_101 {dimension_numbers = #tpu.dot_dimension_numbers<[1], [0], [0], [1], [0, 0, 1, 1], [], []>} : vector<8x8xbf16>, vector<8x256xbf16>, vector<8x256xf32> -> vector<8x256xf32>
    %217 = arith.addf %208, %216 : vector<8x256xf32>
    %c241_i32_102 = arith.constant 241 : i32
    %218 = tpu.dynamic_rotate %165 by %c241_i32_102 dim 1 : vector<8x256xf32>, i32 -> vector<8x256xf32>
    %219 = vector.extract_strided_slice %2 {offsets = [6, 0], sizes = [1, 256], strides = [1, 1]} : vector<9x256xf32> to vector<1x256xf32>
    %220 = vector.broadcast %219 : vector<1x256xf32> to vector<8x256xf32>
    %221 = arith.mulf %218, %220 : vector<8x256xf32>
    %c6_103 = arith.constant 6 : index
    %c0_104 = arith.constant 0 : index
    %c0_105 = arith.constant 0 : index
    %222 = vector.load %arg10[%c6_103, %c0_104, %c0_105] : memref<9x8x8xbf16, #tpu.memory_space<vmem>>, vector<1x8x8xbf16>
    %223 = vector.shape_cast %222 : vector<1x8x8xbf16> to vector<8x8xbf16>
    %224 = arith.truncf %221 : vector<8x256xf32> to vector<8x256xbf16>
    %cst_106 = arith.constant dense<0.000000e+00> : vector<8x256xf32>
    %225 = tpu.matmul %223, %224, %cst_106 {dimension_numbers = #tpu.dot_dimension_numbers<[1], [0], [0], [1], [0, 0, 1, 1], [], []>} : vector<8x8xbf16>, vector<8x256xbf16>, vector<8x256xf32> -> vector<8x256xf32>
    %226 = arith.addf %217, %225 : vector<8x256xf32>
    %c240_i32_107 = arith.constant 240 : i32
    %227 = tpu.dynamic_rotate %165 by %c240_i32_107 dim 1 : vector<8x256xf32>, i32 -> vector<8x256xf32>
    %228 = vector.extract_strided_slice %2 {offsets = [7, 0], sizes = [1, 256], strides = [1, 1]} : vector<9x256xf32> to vector<1x256xf32>
    %229 = vector.broadcast %228 : vector<1x256xf32> to vector<8x256xf32>
    %230 = arith.mulf %227, %229 : vector<8x256xf32>
    %c7_108 = arith.constant 7 : index
    %c0_109 = arith.constant 0 : index
    %c0_110 = arith.constant 0 : index
    %231 = vector.load %arg10[%c7_108, %c0_109, %c0_110] : memref<9x8x8xbf16, #tpu.memory_space<vmem>>, vector<1x8x8xbf16>
    %232 = vector.shape_cast %231 : vector<1x8x8xbf16> to vector<8x8xbf16>
    %233 = arith.truncf %230 : vector<8x256xf32> to vector<8x256xbf16>
    %cst_111 = arith.constant dense<0.000000e+00> : vector<8x256xf32>
    %234 = tpu.matmul %232, %233, %cst_111 {dimension_numbers = #tpu.dot_dimension_numbers<[1], [0], [0], [1], [0, 0, 1, 1], [], []>} : vector<8x8xbf16>, vector<8x256xbf16>, vector<8x256xf32> -> vector<8x256xf32>
    %235 = arith.addf %226, %234 : vector<8x256xf32>
    %c239_i32_112 = arith.constant 239 : i32
    %236 = tpu.dynamic_rotate %165 by %c239_i32_112 dim 1 : vector<8x256xf32>, i32 -> vector<8x256xf32>
    %237 = vector.extract_strided_slice %2 {offsets = [8, 0], sizes = [1, 256], strides = [1, 1]} : vector<9x256xf32> to vector<1x256xf32>
    %238 = vector.broadcast %237 : vector<1x256xf32> to vector<8x256xf32>
    %239 = arith.mulf %236, %238 : vector<8x256xf32>
    %c8_113 = arith.constant 8 : index
    %c0_114 = arith.constant 0 : index
    %c0_115 = arith.constant 0 : index
    %240 = vector.load %arg10[%c8_113, %c0_114, %c0_115] : memref<9x8x8xbf16, #tpu.memory_space<vmem>>, vector<1x8x8xbf16>
    %241 = vector.shape_cast %240 : vector<1x8x8xbf16> to vector<8x8xbf16>
    %242 = arith.truncf %239 : vector<8x256xf32> to vector<8x256xbf16>
    %cst_116 = arith.constant dense<0.000000e+00> : vector<8x256xf32>
    %243 = tpu.matmul %241, %242, %cst_116 {dimension_numbers = #tpu.dot_dimension_numbers<[1], [0], [0], [1], [0, 0, 1, 1], [], []>} : vector<8x8xbf16>, vector<8x256xbf16>, vector<8x256xf32> -> vector<8x256xf32>
    %244 = arith.addf %235, %243 : vector<8x256xf32>
    %245 = vector.broadcast %166 : vector<8x1xf32> to vector<8x256xf32>
    %246 = arith.addf %244, %245 : vector<8x256xf32>
    %c0_117 = arith.constant 0 : index
    %c0_118 = arith.constant 0 : index
    %247 = vector.load %arg12[%c0_117, %c0_118] : memref<8x4xbf16, #tpu.memory_space<vmem>>, vector<8x4xbf16>
    %248 = arith.truncf %1 : vector<4x256xf32> to vector<4x256xbf16>
    %cst_119 = arith.constant dense<0.000000e+00> : vector<8x256xf32>
    %249 = tpu.matmul %247, %248, %cst_119 {dimension_numbers = #tpu.dot_dimension_numbers<[1], [0], [0], [1], [0, 0, 1, 1], [], []>} : vector<8x4xbf16>, vector<4x256xbf16>, vector<8x256xf32> -> vector<8x256xf32>
    %c0_120 = arith.constant 0 : index
    %c0_121 = arith.constant 0 : index
    %250 = vector.load %arg13[%c0_120, %c0_121] : memref<8x1xf32, #tpu.memory_space<vmem>>, vector<8x1xf32>
    %251 = vector.broadcast %250 : vector<8x1xf32> to vector<8x256xf32>
    %252 = arith.addf %249, %251 : vector<8x256xf32>
    %253 = arith.addf %246, %252 : vector<8x256xf32>
    %c0_122 = arith.constant 0 : index
    %c0_123 = arith.constant 0 : index
    %c0_124 = arith.constant 0 : index
    %254 = vector.load %arg15[%c0_122, %c0_123, %c0_124] : memref<1x8x256xf32, #tpu.memory_space<vmem>>, vector<1x8x256xf32>
    %255 = vector.shape_cast %254 : vector<1x8x256xf32> to vector<8x256xf32>
    %256 = vector.shape_cast %253 : vector<8x256xf32> to vector<1x8x256xf32>
    tpu.vector_store %arg15[%c0_122, %c0_123, %c0_124], %256 {strides = array<i32>} : memref<1x8x256xf32, #tpu.memory_space<vmem>>, vector<1x8x256xf32>,
    return
  }
  func.func @transform_0(%arg0: i32) -> (i32, i32, i32) {
    %c0_i32 = arith.constant 0 : i32
    %c0_i32_0 = arith.constant 0 : i32
    %c0_i32_1 = arith.constant 0 : i32
    return %arg0, %c0_i32, %c0_i32_0 : i32, i32, i32
  }
  func.func @transform_1(%arg0: i32) -> (i32, i32) {
    %c0_i32 = arith.constant 0 : i32
    %c0_i32_0 = arith.constant 0 : i32
    %c0_i32_1 = arith.constant 0 : i32
    return %c0_i32, %c0_i32_0 : i32, i32
  }
  func.func @transform_2(%arg0: i32) -> (i32, i32) {
    %c0_i32 = arith.constant 0 : i32
    %c0_i32_0 = arith.constant 0 : i32
    %c0_i32_1 = arith.constant 0 : i32
    return %c0_i32, %c0_i32_0 : i32, i32
  }
  func.func @transform_3(%arg0: i32) -> (i32, i32, i32) {
    %c0_i32 = arith.constant 0 : i32
    %c0_i32_0 = arith.constant 0 : i32
    %c0_i32_1 = arith.constant 0 : i32
    %c0_i32_2 = arith.constant 0 : i32
    return %c0_i32, %c0_i32_0, %c0_i32_1 : i32, i32, i32
  }
  func.func @transform_4(%arg0: i32) -> (i32, i32) {
    %c0_i32 = arith.constant 0 : i32
    %c0_i32_0 = arith.constant 0 : i32
    %c0_i32_1 = arith.constant 0 : i32
    return %c0_i32, %c0_i32_0 : i32, i32
  }
  func.func @transform_5(%arg0: i32) -> (i32, i32, i32) {
    %c0_i32 = arith.constant 0 : i32
    %c0_i32_0 = arith.constant 0 : i32
    %c0_i32_1 = arith.constant 0 : i32
    return %arg0, %c0_i32, %c0_i32_0 : i32, i32, i32
  }
  func.func @transform_6(%arg0: i32) -> (i32, i32, i32) {
    %c0_i32 = arith.constant 0 : i32
    %c0_i32_0 = arith.constant 0 : i32
    %c0_i32_1 = arith.constant 0 : i32
    return %arg0, %c0_i32, %c0_i32_0 : i32, i32, i32
  }
  func.func @transform_7(%arg0: i32) -> (i32, i32) {
    %c0_i32 = arith.constant 0 : i32
    %c0_i32_0 = arith.constant 0 : i32
    %c0_i32_1 = arith.constant 0 : i32
    return %c0_i32, %c0_i32_0 : i32, i32
  }
  func.func @transform_8(%arg0: i32) -> (i32, i32) {
    %c0_i32 = arith.constant 0 : i32
    %c0_i32_0 = arith.constant 0 : i32
    %c0_i32_1 = arith.constant 0 : i32
    return %c0_i32, %c0_i32_0 : i32, i32
  }
  func.func @transform_9(%arg0: i32) -> (i32, i32, i32) {
    %c0_i32 = arith.constant 0 : i32
    %c0_i32_0 = arith.constant 0 : i32
    %c0_i32_1 = arith.constant 0 : i32
    %c0_i32_2 = arith.constant 0 : i32
    return %c0_i32, %c0_i32_0, %c0_i32_1 : i32, i32, i32
  }
  func.func @transform_10(%arg0: i32) -> (i32, i32) {
    %c0_i32 = arith.constant 0 : i32
    %c0_i32_0 = arith.constant 0 : i32
    %c0_i32_1 = arith.constant 0 : i32
    return %c0_i32, %c0_i32_0 : i32, i32
  }
  func.func @transform_11(%arg0: i32) -> (i32, i32) {
    %c0_i32 = arith.constant 0 : i32
    %c0_i32_0 = arith.constant 0 : i32
    %c0_i32_1 = arith.constant 0 : i32
    return %c0_i32, %c0_i32_0 : i32, i32
  }
  func.func @transform_12(%arg0: i32) -> (i32, i32) {
    %c0_i32 = arith.constant 0 : i32
    %c0_i32_0 = arith.constant 0 : i32
    %c0_i32_1 = arith.constant 0 : i32
    return %c0_i32, %c0_i32_0 : i32, i32
  }
  func.func @transform_13(%arg0: i32) -> (i32, i32) {
    %c0_i32 = arith.constant 0 : i32
    %c0_i32_0 = arith.constant 0 : i32
    %c0_i32_1 = arith.constant 0 : i32
    return %c0_i32, %c0_i32_0 : i32, i32
  }
  func.func @transform_14(%arg0: i32) -> (i32, i32, i32) {
    %c0_i32 = arith.constant 0 : i32
    %c0_i32_0 = arith.constant 0 : i32
    %c0_i32_1 = arith.constant 0 : i32
    return %arg0, %c0_i32, %c0_i32_0 : i32, i32, i32
  }
}

</mosaic_0001>

<bundles_post_ra>
// kernel: resnet_block_forward.3
= control target key start
LH: loop header
LB: loop body
LE: loop exit
PB: predicated region body
PF: predicated region fallthrough
CT: control target
= control target key end

     0   :  { %s4108_s0 = inlined_call_operand.hbm [shape: f32[2,4,256], index: 0, kind: input, shape index: {}]   ;;  %s4109_s1 = inlined_call_operand.hbm [shape: f32[4,1], index: 1, kind: input, shape index: {}]   ;;  %s4110_s2 = inlined_call_operand.hbm [shape: f32[4,1], index: 2, kind: input, shape index: {}]   ;;  %s4111_s3 = inlined_call_operand.hbm [shape: bf16[9,8,4], index: 3, kind: input, shape index: {}]   ;;  %s4112_s4 = inlined_call_operand.hbm [shape: f32[8,1], index: 4, kind: input, shape index: {}]   ;;  %s4113_s5 = inlined_call_operand.hbm [shape: f32[2,8,1], index: 5, kind: input, shape index: {}]   ;;  %s4114_s6 = inlined_call_operand.hbm [shape: f32[2,8,1], index: 6, kind: input, shape index: {}]   ;;  %s4115_s7 = inlined_call_operand.hbm [shape: f32[8,1], index: 7, kind: input, shape index: {}]   ;;  %s4116_s8 = inlined_call_operand.hbm [shape: f32[8,1], index: 8, kind: input, shape index: {}]   ;;  %s4117_s9 = inlined_call_operand.hbm [shape: bf16[9,8,8], index: 9, kind: input, shape index: {}]   ;;  %s4118_s10 = inlined_call_operand.hbm [shape: f32[8,1], index: 10, kind: input, shape index: {}]   ;;  %s4119_s11 = inlined_call_operand.hbm [shape: bf16[8,4], index: 11, kind: input, shape index: {}]   ;;  %s4120_s12 = inlined_call_operand.hbm [shape: f32[8,1], index: 12, kind: input, shape index: {}]   ;;  %s4121_s13 = inlined_call_operand.hbm [shape: f32[9,256], index: 13, kind: input, shape index: {}]   ;;  %s4122_s14 = inlined_call_operand.hbm [shape: f32[2,8,256], index: 14, kind: output, shape index: {}]  }
   0x1   :  { %4147 = sst [smem:[#allocation41_spill]] %s4108_s0 }
   0x2   :  { %4148 = sst [smem:[#allocation42_spill]] %s4109_s1 }
   0x3   :  { %4149 = sst [smem:[#allocation43_spill]] %s4111_s3 }
   0x4   :  { %4150 = sst [smem:[#allocation44_spill]] %s4113_s5 }
   0x5   :  { %4151 = sst [smem:[#allocation45_spill]] %s4114_s6 }
   0x6   :  { %4152 = sst [smem:[#allocation46_spill]] %s4115_s7 }
   0x7   :  { %4153 = sst [smem:[#allocation47_spill]] %s4117_s9 }
   0x8   :  { %4154 = sst [smem:[#allocation48_spill]] %s4119_s11 }
   0x9   :  { %4155 = sst [smem:[#allocation49_spill]] %s4122_s14 }
   0xa   :  { %19 = vsyncpa [#allocation3], 0 }
   0xb   :  { %21 = vsyncpa [#allocation3 + $0x1], 0 }
   0xc   :  { %22 = vsyncpa [#allocation6], 0 }
   0xd   :  { %23 = vsyncpa [#allocation9], 0 }
   0xe   :  { %24 = vsyncpa [#allocation12], 0 }
   0xf   :  { %26 = vsyncpa [#allocation12 + $0x1], 0 }
  0x10   :  { %27 = vsyncpa [#allocation15], 0 }
  0x11   :  { %28 = vsyncpa [#allocation18], 0 }
  0x12   :  { %29 = vsyncpa [#allocation21], 0 }
  0x13   :  { %30 = vsyncpa [#allocation24], 0 }
  0x14   :  { %31 = vsyncpa [#allocation4], 0 }
  0x15   :  { %33 = vsyncpa [#allocation4 + $0x1], 0  ;;  %s3262_s29 = smov 0   ;;  %s3264_s30 = smov 0  }
  0x16   :  { %s3266_s15 = smov 0   ;;  %s3268_s16 = smov 0  }
  0x17 LB: > { %4156 = sst [smem:[#allocation35_spill]] %s3144_s29  ;;  %s3158_s17 = smov [#allocation5]   ;;  %s3156_s16 = sphi %s3268_s16, %s4209_s16   ;;  %s3152_s15 = sphi %s3266_s15, %s4213_s15   ;;  %s3148_s30 = sphi %s3264_s30, %s4212_s30   ;;  %s3144_s29 = sphi %s3262_s29, %s4211_s29  }
  0x18   : > { %4157 = sst [smem:[#allocation36_spill]] %s3156_s16  ;;  %s392_s18 = sshll.u32 %s3158_s17, 4  ;;  %s393_s18 = int_to_ptr.vmem [resolvable:$true] %s392_s18 }
  0x19   : > { %s3283_s19 = sadd.s32 4294967295, %s3156_s16   ;;  %p2347_p0 = scmp.ge.s32.totalorder %s3156_s16, 1 }
  0x1a   : > { %p4125_p1 = scmp.eq.s32.totalorder %s3283_s19, 0  ;;  %p379_p2 = scmp.lt.s32.totalorder %s3156_s16, 3 }
  0x1b   : > { %s3159_s21 = smov [#allocation8]   ;;  %s3160_s24 = smov [#allocation14]  }
  0x1c   : > { %p3288_p3 = pnand %p2347_p0, %p379_p2  ;;  %s413_s22 = sshll.u32 %s3159_s21, 4  ;;  %s3295_s22 = int_to_ptr.vmem [resolvable:$true] %s413_s22 }
  0x1d   : > { %s438_s25 = sshll.u32 %s3160_s24, 4  ;;  %s4161_s1 = sld [smem:[#allocation42_spill]]  ;;  %s3303_s25 = int_to_ptr.vmem [resolvable:$true] %s438_s25 }
  0x1e   : > { %s4158_s20 = scalar_select %p3288_p3, 1, 0 }
  0x1f   : > { %p2522_p5 = pneg %p3288_p3 }
  0x20   : > { %4159 = sst [smem:[#allocation37_spill]] %s4158_s20 }
  0x21   : > { %p3299_p6 = pnand %p2522_p5, %p4125_p1 }
  0x23   : > { %s4160_s23 = scalar_select %p3299_p6, 1, 0 }
  0x24   : > { %s2664_s28 = scalar_lea.hbm %s4161_s1, 64  ;;  %p3313_p8 = pneg %p3299_p6 }
  0x25   : > { %p2665_p7 = scmp.ne.s32.totalorder %s4161_s1, %s2664_s28  ;;  %p2671_p11 = scmp.lt.u32.totalorder %s2664_s28, %s4161_s1 }
  0x26   : > { %s4162_s21 = scalar_select %p3313_p8, 1, 0 }
  0x27   : > { %p2667_p9 = pnand %p3313_p8, %p2665_p7 }
  0x29   : > { %p2668_p10 = pneg %p2667_p9 }
  0x2b   : > { %p2673_p12 = pnand %p2671_p11, %p2668_p10 }
  0x2d   : > { %2676 = shalt.err (!%p2673_p12)
}
  0x2e   : > { %s2677_s26 = scalar_lea.vmem %s393_s18, 64  ;;  %p2685_p5 = scmp.lt.s32.totalorder %s393_s18, %s393_s18 }
  0x2f   : > { %p2678_p13 = scmp.ne.s32.totalorder %s393_s18, %s2677_s26  ;;  %p2686_p4 = scmp.lt.s32.totalorder %s2677_s26, %s2677_s26 }
  0x31   : > { %p2680_p0 = pnand %p2678_p13, %p3313_p8  ;;  %p2687_p1 = por %p2686_p4, %p2685_p5 }
  0x33   : > { %p2681_p2 = pneg %p2680_p0 }
  0x35   : > { %p2688_p3 = pnand %p2687_p1, %p2681_p2 }
  0x37   : > { %2691 = shalt.err (!%p2688_p3)
}
  0x38   : > { %2525 = dma.hbm_to_vmem [thread:$0]  (!%p3299_p6), %s4161_s1, 64, %s393_s18, [#allocation6]  }
  0x39   : > { %s4163_s3 = sld [smem:[#allocation43_spill]] }
  0x3f   : > { %s2692_s17 = scalar_lea.hbm %s4163_s3, 576 }
  0x40   : > { %p2693_p7 = scmp.ne.s32.totalorder %s4163_s3, %s2692_s17  ;;  %p2699_p1 = scmp.lt.u32.totalorder %s2692_s17, %s4163_s3 }
  0x42   : > { %p2695_p9 = pnand %p2693_p7, %p3313_p8 }
  0x44   : > { %p2696_p4 = pneg %p2695_p9 }
  0x46   : > { %p2701_p3 = pnand %p2699_p1, %p2696_p4 }
  0x48   : > { %2704 = shalt.err (!%p2701_p3)
}
  0x49   : > { %s2705_s18 = scalar_lea.vmem %s3295_s22, 576  ;;  %p2713_p13 = scmp.lt.s32.totalorder %s3295_s22, %s3295_s22 }
  0x4a   : > { %p2706_p10 = scmp.ne.s32.totalorder %s3295_s22, %s2705_s18  ;;  %p2714_p0 = scmp.lt.s32.totalorder %s2705_s18, %s2705_s18 }
  0x4c   : > { %p2708_p11 = pnand %p2706_p10, %p3313_p8  ;;  %p2715_p2 = por %p2714_p0, %p2713_p13 }
  0x4e   : > { %p2709_p12 = pneg %p2708_p11 }
  0x50   : > { %p2716_p5 = pnand %p2715_p2, %p2709_p12 }
  0x52   : > { %2719 = shalt.err (!%p2716_p5)
}
  0x53   : > { %s4129_s6 = smov 64   ;;  %s4130_s0 = smov 4  }
  0x54   : > { %2531 = dma.hbm_to_vmem [thread:$0]  (!%p3299_p6), %s4163_s3, 576, %s3295_s22, [#allocation9], %s4129_s6, %s4129_s6, %s4130_s0  }
  0x55   : > { %s4164_s7 = sld [smem:[#allocation46_spill]] }
  0x5b   : > { %s2720_s17 = scalar_lea.hbm %s4164_s7, 128 }
  0x5c   : > { %p2721_p7 = scmp.ne.s32.totalorder %s4164_s7, %s2720_s17  ;;  %p2727_p1 = scmp.lt.u32.totalorder %s2720_s17, %s4164_s7 }
  0x5e   : > { %p2723_p9 = pnand %p2721_p7, %p3313_p8 }
  0x60   : > { %p2724_p4 = pneg %p2723_p9 }
  0x62   : > { %p2729_p3 = pnand %p2727_p1, %p2724_p4 }
  0x64   : > { %2732 = shalt.err (!%p2729_p3)
}
  0x65   : > { %s2733_s22 = scalar_lea.vmem %s3303_s25, 128  ;;  %p2741_p13 = scmp.lt.s32.totalorder %s3303_s25, %s3303_s25 }
  0x66   : > { %p2734_p10 = scmp.ne.s32.totalorder %s3303_s25, %s2733_s22  ;;  %p2742_p0 = scmp.lt.s32.totalorder %s2733_s22, %s2733_s22 }
  0x68   : > { %p2736_p11 = pnand %p2734_p10, %p3313_p8  ;;  %p2743_p2 = por %p2742_p0, %p2741_p13 }
  0x6a   : > { %p2737_p12 = pneg %p2736_p11 }
  0x6c   : > { %p2744_p5 = pnand %p2743_p2, %p2737_p12 }
  0x6e   : > { %2747 = shalt.err (!%p2744_p5)
}
  0x6f   : > { %2537 = dma.hbm_to_vmem [thread:$0]  (!%p3299_p6), %s4164_s7, 128, %s3303_s25, [#allocation15]  }
  0x70   : > { %s3163_s27 = smov [#allocation17]   ;;  %s3164_s28 = smov [#allocation20]  }
  0x71   : > { %s459_s20 = sshll.u32 %s3163_s27, 4  ;;  %s484_s17 = sshll.u32 %s3164_s28, 4  ;;  %s460_s20 = int_to_ptr.vmem [resolvable:$true] %s459_s20  ;;  %s485_s17 = int_to_ptr.vmem [resolvable:$true] %s484_s17 }
  0x72   : > { %s4165_s9 = sld [smem:[#allocation47_spill]] }
  0x78   : > { %s2748_s18 = scalar_lea.hbm %s4165_s9, 576 }
  0x79   : > { %p2749_p7 = scmp.ne.s32.totalorder %s4165_s9, %s2748_s18  ;;  %p2755_p1 = scmp.lt.u32.totalorder %s2748_s18, %s4165_s9 }
  0x7b   : > { %p2751_p9 = pnand %p2749_p7, %p3313_p8 }
  0x7d   : > { %p2752_p4 = pneg %p2751_p9 }
  0x7f   : > { %p2757_p3 = pnand %p2755_p1, %p2752_p4 }
  0x81   : > { %2760 = shalt.err (!%p2757_p3)
}
  0x82   : > { %s2761_s25 = scalar_lea.vmem %s460_s20, 576  ;;  %p2769_p13 = scmp.lt.s32.totalorder %s460_s20, %s460_s20 }
  0x83   : > { %p2762_p10 = scmp.ne.s32.totalorder %s460_s20, %s2761_s25  ;;  %p2770_p0 = scmp.lt.s32.totalorder %s2761_s25, %s2761_s25 }
  0x85   : > { %p2764_p11 = pnand %p2762_p10, %p3313_p8  ;;  %p2771_p2 = por %p2770_p0, %p2769_p13 }
  0x87   : > { %p2765_p12 = pneg %p2764_p11 }
  0x89   : > { %p2772_p5 = pnand %p2771_p2, %p2765_p12 }
  0x8b   : > { %2775 = shalt.err (!%p2772_p5)
}
  0x8c   : > { %s4166_s6 = smov 4   ;;  %s4167_s14 = smov 64  }
  0x8d   : > { %2543 = dma.hbm_to_vmem [thread:$0]  (!%p3299_p6), %s4165_s9, 576, %s460_s20, [#allocation18], %s4167_s14, %s4167_s14, %s4166_s6  }
  0x8e   : > { %s4168_s11 = sld [smem:[#allocation48_spill]] }
  0x94   : > { %s2776_s26 = scalar_lea.hbm %s4168_s11, 64 }
  0x95   : > { %p2777_p7 = scmp.ne.s32.totalorder %s4168_s11, %s2776_s26  ;;  %p2783_p1 = scmp.lt.u32.totalorder %s2776_s26, %s4168_s11 }
  0x97   : > { %p2779_p9 = pnand %p2777_p7, %p3313_p8 }
  0x99   : > { %p2780_p4 = pneg %p2779_p9 }
  0x9b   : > { %p2785_p3 = pnand %p2783_p1, %p2780_p4 }
  0x9d   : > { %2788 = shalt.err (!%p2785_p3)
}
  0x9e   : > { %s2789_s0 = scalar_lea.vmem %s485_s17, 64  ;;  %p2797_p13 = scmp.lt.s32.totalorder %s485_s17, %s485_s17 }
  0x9f   : > { %p2790_p10 = scmp.ne.s32.totalorder %s485_s17, %s2789_s0  ;;  %p2798_p0 = scmp.lt.s32.totalorder %s2789_s0, %s2789_s0 }
  0xa1   : > { %p2792_p11 = pnand %p2790_p10, %p3313_p8  ;;  %p2799_p2 = por %p2798_p0, %p2797_p13 }
  0xa3   : > { %p2793_p12 = pneg %p2792_p11 }
  0xa5   : > { %p2800_p5 = pnand %p2799_p2, %p2793_p12 }
  0xa7   : > { %2803 = shalt.err (!%p2800_p5)
}
  0xa8   : > { %2549 = dma.hbm_to_vmem [thread:$0]  (!%p3299_p6), %s4168_s11, 64, %s485_s17, [#allocation21]  }
  0xa9   : > { %s2346_s14 = sadd.s32 4294967294, %s3156_s16   ;;  %s3419_s27 = sadd.s32 1, %s3156_s16  }
  0xaa   : > { %4169 = sst [smem:[#allocation38_spill]] %s3419_s27  ;;  %s46_s28 = sadd.s32 1, %s3152_s15 }
  0xab   : > { %s43_s24 = ssub.s32 %s3156_s16, %s3419_s27  ;;  %p53_p7 = scmp.ne.s32.totalorder %s3152_s15, %s3148_s30 }
  0xac   : > { %p44_p9 = scmp.eq.s32.totalorder %s43_s24, 0  ;;  %p54_p4 = scmp.eq.s32.totalorder %s3156_s16, 0 }
  0xad   : > { %p59_p1 = scmp.ne.s32.totalorder %s3148_s30, %s3144_s29  ;;  %p366_p3 = scmp.eq.s32.totalorder %s3283_s19, 1 }
  0xae   : > { %s3431_s26 = scalar_select %p44_p9, %s3152_s15, %s46_s28  }
  0xaf   : > { %p55_p10 = por %p54_p4, %p53_p7  ;;  %p4171_p11 = scmp.eq.s32.totalorder %s3283_s19, 0 }
  0xb0   : > { %4170 = sst [smem:[#allocation39_spill]] %s3431_s26  ;;  %p3439_p13 = por %p366_p3, %p53_p7 }
  0xb1   : > { %p3435_p12 = por %p4171_p11, %p59_p1  ;;  %p372_p0 = scmp.eq.s32.totalorder %s2346_s14, 1 }
  0xb2   : > { %s4173_s18 = scalar_select %p3439_p13, 1, 0 }
  0xb3   : > { %s4172_s17 = scalar_select %p3435_p12, 1, 0 }
  0xb4   : > { %p2581_p2 = scmp.lt.s32.totalorder %s3156_s16, 2  ;;  %s4131_s22 = sand.u32 1, %s3152_s15  }
  0xb5   : > { %p3445_p5 = por %p372_p0, %p59_p1  ;;  %s3451_s25 = sshll.u32 %s4131_s22, 3 }
  0xb6   : > { %s3454_s0 = sshll.u32 %s3156_s16, 7  ;;  %p3456_p9 = pnand %p2581_p2, %p55_p10 }
  0xb7   : > { %s4174_s1 = scalar_select %p3445_p5, 1, 0 }
  0xb8   : > { %s4176_s20 = scalar_select %p3456_p9, 1, 0 }
  0xb9   : > { %4175 = sst [smem:[#allocation40_spill]] %s4174_s1  ;;  %s538_s6 = sand.u32 1, %s3156_s16  }
  0xba   : > { %s4177_s5 = sld [smem:[#allocation44_spill]]  ;;  %s542_s22 = scalar_lea.vmem [#allocation11], %s3451_s25 }
  0xbb   : > { %s549_s3 = sshll.u32 %s542_s22, 4  ;;  %s3470_s7 = scalar_lea.sflag [#allocation12], %s538_s6  ;;  %s3468_s3 = int_to_ptr.vmem [resolvable:$true] %s549_s3 }
  0xbc   : > { %p3476_p4 = pneg %p3456_p9 }
  0xbe   : > { %s4178_s11 = scalar_select %p3476_p4, 1, 0 }
  0xc0   : > { %s3465_s24 = scalar_lea.hbm %s4177_s5, %s3454_s0  ;;  %s2809_s26 = scalar_lea.hbm %s4177_s5, 256 }
  0xc1   : > { %s2804_s9 = scalar_lea.hbm %s3465_s24, 128  ;;  %p2810_p10 = scmp.lt.u32.totalorder %s3465_s24, %s4177_s5 }
  0xc2   : > { %p2805_p7 = scmp.ne.s32.totalorder %s3465_s24, %s2804_s9  ;;  %p2811_p11 = scmp.lt.u32.totalorder %s2809_s26, %s2804_s9 }
  0xc3   : > { %p2813_p2 = scmp.lt.u32.totalorder %s2804_s9, %s3465_s24 }
  0xc4   : > { %p2807_p1 = pnand %p3476_p4, %p2805_p7  ;;  %p2812_p0 = por %p2811_p11, %p2810_p10 }
  0xc6   : > { %p2808_p3 = pneg %p2807_p1  ;;  %p2814_p5 = por %p2813_p2, %p2812_p0 }
  0xc8   : > { %p2815_p13 = pnand %p2814_p5, %p2808_p3 }
  0xca   : > { %2818 = shalt.err (!%p2815_p13)
}
  0xcb   : > { %s2819_s6 = scalar_lea.vmem %s3468_s3, 128  ;;  %s3165_s14 = smov [#allocation11]  }
  0xcc   : > { %p2820_p7 = scmp.ne.s32.totalorder %s3468_s3, %s2819_s6  ;;  %s2824_s28 = sshll.u32 %s3165_s14, 4  ;;  %s2825_s28 = int_to_ptr.vmem [resolvable:$false] %s2824_s28 }
  0xcd   : > { %s2826_s27 = scalar_lea.vmem %s2825_s28, 256  ;;  %p2827_p6 = scmp.lt.s32.totalorder %s3468_s3, %s2825_s28 }
  0xce   : > { %p2822_p1 = pnand %p2820_p7, %p3476_p4  ;;  %p2828_p8 = scmp.lt.s32.totalorder %s2826_s27, %s2819_s6 }
  0xd0   : > { %p2823_p12 = pneg %p2822_p1  ;;  %p2829_p10 = por %p2828_p8, %p2827_p6 }
  0xd2   : > { %p2830_p11 = pnand %p2829_p10, %p2823_p12 }
  0xd4   : > { %2833 = shalt.err (!%p2830_p11)
}
  0xd5   : > { %2562 = dma.hbm_to_vmem [thread:$0]  (!%p3456_p9), %s3465_s24, 128, %s3468_s3, %s3470_s7  }
  0xd6   : > { %s3166_s9 = smov [#allocation7]   ;;  %s3167_s22 = smov [#allocation10]  }
  0xd7   : > { %s403_s26 = sshll.u32 %s3166_s9, 4  ;;  %s427_s5 = sshll.u32 %s3167_s22, 4  ;;  %s404_s26 = int_to_ptr.vmem [resolvable:$true] %s403_s26  ;;  %s428_s5 = int_to_ptr.vmem [resolvable:$true] %s427_s5 }
  0xd8   : > { %s2834_s28 = scalar_lea.hbm %s4110_s2, 64  ;;  %p4179_p8 = scmp.ne.s32.totalorder %s4162_s21, 0 }
  0xd9   : > { %p2835_p6 = scmp.ne.s32.totalorder %s4110_s2, %s2834_s28  ;;  %p2841_p5 = scmp.lt.u32.totalorder %s2834_s28, %s4110_s2 }
  0xdb   : > { %p2837_p12 = pnand %p2835_p6, %p4179_p8 }
  0xdd   : > { %p2838_p13 = pneg %p2837_p12 }
  0xdf   : > { %p2843_p3 = pnand %p2841_p5, %p2838_p13 }
  0xe1   : > { %2846 = shalt.err (!%p2843_p3)
}
  0xe2   : > { %s2847_s3 = scalar_lea.vmem %s404_s26, 64  ;;  %p2855_p1 = scmp.lt.s32.totalorder %s404_s26, %s404_s26 }
  0xe3   : > { %p2848_p0 = scmp.ne.s32.totalorder %s404_s26, %s2847_s3  ;;  %p2856_p10 = scmp.lt.s32.totalorder %s2847_s3, %s2847_s3 }
  0xe5   : > { %p2850_p2 = pnand %p2848_p0, %p4179_p8  ;;  %p2857_p11 = por %p2856_p10, %p2855_p1 }
  0xe7   : > { %p2851_p7 = pneg %p2850_p2 }
  0xe9   : > { %p2858_p9 = pnand %p2857_p11, %p2851_p7 }
  0xeb   : > { %2861 = shalt.err (!%p2858_p9)
}
  0xec   : > { %p4180_p6 = scmp.ne.s32.totalorder %s4160_s23, 0  ;;  %s2862_s9 = scalar_lea.hbm %s4112_s4, 128 }
  0xed   : > { %p2863_p12 = scmp.ne.s32.totalorder %s4112_s4, %s2862_s9  ;;  %p2869_p9 = scmp.lt.u32.totalorder %s2862_s9, %s4112_s4 }
  0xee   : > { %2528 = dma.hbm_to_vmem [thread:$0]  (!%p4180_p6), %s4110_s2, 64, %s404_s26, [#allocation6]  }
  0xef   : > { %p2865_p13 = pnand %p2863_p12, %p4179_p8 }
  0xf1   : > { %p2866_p5 = pneg %p2865_p13 }
  0xf3   : > { %p2871_p3 = pnand %p2869_p9, %p2866_p5 }
  0xf5   : > { %2874 = shalt.err (!%p2871_p3)
}
  0xf6   : > { %s2875_s27 = scalar_lea.vmem %s428_s5, 128  ;;  %p2883_p1 = scmp.lt.s32.totalorder %s428_s5, %s428_s5 }
  0xf7   : > { %p2876_p0 = scmp.ne.s32.totalorder %s428_s5, %s2875_s27  ;;  %p2884_p10 = scmp.lt.s32.totalorder %s2875_s27, %s2875_s27 }
  0xf9   : > { %p2878_p2 = pnand %p2876_p0, %p4179_p8  ;;  %p2885_p11 = por %p2884_p10, %p2883_p1 }
  0xfb   : > { %p2879_p7 = pneg %p2878_p2 }
  0xfd   : > { %p2886_p4 = pnand %p2885_p11, %p2879_p7 }
  0xff   : > { %2889 = shalt.err (!%p2886_p4)
}
 0x100   : > { %2534 = dma.hbm_to_vmem [thread:$0]  (!%p4180_p6), %s4112_s4, 128, %s428_s5, [#allocation9]  }
 0x101   : > { %s3168_s16 = smov [#allocation16]   ;;  %s3169_s29 = smov [#allocation19]  }
 0x102   : > { %s449_s24 = sshll.u32 %s3168_s16, 4  ;;  %s473_s1 = sshll.u32 %s3169_s29, 4  ;;  %s450_s24 = int_to_ptr.vmem [resolvable:$true] %s449_s24  ;;  %s474_s1 = int_to_ptr.vmem [resolvable:$true] %s473_s1 }
 0x103   : > { %s2890_s14 = scalar_lea.hbm %s4116_s8, 128 }
 0x104   : > { %p2891_p4 = scmp.ne.s32.totalorder %s4116_s8, %s2890_s14  ;;  %p2897_p5 = scmp.lt.u32.totalorder %s2890_s14, %s4116_s8 }
 0x106   : > { %p2893_p12 = pnand %p2891_p4, %p4179_p8 }
 0x108   : > { %p2894_p13 = pneg %p2893_p12 }
 0x10a   : > { %p2899_p9 = pnand %p2897_p5, %p2894_p13 }
 0x10c   : > { %2902 = shalt.err (!%p2899_p9)
}
 0x10d   : > { %s2903_s5 = scalar_lea.vmem %s450_s24, 128  ;;  %p2911_p7 = scmp.lt.s32.totalorder %s450_s24, %s450_s24 }
 0x10e   : > { %p2904_p3 = scmp.ne.s32.totalorder %s450_s24, %s2903_s5  ;;  %p2912_p1 = scmp.lt.s32.totalorder %s2903_s5, %s2903_s5 }
 0x110   : > { %p2906_p0 = pnand %p2904_p3, %p4179_p8  ;;  %p2913_p10 = por %p2912_p1, %p2911_p7 }
 0x112   : > { %p2907_p2 = pneg %p2906_p0 }
 0x114   : > { %p2914_p11 = pnand %p2913_p10, %p2907_p2 }
 0x116   : > { %2917 = shalt.err (!%p2914_p11)
}
 0x117   : > { %2540 = dma.hbm_to_vmem [thread:$0]  (!%p4180_p6), %s4116_s8, 128, %s450_s24, [#allocation15]  }
 0x118   : > { %s2918_s22 = scalar_lea.hbm %s4118_s10, 128 }
 0x119   : > { %p2919_p4 = scmp.ne.s32.totalorder %s4118_s10, %s2918_s22  ;;  %p2925_p5 = scmp.lt.u32.totalorder %s2918_s22, %s4118_s10 }
 0x11b   : > { %p2921_p12 = pnand %p2919_p4, %p4179_p8 }
 0x11d   : > { %p2922_p13 = pneg %p2921_p12 }
 0x11f   : > { %p2927_p9 = pnand %p2925_p5, %p2922_p13 }
 0x121   : > { %2930 = shalt.err (!%p2927_p9)
}
 0x122   : > { %s2931_s26 = scalar_lea.vmem %s474_s1, 128  ;;  %p2939_p7 = scmp.lt.s32.totalorder %s474_s1, %s474_s1 }
 0x123   : > { %p2932_p3 = scmp.ne.s32.totalorder %s474_s1, %s2931_s26  ;;  %p2940_p1 = scmp.lt.s32.totalorder %s2931_s26, %s2931_s26 }
 0x125   : > { %p2934_p0 = pnand %p2932_p3, %p4179_p8  ;;  %p2941_p10 = por %p2940_p1, %p2939_p7 }
 0x127   : > { %p2935_p2 = pneg %p2934_p0 }
 0x129   : > { %p2942_p11 = pnand %p2941_p10, %p2935_p2 }
 0x12b   : > { %2945 = shalt.err (!%p2942_p11)
}
 0x12c   : > { %2546 = dma.hbm_to_vmem [thread:$0]  (!%p4180_p6), %s4118_s10, 128, %s474_s1, [#allocation18]  }
 0x12d   : > { %s3170_s3 = smov [#allocation22]   ;;  %s3171_s29 = smov [#allocation23]  }
 0x12e   : > { %s495_s16 = sshll.u32 %s3170_s3, 4  ;;  %s505_s9 = sshll.u32 %s3171_s29, 4  ;;  %s496_s16 = int_to_ptr.vmem [resolvable:$true] %s495_s16  ;;  %s506_s9 = int_to_ptr.vmem [resolvable:$true] %s505_s9 }
 0x12f   : > { %s2946_s28 = scalar_lea.hbm %s4120_s12, 128 }
 0x130   : > { %p2947_p4 = scmp.ne.s32.totalorder %s4120_s12, %s2946_s28  ;;  %p2953_p5 = scmp.lt.u32.totalorder %s2946_s28, %s4120_s12 }
 0x132   : > { %p2949_p12 = pnand %p2947_p4, %p4179_p8 }
 0x134   : > { %p2950_p13 = pneg %p2949_p12 }
 0x136   : > { %p2955_p9 = pnand %p2953_p5, %p2950_p13 }
 0x138   : > { %2958 = shalt.err (!%p2955_p9)
}
 0x139   : > { %s2959_s1 = scalar_lea.vmem %s496_s16, 128  ;;  %p2967_p7 = scmp.lt.s32.totalorder %s496_s16, %s496_s16 }
 0x13a   : > { %p2960_p3 = scmp.ne.s32.totalorder %s496_s16, %s2959_s1  ;;  %p2968_p1 = scmp.lt.s32.totalorder %s2959_s1, %s2959_s1 }
 0x13c   : > { %p2962_p0 = pnand %p2960_p3, %p4179_p8  ;;  %p2969_p10 = por %p2968_p1, %p2967_p7 }
 0x13e   : > { %p2963_p2 = pneg %p2962_p0 }
 0x140   : > { %p2970_p11 = pnand %p2969_p10, %p2963_p2 }
 0x142   : > { %2973 = shalt.err (!%p2970_p11)
}
 0x143   : > { %2552 = dma.hbm_to_vmem [thread:$0]  (!%p4180_p6), %s4120_s12, 128, %s496_s16, [#allocation21]  }
 0x144   : > { %s2974_s14 = scalar_lea.hbm %s4121_s13, 512 }
 0x145   : > { %p2975_p4 = scmp.ne.s32.totalorder %s4121_s13, %s2974_s14  ;;  %p2981_p5 = scmp.lt.u32.totalorder %s2974_s14, %s4121_s13 }
 0x147   : > { %p2977_p12 = pnand %p2975_p4, %p4179_p8 }
 0x149   : > { %p2978_p13 = pneg %p2977_p12 }
 0x14b   : > { %p2983_p9 = pnand %p2981_p5, %p2978_p13 }
 0x14d   : > { %2986 = shalt.err (!%p2983_p9)
}
 0x14e   : > { %s2987_s24 = scalar_lea.vmem %s506_s9, 512  ;;  %p2995_p7 = scmp.lt.s32.totalorder %s506_s9, %s506_s9 }
 0x14f   : > { %p2988_p3 = scmp.ne.s32.totalorder %s506_s9, %s2987_s24  ;;  %p2996_p1 = scmp.lt.s32.totalorder %s2987_s24, %s2987_s24 }
 0x151   : > { %p2990_p0 = pnand %p2988_p3, %p4179_p8  ;;  %p2997_p10 = por %p2996_p1, %p2995_p7 }
 0x153   : > { %p2991_p2 = pneg %p2990_p0 }
 0x155   : > { %p2998_p11 = pnand %p2997_p10, %p2991_p2 }
 0x157   : > { %3001 = shalt.err (!%p2998_p11)
}
 0x158   : > { %s3172_s16 = smov 256   ;;  %s3173_s1 = smov 16  }
 0x159   : > { %2555 = dma.hbm_to_vmem [thread:$0]  (!%p4180_p6), %s4121_s13, 512, %s506_s9, [#allocation24], %s3172_s16, %s3172_s16, %s3173_s1  }
 0x15a   : > { %s4181_s22 = sld [smem:[#allocation41_spill]]  ;;  %s523_s28 = scalar_lea.vmem [#allocation2], %s3451_s25 }
 0x15b   : > { %s531_s6 = sshll.u32 %s523_s28, 4  ;;  %s4182_s23 = sld [smem:[#allocation45_spill]]  ;;  %s3615_s6 = int_to_ptr.vmem [resolvable:$true] %s531_s6 }
 0x15c   : > { %s4183_s5 = sand.u32 1, %s3152_s15   ;;  %p4184_p6 = scmp.ne.s32.totalorder %s4178_s11, 0 }
 0x15d   : > { %s520_s9 = scalar_lea.sflag [#allocation3], %s4183_s5 }
 0x160   : > { %s3612_s14 = scalar_lea.hbm %s4181_s22, %s3454_s0  ;;  %s3007_s21 = scalar_lea.hbm %s4181_s22, 256 }
 0x161   : > { %s3621_s24 = scalar_lea.hbm %s4182_s23, %s3454_s0  ;;  %s3002_s16 = scalar_lea.hbm %s3612_s14, 128 }
 0x162   : > { %p3003_p8 = scmp.ne.s32.totalorder %s3612_s14, %s3002_s16  ;;  %p3008_p13 = scmp.lt.u32.totalorder %s3612_s14, %s4181_s22 }
 0x163   : > { %p3009_p5 = scmp.lt.u32.totalorder %s3007_s21, %s3002_s16  ;;  %p3011_p3 = scmp.lt.u32.totalorder %s3002_s16, %s3612_s14 }
 0x164   : > { %p3005_p4 = pnand %p3003_p8, %p4184_p6 }
 0x165   : > { %p3010_p9 = por %p3009_p5, %p3008_p13 }
 0x166   : > { %p3006_p12 = pneg %p3005_p4 }
 0x167   : > { %p3012_p0 = por %p3011_p3, %p3010_p9 }
 0x169   : > { %p3013_p2 = pnand %p3012_p0, %p3006_p12 }
 0x16b   : > { %3016 = shalt.err (!%p3013_p2)
}
 0x16c   : > { %s3017_s0 = scalar_lea.vmem %s3615_s6, 128  ;;  %s3174_s27 = smov [#allocation2]  }
 0x16d   : > { %p3018_p7 = scmp.ne.s32.totalorder %s3615_s6, %s3017_s0  ;;  %s3022_s26 = sshll.u32 %s3174_s27, 4  ;;  %s3023_s26 = int_to_ptr.vmem [resolvable:$false] %s3022_s26 }
 0x16e   : > { %s3024_s5 = scalar_lea.vmem %s3023_s26, 256  ;;  %p3025_p11 = scmp.lt.s32.totalorder %s3615_s6, %s3023_s26 }
 0x16f   : > { %p3020_p1 = pnand %p3018_p7, %p4184_p6  ;;  %p3026_p8 = scmp.lt.s32.totalorder %s3024_s5, %s3017_s0 }
 0x171   : > { %p3021_p10 = pneg %p3020_p1  ;;  %p3027_p4 = por %p3026_p8, %p3025_p11 }
 0x173   : > { %p3028_p13 = pnand %p3027_p4, %p3021_p10 }
 0x175   : > { %3031 = shalt.err (!%p3028_p13)
}
 0x176   : > { %p4185_p12 = scmp.ne.s32.totalorder %s4176_s20, 0  ;;  %s560_s16 = scalar_lea.vmem [#allocation13], %s3451_s25 }
 0x177   : > { %s567_s1 = sshll.u32 %s560_s16, 4  ;;  %s3032_s3 = scalar_lea.hbm %s3621_s24, 128  ;;  %s568_s1 = int_to_ptr.vmem [resolvable:$true] %s567_s1 }
 0x178   : > { %2559 = dma.hbm_to_vmem [thread:$0]  (!%p4185_p12), %s3612_s14, 128, %s3615_s6, %s520_s9  }
 0x179   : > { %p3033_p5 = scmp.ne.s32.totalorder %s3621_s24, %s3032_s3  ;;  %s3037_s28 = scalar_lea.hbm %s4182_s23, 256 }
 0x17a   : > { %p3038_p0 = scmp.lt.u32.totalorder %s3621_s24, %s4182_s23  ;;  %p3039_p2 = scmp.lt.u32.totalorder %s3037_s28, %s3032_s3 }
 0x17b   : > { %p3035_p9 = pnand %p3033_p5, %p4184_p6  ;;  %p3041_p1 = scmp.lt.u32.totalorder %s3032_s3, %s3621_s24 }
 0x17c   : > { %p3040_p7 = por %p3039_p2, %p3038_p0 }
 0x17d   : > { %p3036_p3 = pneg %p3035_p9 }
 0x17e   : > { %p3042_p10 = por %p3041_p1, %p3040_p7 }
 0x180   : > { %p3043_p11 = pnand %p3042_p10, %p3036_p3 }
 0x182   : > { %3046 = shalt.err (!%p3043_p11)
}
 0x183   : > { %s3047_s25 = scalar_lea.vmem %s568_s1, 128  ;;  %s3175_s14 = smov [#allocation13]  }
 0x184   : > { %p3048_p8 = scmp.ne.s32.totalorder %s568_s1, %s3047_s25  ;;  %s3052_s6 = sshll.u32 %s3175_s14, 4  ;;  %s3053_s6 = int_to_ptr.vmem [resolvable:$false] %s3052_s6 }
 0x185   : > { %s3054_s9 = scalar_lea.vmem %s3053_s6, 256  ;;  %p3055_p5 = scmp.lt.s32.totalorder %s568_s1, %s3053_s6 }
 0x186   : > { %p3050_p4 = pnand %p3048_p8, %p4184_p6  ;;  %p3056_p9 = scmp.lt.s32.totalorder %s3054_s9, %s3047_s25 }
 0x188   : > { %p3051_p13 = pneg %p3050_p4  ;;  %p3057_p12 = por %p3056_p9, %p3055_p5 }
 0x18a   : > { %p3058_p0 = pnand %p3057_p12, %p3051_p13 }
 0x18c   : > { %3061 = shalt.err (!%p3058_p0)
}
 0x18d   : > { %p4186_p2 = scmp.ne.s32.totalorder %s4176_s20, 0  ;;  %s4187_s26 = sld [smem:[#allocation37_spill]] }
 0x18f   : > { %2565 = dma.hbm_to_vmem [thread:$0]  (!%p4186_p2), %s3621_s24, 128, %s568_s1, %s3470_s7  }
 0x193   : > { %p4188_p3 = scmp.ne.s32.totalorder %s4187_s26, 0 }
 0x194   : > { %s3668_s11 = sand.u32 (!%p4188_p3), 1, %s3148_s30   ;;  %p4189_p6 = scmp.ne.s32.totalorder (!%p4188_p3), %s4172_s17, 0 }
 0x195   : > { %576 = sbr.rel (%p4188_p3) target bundleno = 1952 (0x7a0), region = 76  ;;  %s3671_s5 = sshll.u32 (!%p4188_p3), %s3668_s11, 3 }
 0x196   : > { %s579_s16 = scalar_lea.sflag (!%p4188_p3), [#allocation3], %s3668_s11  ;;  %s582_s3 = scalar_lea.vmem (!%p4188_p3), [#allocation2], %s3671_s5 }
 0x19c   : > { %3107 = dma.done.wait (%p4189_p6), %s579_s16, 128  }
 0x19d   : > { %3109 = vsyncadd (%p4189_p6), %s579_s16, 4294967168  ;;  %p4190_p12 = scmp.eq.s32.totalorder %s3283_s19, 0 }
 0x19f   : > { %3111 = dma.done.wait (%p4190_p12), [#allocation6], 128   ;;  %p4191_p7 = pmov %p4190_p12 }
 0x1a1   : > { %3113 = vsyncadd (%p4191_p7), [#allocation6], 4294967168  ;;  %p4192_p1 = pmov %p4191_p7 }
 0x1a3   : > { %3115 = dma.done.wait (%p4192_p1), [#allocation9], 704   ;;  %p4193_p10 = pmov %p4192_p1 }
 0x1a4   : > { %s603_s7 = sand.u32 1, %s3283_s19   ;;  %s607_s24 = scalar_lea.vmem [#allocation11], %s3671_s5 }
 0x1a5   : > { %3117 = vsyncadd (%p4193_p10), [#allocation9], 4294966592  ;;  %s604_s20 = scalar_lea.sflag [#allocation12], %s603_s7 }
 0x1a6   : > { %3119 = dma.done.wait (%p4189_p6), %s604_s20, 256  }
 0x1a7   : > { %3121 = vsyncadd (%p4189_p6), %s604_s20, 4294967040  ;;  %s616_s1 = scalar_lea.vmem [#allocation13], %s3671_s5  ;;  %p4194_p11 = pmov %p4192_p1 }
 0x1a8   : > { %p4195_p8 = pmov %p4192_p1 }
 0x1a9   : > { %3123 = dma.done.wait (%p4194_p11), [#allocation15], 256  }
 0x1aa   : > { %3125 = vsyncadd (%p4195_p8), [#allocation15], 4294967040  ;;  %p4196_p4 = pmov %p4192_p1 }
 0x1ab   : > { %p4197_p13 = pmov %p4192_p1 }
 0x1ac   : > { %3127 = dma.done.wait (%p4196_p4), [#allocation18], 704  }
 0x1ad   : > { %3129 = vsyncadd (%p4197_p13), [#allocation18], 4294966592  ;;  %p4198_p5 = pmov %p4192_p1 }
 0x1ae   : > { %p4199_p9 = pmov %p4192_p1 }
 0x1af   : > { %3131 = dma.done.wait (%p4198_p5), [#allocation21], 192  }
 0x1b0   : > { %3133 = vsyncadd (%p4199_p9), [#allocation21], 4294967104  ;;  %p4200_p0 = pmov %p4192_p1 }
 0x1b2   : > { %3135 = dma.done.wait (%p4200_p0), [#allocation24], 512   ;;  %p4201_p2 = pmov %p4200_p0 }
 0x1b3   : > { %vm710_vm0 = vcmask 1043456   ;;  %v3710_v0 = vld [vmem:[%s582_s3] sm:$0xff]  ;;  %v3176_v10 = vmov 0   ;;  %v705_v19 = vld [vmem:[#allocation5] sm:$0xf]  ;;  %v745_v27 = vlaneseq  ;;  %s3178_s17 = smov 16  }
 0x1b4   : > { %3137 = vsyncadd (%p4201_p2), [#allocation24], 4294966784  ;;  %v3714_v1 = vcombine.high %v3710_v0, %v3710_v0  ;;  %v711_v2 = vsel %vm710_vm0, %v3710_v0, 0.0  ;;  %v716_v3 = vmul.f32 %v3710_v0, %v3710_v0  ;;  %2651 = vset.pattern.permute.xlu1 %v3176_v10  ;;  %858 = vmatprep.mubr.bf16.mxu0 %v3176_v10  ;;  %v706_v22 = vld [vmem:[#allocation7] sm:$0xf]  ;;  %s3179_s21 = smov 1  }
 0x1b5   : > { %2652 = vset.pattern.permute.xlu0 %v3176_v10  ;;  %1544 = vmatprep.mubr.bf16.mxu1 %v3176_v10  ;;  %v3177_v25 = vmov 839922192   ;;  %v3728_v29 = vshrl.u32 %v745_v27, 7  ;;  %s3180_s29 = smov 17   ;;  %s3181_s28 = smov 127   ;;  %v768_v42 = vld [vmem:[#allocation10] sm:$0xff] }
 0x1b6   : > { %v712_v4 = vsel %vm710_vm0, %v3714_v1, 0.0  ;;  %v718_v5 = vcombine.high %v716_v3, %v716_v3  ;;  %v720_v6 = vsel %vm710_vm0, %v716_v3, 0.0  ;;  %v743_v26 = vunpack.c.l.s4 %v3177_v25  ;;  %s3182_s0 = smov 113   ;;  %s3183_s27 = smov 15   ;;  %v1426_v43 = vld [vmem:[%s616_s1] sm:$0xff]  ;;  %v1418_v44 = vld [vmem:[%s607_s24] sm:$0xff] }
 0x1b7   : > { %v713_v7 = vadd.f32 %v712_v4, %v711_v2  ;;  %s3184_s25 = smov 112   ;;  %s3185_s14 = smov 111   ;;  %v3774_v45 = vand.u32 127, %v745_v27  ;;  %v803_v46 = vsub.s32 1, %v3728_v29  ;;  %v3777_v47 = vld [vmem:[#allocation23] sm:$0xff]  ;;  %v3779_v48 = vld [vmem:[#allocation23 + $0x8] sm:$0xff] }
 0x1b8   : > { %v721_v8 = vsel %vm710_vm0, %v718_v5, 0.0  ;;  %v744_v28 = vunpack.c.0.s8 %v743_v26  ;;  %v783_v57 = vsub.s32 0, %v3728_v29  ;;  %vm819_vm2 = vcmask 1041408   ;;  %v812_v2 = vld [vmem:[#allocation8 + $0x4] sm:$0xf]  ;;  %s2382_s6 = sshll.u32 %s3668_s11, 4 }
 0x1b9   : > { %714 = vadd.xlane.f32.xlu0 %v713_v7  ;;  %v722_v9 = vadd.f32 %v721_v8, %v720_v6  ;;  %vm798_vm1 = vcmp.lt.s32.totalorder %v3774_v45, 16  ;;  %v3783_v49 = vrot.slane %v3777_v47, %v803_v46  ;;  %v3786_v50 = vrot.slane %v3779_v48, %v803_v46  ;;  %s2429_s9 = sshll.u32 %s3283_s19, 8  ;;  %s698_s26 = scalar_lea.vmem [#allocation25], %s2382_s6 }
 0x1ba   : > { %v747_v30 = vsub.s32 %v744_v28, %v3728_v29  ;;  %vm778_vm3 = vcmp.lt.s32.totalorder %v3774_v45, 17  ;;  %v3799_v62 = vrot.slane %v3777_v47, %v783_v57  ;;  %v3802_v63 = vrot.slane %v3779_v48, %v783_v57  ;;  %s2128_s5 = sshll.u32 %s698_s26, 4  ;;  %s4202_s7 = sld [smem:[#allocation49_spill]]  ;;  %s4066_s5 = int_to_ptr.vmem [resolvable:$true] %s2128_s5 }
 0x1bb   : > { %vm815_vm4 = vcmask 31744   ;;  %v926_v8 = vsub.s32 2, %v3728_v29  ;;  %vm921_vm5 = vcmp.lt.s32.totalorder %v3774_v45, 15  ;;  %vm994_vm6 = vcmp.lt.s32.totalorder %v3774_v45, 1  ;;  %s2114_s19 = scalar_lea.sflag [#allocation4], %s3668_s11  ;;  %s3062_s24 = scalar_lea.vmem %s4066_s5, 256 }
 0x1bc   : > { %vm1123_vm7 = vcmp.lt.s32.totalorder %v3774_v45, 127  ;;  %vm1196_vm8 = vcmp.lt.s32.totalorder %v3774_v45, 113  ;;  %vm1269_vm9 = vcmp.lt.s32.totalorder %v3774_v45, 112  ;;  %vm1342_vm10 = vcmp.lt.s32.totalorder %v3774_v45, 111  ;;  %p3063_p3 = scmp.ne.s32.totalorder %s4066_s5, %s3062_s24  ;;  %p4203_p6 = scmp.ne.s32.totalorder %s4173_s18, 0 }
 0x1bd   : > { %723 = vadd.xlane.f32.xlu0 %v722_v9  ;;  %vm1502_vm11 = vcmask 64512   ;;  %v2051_v45 = vpack.c.bf16 %v3710_v0, %v3710_v0  ;;  %s3186_s1 = smov [#allocation25]  }
 0x1be   : > { %p3064_p12 = pnand %p3063_p3, %p4203_p6 }
 0x1c0   : > { %s4064_s20 = scalar_lea.hbm %s4202_s7, %s2429_s9  ;;  %p3065_p7 = pneg %p3064_p12 }
 0x246   : > { %v715_v11 = vpop.xlane.xlu0 %714 }
 0x247   : > { %v728_v12 = vmul.f32 0.00390625, %v715_v11 }
 0x249   : > { %v730_v14 = vmul.f32 %v728_v12, %v728_v12 }
 0x24a   : > { %v724_v13 = vpop.xlane.xlu0 %723 }
 0x24b   : > { %v729_v15 = vmul.f32 0.00390625, %v724_v13 }
 0x24d   : > { %v731_v16 = vsub.f32 %v729_v15, %v730_v14  ;;  %v3817_v14 = vrot.slane %v3777_v47, %v926_v8  ;;  %v3820_v15 = vrot.slane %v3779_v48, %v926_v8  ;;  %v1064_v8 = vld [vmem:[#allocation8 + $0x10] sm:$0xf] }
 0x24f   : > { %v732_v17 = vmax.f32 %v731_v16, 0.0  ;;  %v999_v16 = vsub.s32 3, %v3728_v29 }
 0x251   : > { %v733_v18 = vadd.f32 1e-05, %v732_v17  ;;  %v791_v17 = vld [vmem:[#allocation8] sm:$0xf] }
 0x253   : > { %2654 = vrsqrt.f32 %v733_v18 }
 0x25d   : > { %v2655_v20 = vpop.eup %2654 }
 0x25e   : > { %v735_v21 = vmul.f32 %v2655_v20, %v705_v19 }
 0x260   : > { %740 = vperm.xlu1 %2651, %v735_v21   ;;  %v736_v23 = vmul.f32 %v735_v21, %v728_v12 }
 0x262   : > { %v737_v24 = vsub.f32 %v706_v22, %v736_v23  ;;  %v3832_v23 = vrot.slane %v3777_v47, %v999_v16 }
 0x264   : > { %753 = vperm.xlu1 %2651, %v737_v24   ;;  %v3835_v24 = vrot.slane %v3779_v48, %v999_v16 }
 0x2df   : > { %v741_v31 = vpop.permute.xlu1 %740 }
 0x2e0   : > { %v748_v32 = vrot.slane %v741_v31, %v747_v30 }
 0x2e2   : > { %v750_v34 = vmul.f32 %v748_v32, %v3710_v0 }
 0x2e3   : > { %v754_v33 = vpop.permute.xlu1 %753 }
 0x2e4   : > { %v761_v35 = vrot.slane %v754_v33, %v747_v30 }
 0x2e6   : > { %v763_v36 = vadd.f32 %v761_v35, %v750_v34  ;;  %v1128_v35 = vsub.s32 5, %v3728_v29 }
 0x2e8   : > { %v764_v37 = vmul.f32 0.5, %v763_v36  ;;  %v935_v36 = vld [vmem:[#allocation8 + $0x8] sm:$0xf] }
 0x2ea   : > { %2656 = vtanh.f32 %v764_v37 }
 0x2f4   : > { %v2657_v38 = vpop.eup %2656 }
 0x2f5   : > { %v766_v39 = vadd.f32 1.0, %v2657_v38 }
 0x2f7   : > { %v3732_v40 = vmul.f32 %v766_v39, %v764_v37 }
 0x2f9   : > { %794 = vrot.lane.b32.xlu0 %v3732_v40, %s3178_s17  ;;  %v3738_v41 = vcombine.high %v3732_v40, %v3732_v40 }
 0x2fb   : > { %796 = vrot.lane.b32.xlu1 %v3738_v41, %s3178_s17  ;;  %v1066_v46 = vpack.c.bf16 %v3738_v41, %v3738_v41 }
 0x2fd   : > { %992 = vrot.lane.b32.xlu0 %v3738_v41, %s3179_s21 }
 0x2ff   : > { %772 = vrot.lane.b32.xlu1 %v3732_v40, %s3180_s29 }
 0x301   : > { %1121 = vrot.lane.b32.xlu0 %v3738_v41, %s3181_s28 }
 0x303   : > { %774 = vrot.lane.b32.xlu1 %v3738_v41, %s3180_s29 }
 0x305   : > { %1194 = vrot.lane.b32.xlu0 %v3738_v41, %s3182_s0 }
 0x307   : > { %917 = vrot.lane.b32.xlu1 %v3732_v40, %s3183_s27 }
 0x309   : > { %1267 = vrot.lane.b32.xlu0 %v3738_v41, %s3184_s25 }
 0x30b   : > { %919 = vrot.lane.b32.xlu1 %v3738_v41, %s3183_s27 }
 0x30d   : > { %1340 = vrot.lane.b32.xlu0 %v3738_v41, %s3185_s14 }
 0x30f   : > { %990 = vrot.lane.b32.xlu1 %v3732_v40, %s3179_s21 }
 0x311   : > { %1421 = vperm.xlu0 %2652, %v1418_v44  }
 0x313   : > { %1119 = vrot.lane.b32.xlu1 %v3732_v40, %s3181_s28 }
 0x317   : > { %1192 = vrot.lane.b32.xlu1 %v3732_v40, %s3182_s0 }
 0x31b   : > { %1265 = vrot.lane.b32.xlu1 %v3732_v40, %s3184_s25 }
 0x31f   : > { %1338 = vrot.lane.b32.xlu1 %v3732_v40, %s3185_s14 }
 0x323   : > { %1413 = vperm.xlu1 %2651, %v768_v42  }
 0x327   : > { %1429 = vperm.xlu1 %2651, %v1426_v43   ;;  %v3849_v43 = vrot.slane %v3779_v48, %v1128_v35 }
 0x36b   : > { %v795_v51 = vpop.permute.xlu0 %794 }
 0x36d   : > { %v797_v52 = vpop.permute.xlu1 %796 }
 0x36e   : > { %v799_v53 = vsel %vm798_vm1, %v795_v51, %v797_v52  ;;  %v800_v54 = vsel %vm798_vm1, %v797_v52, %v795_v51  ;;  %v3861_v52 = vrot.slane %v3777_v47, %v1128_v35  ;;  %v1210_v35 = vld [vmem:[#allocation8 + $0x18] sm:$0xf] }
 0x36f   : > { %v809_v55 = vmul.f32 %v3783_v49, %v800_v54  ;;  %v810_v56 = vmul.f32 %v3786_v50, %v799_v53  ;;  %v993_v25 = vpop.permute.xlu0 %992  ;;  %v1201_v54 = vsub.s32 6, %v3728_v29 }
 0x371   : > { %v773_v58 = vpop.permute.xlu1 %772  ;;  %v814_v59 = vpack.c.bf16 %v810_v56, %v810_v56  ;;  %v813_v60 = vpack.c.bf16 %v809_v55, %v809_v55  ;;  %v1065_v55 = vpack.c.bf16 %v3732_v40, %v3732_v40  ;;  %v1008_v56 = vld [vmem:[#allocation8 + $0xc] sm:$0xf] }
 0x373   : > { %2383 = vmatprep.subr.msk.bf16.mxu0 %vm819_vm2, %v814_v59  ;;  %v821_v61 = vsel %vm819_vm2, %v813_v60, 0  ;;  %v1122_v42 = vpop.permute.xlu0 %1121 }
 0x374   : > { %827 = vmatpush1.bf16.msra.mxu0 %v821_v61  ;;  %v3872_v61 = vrot.slane %v3779_v48, %v1201_v54 }
 0x375   : > { %v775_v3 = vpop.permute.xlu1 %774 }
 0x376   : > { %v779_v4 = vsel %vm778_vm3, %v773_v58, %v775_v3  ;;  %v780_v5 = vsel %vm778_vm3, %v775_v3, %v773_v58 }
 0x377   : > { %v789_v6 = vmul.f32 %v3799_v62, %v780_v5  ;;  %v790_v7 = vmul.f32 %v3802_v63, %v779_v4  ;;  %2384 = vmatmul.mubr.msk.bf16.vlgmr.msra.gmra.mrb[0].mxu0 %vm815_vm4, %v812_v2  ;;  %v1195_v58 = vpop.permute.xlu0 %1194  ;;  %v1071_v2 = vsel %vm819_vm2, %v1065_v55, 0  ;;  %v3881_v4 = vrot.slane %v3777_v47, %v1201_v54 }
 0x378   : > { %908 = vmatprep.mubr.bf16.mxu0 %v3176_v10 }
 0x379   : > { %v792_v9 = vpack.c.bf16 %v789_v6, %v789_v6  ;;  %v793_v11 = vpack.c.bf16 %v790_v7, %v790_v7  ;;  %v918_v12 = vpop.permute.xlu1 %917  ;;  %v1274_v6 = vsub.s32 7, %v3728_v29 }
 0x37b   : > { %2385 = vmatprep.subr.msk.bf16.mxu0 %vm819_vm2, %v793_v11  ;;  %v871_v13 = vsel %vm819_vm2, %v792_v9, 0  ;;  %v1268_v11 = vpop.permute.xlu0 %1267  ;;  %v3890_v16 = vrot.slane %v3779_v48, %v1274_v6 }
 0x37c   : > { %877 = vmatpush1.bf16.msra.mxu0 %v871_v13 }
 0x37d   : > { %v920_v18 = vpop.permute.xlu1 %919 }
 0x37e   : > { %v922_v19 = vsel %vm921_vm5, %v918_v12, %v920_v18  ;;  %v923_v20 = vsel %vm921_vm5, %v920_v18, %v918_v12 }
 0x37f   : > { %v932_v21 = vmul.f32 %v3817_v14, %v923_v20  ;;  %v933_v22 = vmul.f32 %v3820_v15, %v922_v19  ;;  %2386 = vmatmul.mubr.msk.bf16.vlgmr.msra.gmra.mrb[4].mxu0 %vm815_vm4, %v791_v17  ;;  %v3899_v19 = vrot.slane %v3777_v47, %v1274_v6 }
 0x380   : > { %979 = vmatprep.mubr.bf16.mxu0 %v3176_v10 }
 0x381   : > { %v936_v26 = vpack.c.bf16 %v932_v21, %v932_v21  ;;  %v937_v27 = vpack.c.bf16 %v933_v22, %v933_v22  ;;  %v991_v28 = vpop.permute.xlu1 %990  ;;  %v1137_v21 = vld [vmem:[#allocation8 + $0x14] sm:$0xf] }
 0x382   : > { %v995_v30 = vsel %vm994_vm6, %v991_v28, %v993_v25  ;;  %v996_v31 = vsel %vm994_vm6, %v993_v25, %v991_v28  ;;  %v1341_v25 = vpop.permute.xlu0 %1340 }
 0x383   : > { %v1005_v32 = vmul.f32 %v3832_v23, %v996_v31  ;;  %v1006_v33 = vmul.f32 %v3835_v24, %v995_v30  ;;  %2387 = vmatprep.subr.msk.bf16.mxu0 %vm819_vm2, %v937_v27  ;;  %v942_v34 = vsel %vm819_vm2, %v936_v26, 0  ;;  %v3908_v30 = vld [vmem:[#allocation23 + $0x18] ss:$0 sm:$0xff] }
 0x384   : > { %948 = vmatpush1.bf16.msra.mxu0 %v942_v34 }
 0x385   : > { %v1009_v37 = vpack.c.bf16 %v1005_v32, %v1005_v32  ;;  %v1010_v38 = vpack.c.bf16 %v1006_v33, %v1006_v33  ;;  %v1120_v39 = vpop.permute.xlu1 %1119  ;;  %v3915_v33 = vld [vmem:[#allocation23 + $0x10] ss:$0 sm:$0xff] }
 0x386   : > { %v1125_v51 = vsel %vm1123_vm7, %v1122_v42, %v1120_v39  ;;  %v1124_v41 = vsel %vm1123_vm7, %v1120_v39, %v1122_v42  ;;  %v1283_v42 = vld [vmem:[#allocation8 + $0x1c] sm:$0xf] }
 0x387   : > { %2388 = vmatmul.mubr.msk.bf16.vlgmr.msra.gmra.mrb[8].mxu0 %vm815_vm4, %v935_v36  ;;  %2389 = vmatprep.subr.msk.bf16.mxu0 %vm819_vm2, %v1010_v38  ;;  %v1015_v44 = vsel %vm819_vm2, %v1009_v37, 0  ;;  %v1135_v53 = vmul.f32 %v3849_v43, %v1125_v51  ;;  %v1134_v59 = vmul.f32 %v3861_v52, %v1124_v41 }
 0x388   : > { %1021 = vmatpush1.bf16.msra.mxu0 %v1015_v44  ;;  %1052 = vmatprep.mubr.bf16.mxu0 %v3176_v10 }
 0x389   : > { %2391 = vmatprep.subr.msk.bf16.mxu0 %vm819_vm2, %v1066_v46  ;;  %v1193_v57 = vpop.permute.xlu1 %1192  ;;  %v1139_v60 = vpack.c.bf16 %v1135_v53, %v1135_v53  ;;  %v1138_v3 = vpack.c.bf16 %v1134_v59, %v1134_v59  ;;  %v1356_v46 = vld [vmem:[#allocation8 + $0x20] sm:$0xf] }
 0x38a   : > { %v1198_v40 = vsel %vm1196_vm8, %v1195_v58, %v1193_v57  ;;  %v1197_v7 = vsel %vm1196_vm8, %v1193_v57, %v1195_v58 }
 0x38b   : > { %v1208_v5 = vmul.f32 %v3872_v61, %v1198_v40  ;;  %v1207_v12 = vmul.f32 %v3881_v4, %v1197_v7  ;;  %v1144_v17 = vsel %vm819_vm2, %v1138_v3, 0 }
 0x38d   : > { %v1266_v9 = vpop.permute.xlu1 %1265  ;;  %v1212_v13 = vpack.c.bf16 %v1208_v5, %v1208_v5  ;;  %v1211_v18 = vpack.c.bf16 %v1207_v12, %v1207_v12 }
 0x38e   : > { %v1271_v29 = vsel %vm1269_vm9, %v1268_v11, %v1266_v9  ;;  %v1270_v48 = vsel %vm1269_vm9, %v1266_v9, %v1268_v11 }
 0x38f   : > { %2390 = vmatmul.mubr.msk.bf16.vlgmr.msra.gmra.mrb[12].mxu0 %vm815_vm4, %v1008_v56  ;;  %v1281_v20 = vmul.f32 %v3890_v16, %v1271_v29  ;;  %v1280_v26 = vmul.f32 %v3899_v19, %v1270_v48  ;;  %v1217_v28 = vsel %vm819_vm2, %v1211_v18, 0 }
 0x390   : > { %1077 = vmatpush1.bf16.msra.mxu0 %v1071_v2  ;;  %1108 = vmatprep.mubr.bf16.mxu0 %v3176_v10 }
 0x391   : > { %2393 = vmatprep.subr.msk.bf16.mxu0 %vm819_vm2, %v1139_v60  ;;  %v1339_v22 = vpop.permute.xlu1 %1338  ;;  %v1285_v27 = vpack.c.bf16 %v1281_v20, %v1281_v20  ;;  %v1284_v31 = vpack.c.bf16 %v1280_v26, %v1280_v26 }
 0x392   : > { %v1344_v47 = vsel %vm1342_vm10, %v1341_v25, %v1339_v22  ;;  %v1343_v34 = vsel %vm1342_vm10, %v1339_v22, %v1341_v25 }
 0x393   : > { %v1354_v32 = vmul.f32 %v3908_v30, %v1344_v47  ;;  %v1353_v36 = vmul.f32 %v3915_v33, %v1343_v34  ;;  %v1290_v38 = vsel %vm819_vm2, %v1284_v31, 0 }
 0x395   : > { %v1358_v37 = vpack.c.bf16 %v1354_v32, %v1354_v32  ;;  %v1357_v39 = vpack.c.bf16 %v1353_v36, %v1353_v36 }
 0x397   : > { %2392 = vmatmul.mubr.msk.bf16.vlgmr.msra.gmra.mrb[16].mxu0 %vm815_vm4, %v1064_v8  ;;  %v1363_v44 = vsel %vm819_vm2, %v1357_v39, 0 }
 0x398   : > { %1150 = vmatpush1.bf16.msra.mxu0 %v1144_v17  ;;  %1181 = vmatprep.mubr.bf16.mxu0 %v3176_v10 }
 0x399   : > { %2395 = vmatprep.subr.msk.bf16.mxu0 %vm819_vm2, %v1212_v13 }
 0x39f   : > { %2394 = vmatmul.mubr.msk.bf16.vlgmr.msra.gmra.mrb[20].mxu0 %vm815_vm4, %v1137_v21 }
 0x3a0   : > { %1223 = vmatpush1.bf16.msra.mxu0 %v1217_v28  ;;  %1254 = vmatprep.mubr.bf16.mxu0 %v3176_v10 }
 0x3a1   : > { %2397 = vmatprep.subr.msk.bf16.mxu0 %vm819_vm2, %v1285_v27 }
 0x3a7   : > { %2396 = vmatmul.mubr.msk.bf16.vlgmr.msra.gmra.mrb[24].mxu0 %vm815_vm4, %v1210_v35 }
 0x3a8   : > { %1296 = vmatpush1.bf16.msra.mxu0 %v1290_v38  ;;  %1327 = vmatprep.mubr.bf16.mxu0 %v3176_v10 }
 0x3a9   : > { %2401 = vmatprep.subr.msk.bf16.mxu0 %vm819_vm2, %v1358_v37 }
 0x3af   : > { %2398 = vmatmul.mubr.msk.bf16.vlgmr.msra.gmra.mrb[28].mxu0 %vm815_vm4, %v1283_v42 }
 0x3b0   : > { %1369 = vmatpush1.bf16.msra.mxu0 %v1363_v44  ;;  %1400 = vmatprep.mubr.bf16.mxu0 %v3176_v10 }
 0x3b7   : > { %2402 = vmatmul.mubr.msk.bf16.vlgmr.msra.gmra.mrb[32].mxu0 %vm815_vm4, %v1356_v46 }
 0x44a   : > { %v860_v51 = vpop.f32.mrb[0].mxu0 }
 0x44b   : > { %v862_v53 = vpop.f32.mrb[1].mxu0 }
 0x44c   : > { %v864_v54 = vpop.f32.mrb[2].mxu0 }
 0x44d   : > { %v865_v55 = vpop.f32.mrb[3].mxu0  ;;  %v1414_v54 = vpop.permute.xlu1 %1413 }
 0x452   : > { %v910_v41 = vpop.f32.mrb[4].mxu0 }
 0x453   : > { %v911_v56 = vadd.f32 %v910_v41, %v860_v51  ;;  %v912_v57 = vpop.f32.mrb[5].mxu0 }
 0x454   : > { %v913_v58 = vadd.f32 %v912_v57, %v862_v53  ;;  %v914_v59 = vpop.f32.mrb[6].mxu0 }
 0x455   : > { %v915_v60 = vpop.f32.mrb[7].mxu0  ;;  %v1422_v59 = vpop.permute.xlu0 %1421 }
 0x45a   : > { %v981_v2 = vpop.f32.mrb[8].mxu0 }
 0x45b   : > { %v988_v40 = vadd.f32 %v981_v2, %v911_v56  ;;  %v983_v3 = vpop.f32.mrb[9].mxu0 }
 0x45c   : > { %v989_v5 = vadd.f32 %v983_v3, %v913_v58  ;;  %v985_v6 = vpop.f32.mrb[10].mxu0 }
 0x45d   : > { %v986_v7 = vpop.f32.mrb[11].mxu0 }
 0x462   : > { %v1054_v8 = vpop.f32.mrb[12].mxu0 }
 0x463   : > { %v1061_v9 = vadd.f32 %v1054_v8, %v988_v40  ;;  %v1056_v11 = vpop.f32.mrb[13].mxu0 }
 0x464   : > { %v1062_v12 = vadd.f32 %v1056_v11, %v989_v5  ;;  %v1058_v13 = vpop.f32.mrb[14].mxu0  ;;  %v1430_v5 = vpop.permute.xlu1 %1429 }
 0x465   : > { %v1059_v17 = vpop.f32.mrb[15].mxu0 }
 0x46a   : > { %v1110_v29 = vpop.f32.mrb[16].mxu0 }
 0x46b   : > { %v1117_v18 = vadd.f32 %v1110_v29, %v1061_v9  ;;  %v1112_v20 = vpop.f32.mrb[17].mxu0 }
 0x46c   : > { %v1118_v48 = vadd.f32 %v1112_v20, %v1062_v12  ;;  %v1114_v21 = vpop.f32.mrb[18].mxu0 }
 0x46d   : > { %v1115_v22 = vpop.f32.mrb[19].mxu0 }
 0x472   : > { %v1183_v25 = vpop.f32.mrb[20].mxu0 }
 0x473   : > { %v1190_v26 = vadd.f32 %v1183_v25, %v1117_v18  ;;  %v1185_v27 = vpop.f32.mrb[21].mxu0 }
 0x474   : > { %v1191_v28 = vadd.f32 %v1185_v27, %v1118_v48  ;;  %v1187_v47 = vpop.f32.mrb[22].mxu0 }
 0x475   : > { %v1188_v31 = vpop.f32.mrb[23].mxu0  ;;  %v1435_v47 = vld [vmem:[#allocation16] sm:$0xff] }
 0x47a   : > { %v1256_v32 = vpop.f32.mrb[24].mxu0 }
 0x47b   : > { %v1263_v34 = vadd.f32 %v1256_v32, %v1190_v26  ;;  %v1258_v35 = vpop.f32.mrb[25].mxu0  ;;  %v1434_v26 = vld [vmem:[#allocation14] sm:$0xff] }
 0x47c   : > { %v1264_v36 = vadd.f32 %v1258_v35, %v1191_v28  ;;  %v1260_v37 = vpop.f32.mrb[26].mxu0 }
 0x47d   : > { %v1261_v38 = vpop.f32.mrb[27].mxu0 }
 0x482   : > { %v1329_v39 = vpop.f32.mrb[28].mxu0 }
 0x483   : > { %v1336_v42 = vadd.f32 %v1329_v39, %v1263_v34  ;;  %v1331_v44 = vpop.f32.mrb[29].mxu0 }
 0x484   : > { %v1337_v46 = vadd.f32 %v1331_v44, %v1264_v36  ;;  %v1333_v51 = vpop.f32.mrb[30].mxu0 }
 0x485   : > { %v1334_v53 = vpop.f32.mrb[31].mxu0 }
 0x48a   : > { %v1402_v55 = vpop.f32.mrb[32].mxu0 }
 0x48b   : > { %v1409_v41 = vadd.f32 %v1402_v55, %v1336_v42  ;;  %v1404_v56 = vpop.f32.mrb[33].mxu0 }
 0x48c   : > { %v1410_v57 = vadd.f32 %v1404_v56, %v1337_v46  ;;  %v1406_v58 = vpop.f32.mrb[34].mxu0  ;;  %v1478_v56 = vld [vmem:[#allocation19] sm:$0xff] }
 0x48d   : > { %v1416_v60 = vadd.f32 %v1414_v54, %v1409_v41  ;;  %v1407_v2 = vpop.f32.mrb[35].mxu0 }
 0x48e   : > { %v1417_v40 = vadd.f32 %v1414_v54, %v1410_v57  ;;  %v2053_v57 = vld [vmem:[#allocation22] sm:$0xff] }
 0x48f   : > { %v1424_v3 = vmul.f32 %v1422_v59, %v1416_v60 }
 0x490   : > { %v1425_v6 = vmul.f32 %v1422_v59, %v1417_v40 }
 0x491   : > { %v1432_v7 = vadd.f32 %v1430_v5, %v1424_v3 }
 0x492   : > { %v1433_v8 = vadd.f32 %v1430_v5, %v1425_v6 }
 0x493   : > { %v1439_v9 = vmul.f32 %v1432_v7, %v1432_v7 }
 0x494   : > { %v1436_v11 = vadd.f32 %v1433_v8, %v1432_v7  ;;  %v1440_v12 = vmul.f32 %v1433_v8, %v1433_v8 }
 0x496   : > { %1437 = vadd.xlane.f32.xlu1 %v1436_v11  ;;  %v1441_v13 = vadd.f32 %v1440_v12, %v1439_v9 }
 0x498   : > { %1442 = vadd.xlane.f32.xlu0 %v1441_v13 }
 0x523   : > { %v1438_v17 = vpop.xlane.xlu1 %1437 }
 0x524   : > { %v1446_v29 = vmul.f32 0.00390625, %v1438_v17  ;;  %v1499_v17 = vld [vmem:[#allocation17 + $0x4] sm:$0xf] }
 0x525   : > { %v1443_v18 = vpop.xlane.xlu0 %1442 }
 0x526   : > { %v1448_v20 = vmul.f32 %v1446_v29, %v1446_v29  ;;  %v1447_v48 = vmul.f32 0.00390625, %v1443_v18 }
 0x528   : > { %v1449_v21 = vsub.f32 %v1447_v48, %v1448_v20 }
 0x52a   : > { %v1450_v22 = vmax.f32 %v1449_v21, 0.0 }
 0x52c   : > { %v1451_v25 = vadd.f32 1e-05, %v1450_v22 }
 0x52e   : > { %2658 = vrsqrt.f32 %v1451_v25 }
 0x538   : > { %v2659_v27 = vpop.eup %2658 }
 0x539   : > { %v1453_v28 = vmul.f32 %v2659_v27, %v1434_v26 }
 0x53b   : > { %1458 = vperm.xlu0 %2652, %v1453_v28   ;;  %v1454_v31 = vmul.f32 %v1453_v28, %v1446_v29 }
 0x53d   : > { %v1455_v32 = vsub.f32 %v1435_v47, %v1454_v31  ;;  %v1487_v31 = vld [vmem:[#allocation17] sm:$0xf] }
 0x53f   : > { %1465 = vperm.xlu1 %2651, %v1455_v32  }
 0x5ba   : > { %v1459_v34 = vpop.permute.xlu0 %1458 }
 0x5bb   : > { %v1461_v35 = vmul.f32 %v1459_v34, %v1432_v7  ;;  %v1462_v36 = vmul.f32 %v1459_v34, %v1433_v8 }
 0x5be   : > { %v1466_v37 = vpop.permute.xlu1 %1465 }
 0x5bf   : > { %v1468_v38 = vadd.f32 %v1466_v37, %v1461_v35  ;;  %v1469_v39 = vadd.f32 %v1466_v37, %v1462_v36  ;;  %v1612_v37 = vld [vmem:[#allocation17 + $0x8] sm:$0xf] }
 0x5c1   : > { %v1470_v42 = vmul.f32 0.5, %v1468_v38  ;;  %v1471_v44 = vmul.f32 0.5, %v1469_v39 }
 0x5c3   : > { %2660 = vtanh.f32 %v1470_v42 }
 0x5c4   : > { %2662 = vtanh.f32 %v1471_v44 }
 0x5cd   : > { %v2661_v46 = vpop.eup %2660 }
 0x5ce   : > { %v2663_v51 = vpop.eup %2662  ;;  %v1474_v53 = vadd.f32 1.0, %v2661_v46 }
 0x5cf   : > { %v1475_v54 = vadd.f32 1.0, %v2663_v51  ;;  %v1676_v51 = vld [vmem:[#allocation17 + $0xc] sm:$0xf] }
 0x5d0   : > { %v3928_v55 = vmul.f32 %v1474_v53, %v1470_v42 }
 0x5d1   : > { %v3930_v41 = vmul.f32 %v1475_v54, %v1471_v44 }
 0x5d2   : > { %1490 = vrot.lane.b32.xlu1 %v3928_v55, %s3178_s17  ;;  %v1733_v46 = vpack.c.bf16 %v3928_v55, %v3928_v55 }
 0x5d3   : > { %1492 = vrot.lane.b32.xlu0 %v3930_v41, %s3178_s17  ;;  %v1734_v38 = vpack.c.bf16 %v3930_v41, %v3930_v41  ;;  %s3066_s17 = sshll.u32 %s3186_s1, 4  ;;  %s3067_s17 = int_to_ptr.vmem [resolvable:$false] %s3066_s17 }
 0x5d4   : > { %v1739_v54 = vsel %vm710_vm0, %v1733_v46, 0  ;;  %p3069_p1 = scmp.lt.s32.totalorder %s4066_s5, %s3067_s17 }
 0x5d6   : > { %1479 = vrot.lane.b32.xlu1 %v3928_v55, %s3180_s29 }
 0x5d7   : > { %1481 = vrot.lane.b32.xlu0 %v3930_v41, %s3180_s29 }
 0x5da   : > { %1603 = vrot.lane.b32.xlu1 %v3928_v55, %s3183_s27 }
 0x5db   : > { %1605 = vrot.lane.b32.xlu0 %v3930_v41, %s3183_s27 }
 0x5de   : > { %1667 = vrot.lane.b32.xlu1 %v3928_v55, %s3179_s21 }
 0x5df   : > { %1669 = vrot.lane.b32.xlu0 %v3930_v41, %s3179_s21  ;;  %s3068_s21 = scalar_lea.vmem %s3067_s17, 512 }
 0x5e0   : > { %p3070_p10 = scmp.lt.s32.totalorder %s3068_s21, %s3062_s24 }
 0x5e2   : > { %1787 = vrot.lane.b32.xlu1 %v3928_v55, %s3181_s28  ;;  %p3071_p11 = por %p3070_p10, %p3069_p1 }
 0x5e3   : > { %1789 = vrot.lane.b32.xlu0 %v3930_v41, %s3181_s28 }
 0x5e4   : > { %p3072_p8 = pnand %p3071_p11, %p3065_p7 }
 0x5e6   : > { %1851 = vrot.lane.b32.xlu1 %v3928_v55, %s3182_s0 }
 0x5e7   : > { %1853 = vrot.lane.b32.xlu0 %v3930_v41, %s3182_s0 }
 0x5ea   : > { %1915 = vrot.lane.b32.xlu1 %v3928_v55, %s3184_s25 }
 0x5eb   : > { %1917 = vrot.lane.b32.xlu0 %v3930_v41, %s3184_s25 }
 0x5ee   : > { %1979 = vrot.lane.b32.xlu1 %v3928_v55, %s3185_s14 }
 0x5ef   : > { %1981 = vrot.lane.b32.xlu0 %v3930_v41, %s3185_s14 }
 0x5f2   : > { %2045 = vperm.xlu1 %2651, %v1478_v56  }
 0x5f3   : > { %2056 = vperm.xlu0 %2652, %v2053_v57  }
 0x644   : > { %v1491_v58 = vpop.permute.xlu1 %1490 }
 0x645   : > { %v1493_v59 = vpop.permute.xlu0 %1492 }
 0x646   : > { %v1494_v60 = vsel %vm798_vm1, %v1491_v58, %v1493_v59  ;;  %v1495_v2 = vsel %vm798_vm1, %v1493_v59, %v1491_v58 }
 0x647   : > { %v1496_v40 = vmul.f32 %v1495_v2, %v3783_v49  ;;  %v1497_v3 = vmul.f32 %v1494_v60, %v3786_v50  ;;  %v1732_v60 = vld [vmem:[#allocation17 + $0x10] sm:$0xf] }
 0x648   : > { %v1480_v5 = vpop.permute.xlu1 %1479 }
 0x649   : > { %v1482_v6 = vpop.permute.xlu0 %1481  ;;  %v1501_v7 = vpack.c.bf16 %v1497_v3, %v1497_v3  ;;  %v1500_v8 = vpack.c.bf16 %v1496_v40, %v1496_v40 }
 0x64a   : > { %v1483_v9 = vsel %vm778_vm3, %v1480_v5, %v1482_v6  ;;  %v1484_v11 = vsel %vm778_vm3, %v1482_v6, %v1480_v5 }
 0x64b   : > { %v1485_v12 = vmul.f32 %v1484_v11, %v3799_v62  ;;  %v1486_v13 = vmul.f32 %v1483_v9, %v3802_v63  ;;  %2403 = vmatprep.subr.msk.bf16.mxu1 %vm710_vm0, %v1501_v7  ;;  %v1507_v49 = vsel %vm710_vm0, %v1500_v8, 0  ;;  %v1796_v9 = vld [vmem:[#allocation17 + $0x14] sm:$0xf] }
 0x64c   : > { %1513 = vmatpush1.bf16.msra.mxu1 %v1507_v49  ;;  %v1604_v50 = vpop.permute.xlu1 %1603 }
 0x64d   : > { %v1488_v29 = vpack.c.bf16 %v1485_v12, %v1485_v12  ;;  %v1489_v18 = vpack.c.bf16 %v1486_v13, %v1486_v13  ;;  %v1606_v20 = vpop.permute.xlu0 %1605 }
 0x64e   : > { %v1607_v48 = vsel %vm921_vm5, %v1604_v50, %v1606_v20  ;;  %v1608_v63 = vsel %vm921_vm5, %v1606_v20, %v1604_v50 }
 0x64f   : > { %v1610_v21 = vmul.f32 %v1607_v48, %v3820_v15  ;;  %2404 = vmatmul.mubr.msk.bf16.vlgmr.msra.gmra.mrb[0].mxu1 %vm1502_vm11, %v1499_v17  ;;  %2405 = vmatprep.subr.msk.bf16.mxu1 %vm710_vm0, %v1489_v18  ;;  %v1557_v62 = vsel %vm710_vm0, %v1488_v29, 0  ;;  %v1609_v27 = vmul.f32 %v1608_v63, %v3817_v14  ;;  %v1860_v18 = vld [vmem:[#allocation17 + $0x18] sm:$0xf]  ;;  %v1924_v63 = vld [vmem:[#allocation17 + $0x1c] sm:$0xf] }
 0x650   : > { %1563 = vmatpush1.bf16.msra.mxu1 %v1557_v62  ;;  %1594 = vmatprep.mubr.bf16.mxu1 %v3176_v10  ;;  %v1668_v26 = vpop.permute.xlu1 %1667 }
 0x651   : > { %v1614_v22 = vpack.c.bf16 %v1610_v21, %v1610_v21  ;;  %v1670_v25 = vpop.permute.xlu0 %1669  ;;  %v1613_v28 = vpack.c.bf16 %v1609_v27, %v1609_v27 }
 0x652   : > { %v1671_v15 = vsel %vm994_vm6, %v1668_v26, %v1670_v25  ;;  %v1672_v35 = vsel %vm994_vm6, %v1670_v25, %v1668_v26  ;;  %v2063_v25 = vsel %vm819_vm2, %v2051_v45, 0 }
 0x653   : > { %2407 = vmatprep.subr.msk.bf16.mxu1 %vm710_vm0, %v1614_v22  ;;  %v1674_v47 = vmul.f32 %v1671_v15, %v3835_v24  ;;  %v1619_v34 = vsel %vm710_vm0, %v1613_v28, 0  ;;  %v1673_v14 = vmul.f32 %v1672_v35, %v3832_v23 }
 0x654   : > { %v1788_v42 = vpop.permute.xlu1 %1787 }
 0x655   : > { %v1678_v32 = vpack.c.bf16 %v1674_v47, %v1674_v47  ;;  %v1677_v36 = vpack.c.bf16 %v1673_v14, %v1673_v14  ;;  %v1790_v39 = vpop.permute.xlu0 %1789 }
 0x656   : > { %v1792_v44 = vsel %vm1123_vm7, %v1790_v39, %v1788_v42  ;;  %v1791_v41 = vsel %vm1123_vm7, %v1788_v42, %v1790_v39 }
 0x657   : > { %v1683_v24 = vsel %vm710_vm0, %v1677_v36, 0  ;;  %v1794_v23 = vmul.f32 %v1792_v44, %v3849_v43  ;;  %v1793_v43 = vmul.f32 %v1791_v41, %v3861_v52 }
 0x658   : > { %v1852_v57 = vpop.permute.xlu1 %1851 }
 0x659   : > { %v1798_v53 = vpack.c.bf16 %v1794_v23, %v1794_v23  ;;  %v1854_v56 = vpop.permute.xlu0 %1853  ;;  %v1797_v58 = vpack.c.bf16 %v1793_v43, %v1793_v43 }
 0x65a   : > { %v1856_v55 = vsel %vm1196_vm8, %v1854_v56, %v1852_v57  ;;  %v1855_v3 = vsel %vm1196_vm8, %v1852_v57, %v1854_v56 }
 0x65b   : > { %2406 = vmatmul.mubr.msk.bf16.vlgmr.msra.gmra.mrb[0].mxu1 %vm1502_vm11, %v1487_v31  ;;  %v1858_v59 = vmul.f32 %v1856_v55, %v3872_v61  ;;  %v1803_v40 = vsel %vm710_vm0, %v1797_v58, 0  ;;  %v1857_v6 = vmul.f32 %v1855_v3, %v3881_v4 }
 0x65c   : > { %1625 = vmatpush1.bf16.msra.mxu1 %v1619_v34  ;;  %1656 = vmatprep.mubr.bf16.mxu1 %v3176_v10  ;;  %v1916_v52 = vpop.permute.xlu1 %1915 }
 0x65d   : > { %2409 = vmatprep.subr.msk.bf16.mxu1 %vm710_vm0, %v1678_v32  ;;  %v1862_v2 = vpack.c.bf16 %v1858_v59, %v1858_v59  ;;  %v1918_v5 = vpop.permute.xlu0 %1917  ;;  %v1861_v7 = vpack.c.bf16 %v1857_v6, %v1857_v6 }
 0x65e   : > { %v1920_v61 = vsel %vm1269_vm9, %v1918_v5, %v1916_v52  ;;  %v1919_v13 = vsel %vm1269_vm9, %v1916_v52, %v1918_v5 }
 0x65f   : > { %v1922_v8 = vmul.f32 %v1920_v61, %v3890_v16  ;;  %v1867_v12 = vsel %vm710_vm0, %v1861_v7, 0  ;;  %v1921_v50 = vmul.f32 %v1919_v13, %v3899_v19 }
 0x660   : > { %v1980_v4 = vpop.permute.xlu1 %1979 }
 0x661   : > { %v1926_v11 = vpack.c.bf16 %v1922_v8, %v1922_v8  ;;  %v1982_v49 = vpop.permute.xlu0 %1981  ;;  %v1925_v17 = vpack.c.bf16 %v1921_v50, %v1921_v50 }
 0x662   : > { %v1984_v16 = vsel %vm1342_vm10, %v1982_v49, %v1980_v4  ;;  %v1983_v21 = vsel %vm1342_vm10, %v1980_v4, %v1982_v49 }
 0x663   : > { %v1986_v29 = vmul.f32 %v3908_v30, %v1984_v16  ;;  %v1931_v48 = vsel %vm710_vm0, %v1925_v17, 0  ;;  %v1985_v19 = vmul.f32 %v3915_v33, %v1983_v21  ;;  %v2052_v30 = vpack.c.bf16 %v3714_v1, %v3714_v1  ;;  %v1988_v33 = vld [vmem:[#allocation17 + $0x20] sm:$0xf]  ;;  %v2050_v1 = vld [vmem:[#allocation20] sm:$0xf] }
 0x665   : > { %v1990_v20 = vpack.c.bf16 %v1986_v29, %v1986_v29  ;;  %v1989_v62 = vpack.c.bf16 %v1985_v19, %v1985_v19 }
 0x667   : > { %2408 = vmatmul.mubr.msk.bf16.vlgmr.msra.gmra.mrb[0].mxu1 %vm1502_vm11, %v1612_v37  ;;  %v1995_v22 = vsel %vm710_vm0, %v1989_v62, 0 }
 0x668   : > { %1689 = vmatpush1.bf16.msra.mxu1 %v1683_v24  ;;  %1720 = vmatprep.mubr.bf16.mxu1 %v3176_v10 }
 0x669   : > { %2411 = vmatprep.subr.msk.bf16.mxu1 %vm710_vm0, %v1734_v38 }
 0x671   : > { %v2046_v27 = vpop.permute.xlu1 %2045 }
 0x672   : > { %v2057_v26 = vpop.permute.xlu0 %2056 }
 0x673   : > { %2410 = vmatmul.mubr.msk.bf16.vlgmr.msra.gmra.mrb[0].mxu1 %vm1502_vm11, %v1676_v51  ;;  %v2430_v15 = vadd.f32 %v2057_v26, %v2046_v27 }
 0x674   : > { %1745 = vmatpush1.bf16.msra.mxu1 %v1739_v54  ;;  %1776 = vmatprep.mubr.bf16.mxu1 %v3176_v10 }
 0x675   : > { %2413 = vmatprep.subr.msk.bf16.mxu1 %vm710_vm0, %v1798_v53 }
 0x67f   : > { %2412 = vmatmul.mubr.msk.bf16.vlgmr.msra.gmra.mrb[0].mxu1 %vm1502_vm11, %v1732_v60 }
 0x680   : > { %1809 = vmatpush1.bf16.msra.mxu1 %v1803_v40  ;;  %1840 = vmatprep.mubr.bf16.mxu1 %v3176_v10 }
 0x681   : > { %2415 = vmatprep.subr.msk.bf16.mxu1 %vm710_vm0, %v1862_v2 }
 0x68b   : > { %2414 = vmatmul.mubr.msk.bf16.vlgmr.msra.gmra.mrb[0].mxu1 %vm1502_vm11, %v1796_v9 }
 0x68c   : > { %1873 = vmatpush1.bf16.msra.mxu1 %v1867_v12  ;;  %1904 = vmatprep.mubr.bf16.mxu1 %v3176_v10 }
 0x68d   : > { %2417 = vmatprep.subr.msk.bf16.mxu1 %vm710_vm0, %v1926_v11 }
 0x697   : > { %2416 = vmatmul.mubr.msk.bf16.vlgmr.msra.gmra.mrb[0].mxu1 %vm1502_vm11, %v1860_v18 }
 0x698   : > { %1937 = vmatpush1.bf16.msra.mxu1 %v1931_v48  ;;  %1968 = vmatprep.mubr.bf16.mxu1 %v3176_v10 }
 0x699   : > { %2419 = vmatprep.subr.msk.bf16.mxu1 %vm710_vm0, %v1990_v20 }
 0x6a3   : > { %2418 = vmatmul.mubr.msk.bf16.vlgmr.msra.gmra.mrb[0].mxu1 %vm1502_vm11, %v1924_v63 }
 0x6a4   : > { %2001 = vmatpush1.bf16.msra.mxu1 %v1995_v22  ;;  %2032 = vmatprep.mubr.bf16.mxu1 %v3176_v10 }
 0x6a5   : > { %2421 = vmatprep.subr.msk.bf16.mxu1 %vm819_vm2, %v2052_v30 }
 0x6af   : > { %2420 = vmatmul.mubr.msk.bf16.vlgmr.msra.gmra.mrb[0].mxu1 %vm1502_vm11, %v1988_v33 }
 0x6b0   : > { %2069 = vmatpush1.bf16.msra.mxu1 %v2063_v25  ;;  %2100 = vmatprep.mubr.bf16.mxu1 %v3176_v10 }
 0x6bb   : > { %2422 = vmatmul.mubr.msk.bf16.vlgmr.msra.gmra.mrb[0].mxu1 %vm815_vm4, %v2050_v1 }
 0x78e   : > { %v2102_v0 = vpop.f32.mrb[0].mxu1 }
 0x78f   : > { %v2431_v28 = vadd.f32 %v2430_v15, %v2102_v0  ;;  %v2104_v47 = vpop.f32.mrb[1].mxu1 }
 0x790   : > { %v2433_v31 = vadd.f32 %v2430_v15, %v2104_v47  ;;  %v2106_v32 = vpop.f32.mrb[2].mxu1 }
 0x791   : > { %2111 = vst [vmem:[%s698_s26] sm:$0xff] %v2431_v28  ;;  %v2107_v10 = vpop.f32.mrb[3].mxu1 }
 0x792   : > { %2112 = vst [vmem:[%s698_s26 + $0x8] sm:$0xff] %v2433_v31 }
 0x793   : > { %3075 = shalt.err (!%p3072_p8)
}
 0x794   : > { %s3076_s11 = scalar_lea.hbm %s4064_s20, 256  ;;  %s3080_s0 = scalar_lea.hbm %s4202_s7, 512 }
 0x795   : > { %p3077_p4 = scmp.ne.s32.totalorder %s4064_s20, %s3076_s11  ;;  %p3081_p9 = scmp.lt.u32.totalorder %s4064_s20, %s4202_s7 }
 0x796   : > { %p3082_p0 = scmp.lt.u32.totalorder %s3080_s0, %s3076_s11  ;;  %p3084_p3 = scmp.lt.u32.totalorder %s3076_s11, %s4064_s20 }
 0x797   : > { %p3078_p13 = pnand %p3077_p4, %p4203_p6 }
 0x798   : > { %p3083_p2 = por %p3082_p0, %p3081_p9 }
 0x799   : > { %p3079_p5 = pneg %p3078_p13 }
 0x79a   : > { %p3085_p12 = por %p3084_p3, %p3083_p2 }
 0x79c   : > { %p3086_p7 = pnand %p3085_p12, %p3079_p5 }
 0x79e   : > { %3089 = shalt.err (!%p3086_p7)
}
 0x79f   : > { %2520 = dma.vmem_to_hbm [thread:$0]  (%p4203_p6), %s4066_s5, 256, %s4064_s20, %s2114_s19  }
 0x7a0 PF: > { %s4204_s14 = sld [smem:[#allocation35_spill]]  ;;  %s4205_s6 = sld [smem:[#allocation40_spill]] }
 0x7a1   : > { %s4206_s9 = sld [smem:[#allocation36_spill]] }
 0x7a6   : > { %s2140_s26 = sand.u32 1, %s4204_s14   ;;  %p4207_p1 = scmp.ne.s32.totalorder %s4205_s6, 0 }
 0x7a7   : > { %p4208_p10 = scmp.ge.s32.totalorder %s4206_s9, 2  ;;  %s2141_s16 = scalar_lea.sflag [#allocation4], %s2140_s26 }
 0x7a9   : > { %p2567_p11 = pnand %p4208_p10, %p4207_p1 }
 0x7ab   : > { %3139 = dma.done.wait (!%p2567_p11), %s2141_s16, 256  }
 0x7ac   : > { %3141 = vsyncadd (!%p2567_p11), %s2141_s16, 4294967040  ;;  %s4209_s16 = sld [smem:[#allocation38_spill]]  ;;  %s4210_s3 = sld [smem:[#allocation39_spill]] }
 0x7ad   : > { %s4211_s29 = smov %s3148_s30  ;;  %s4212_s30 = smov %s3152_s15 }
 0x7b2   : > { %p36_p8 = scmp.ge.s32.totalorder %s4209_s16, 4   ;;  %s4213_s15 = smov %s4210_s3 }
 0x7b4   :  { %38 = sbr.rel (!%p36_p8) target bundleno = 23 (0x17), region = 205 }
 0x7bb   :  { %2146 = vsyncpa [#allocation3], 1 }
 0x7bc   :  { %2148 = vsyncpa [#allocation3 + $0x1], 1 }
 0x7bd   :  { %2149 = vsyncpa [#allocation6], 1 }
 0x7be   :  { %2150 = vsyncpa [#allocation9], 1 }
 0x7bf   :  { %2151 = vsyncpa [#allocation12], 1 }
 0x7c0   :  { %2153 = vsyncpa [#allocation12 + $0x1], 1 }
 0x7c1   :  { %2154 = vsyncpa [#allocation15], 1 }
 0x7c2   :  { %2155 = vsyncpa [#allocation18], 1 }
 0x7c3   :  { %2156 = vsyncpa [#allocation21], 1 }
 0x7c4   :  { %2157 = vsyncpa [#allocation24], 1 }
 0x7c5   :  { %2158 = vsyncpa [#allocation4], 1 }
 0x7c6   :  { %2160 = vsyncpa [#allocation4 + $0x1], 1 }

// kernel: resnet_block_forward.2
= control target key start
LH: loop header
LB: loop body
LE: loop exit
PB: predicated region body
PF: predicated region fallthrough
CT: control target
= control target key end

     0   :  { %17 = vsyncpa [#allocation3], 0  ;;  %s5078_s0 = inlined_call_operand.hbm [shape: f32[2,32], index: 0, kind: input, shape index: {}]   ;;  %s5079_s1 = inlined_call_operand.hbm [shape: bf16[32,8], index: 1, kind: input, shape index: {}]   ;;  %s5080_s2 = inlined_call_operand.hbm [shape: f32[1,8], index: 2, kind: input, shape index: {}]   ;;  %s5081_s3 = inlined_call_operand.hbm [shape: f32[2,1280], index: 3, kind: input, shape index: {}]   ;;  %s5082_s4 = inlined_call_operand.hbm [shape: bf16[1280,512], index: 4, kind: input, shape index: {}]   ;;  %s5083_s5 = inlined_call_operand.hbm [shape: f32[1,512], index: 5, kind: input, shape index: {}]   ;;  %s5084_s6 = inlined_call_operand.hbm [shape: bf16[512,256], index: 6, kind: input, shape index: {}]   ;;  %s5085_s7 = inlined_call_operand.hbm [shape: f32[1,256], index: 7, kind: input, shape index: {}]   ;;  %s5086_s8 = inlined_call_operand.hbm [shape: bf16[256,8], index: 8, kind: input, shape index: {}]   ;;  %s5087_s9 = inlined_call_operand.hbm [shape: f32[1,8], index: 9, kind: input, shape index: {}]   ;;  %s5088_s10 = inlined_call_operand.hbm [shape: f32[2,8], index: 10, kind: output, shape index: {0}]   ;;  %s5089_s11 = inlined_call_operand.hbm [shape: f32[2,8], index: 11, kind: output, shape index: {1}]  }
   0x1   :  { %18 = vsyncpa [#allocation6], 0 }
   0x2   :  { %19 = vsyncpa [#allocation9], 0 }
   0x3   :  { %20 = vsyncpa [#allocation12], 0 }
   0x4   :  { %21 = vsyncpa [#allocation15], 0 }
   0x5   :  { %22 = vsyncpa [#allocation18], 0 }
   0x6   :  { %23 = vsyncpa [#allocation4], 0 }
   0x7   :  { %24 = vsyncpa [#allocation21], 0  ;;  %s4746_s17 = smov [#allocation5]   ;;  %s4466_s21 = scalar_lea.hbm %s5079_s1, 256 }
   0x8   :  { %s40_s18 = sshll.u32 %s4746_s17, 4  ;;  %p4467_p0 = scmp.ne.s32.totalorder %s5079_s1, %s4466_s21  ;;  %s41_s18 = int_to_ptr.vmem [resolvable:$true] %s40_s18 }
   0x9   :  { %p4470_p1 = scmp.lt.u32.totalorder %s4466_s21, %s5079_s1 }
   0xb   :  { %p4472_p2 = pnand %p4470_p1, %p4467_p0 }
   0xd   :  { %4475 = shalt.err (!%p4472_p2)
}
   0xe   :  { %s4476_s26 = scalar_lea.vmem %s41_s18, 256  ;;  %p4481_p4 = scmp.lt.s32.totalorder %s41_s18, %s41_s18 }
   0xf   :  { %p4477_p3 = scmp.ne.s32.totalorder %s41_s18, %s4476_s26  ;;  %p4482_p5 = scmp.lt.s32.totalorder %s4476_s26, %s4476_s26 }
  0x11   :  { %p4483_p6 = por %p4482_p5, %p4481_p4 }
  0x13   :  { %p4484_p7 = pnand %p4483_p6, %p4477_p3 }
  0x15   :  { %4487 = shalt.err (!%p4484_p7)
}
  0x16   :  { %s4747_s27 = smov 64   ;;  %s4748_s28 = smov 4  }
  0x17   :  { %46 = dma.hbm_to_vmem [thread:$0]  %s5079_s1, 256, %s41_s18, [#allocation6], %s4747_s27, %s4747_s27, %s4748_s28  }
  0x18   :  { %s4749_s12 = smov [#allocation8]   ;;  %s4750_s14 = smov [#allocation11]  }
  0x19   :  { %s63_s13 = sshll.u32 %s4749_s12, 4  ;;  %s85_s15 = sshll.u32 %s4750_s14, 4  ;;  %s64_s13 = int_to_ptr.vmem [resolvable:$true] %s63_s13  ;;  %s86_s15 = int_to_ptr.vmem [resolvable:$true] %s85_s15 }
  0x1a   :  { %s4488_s19 = scalar_lea.hbm %s5081_s3, 320 }
  0x1b   :  { %p4489_p8 = scmp.ne.s32.totalorder %s5081_s3, %s4488_s19  ;;  %p4492_p9 = scmp.lt.u32.totalorder %s4488_s19, %s5081_s3 }
  0x1d   :  { %p4494_p10 = pnand %p4492_p9, %p4489_p8 }
  0x1f   :  { %4497 = shalt.err (!%p4494_p10)
}
  0x20   :  { %s4498_s1 = scalar_lea.vmem %s64_s13, 320  ;;  %p4503_p12 = scmp.lt.s32.totalorder %s64_s13, %s64_s13 }
  0x21   :  { %p4499_p11 = scmp.ne.s32.totalorder %s64_s13, %s4498_s1  ;;  %p4504_p13 = scmp.lt.s32.totalorder %s4498_s1, %s4498_s1 }
  0x23   :  { %p4505_p0 = por %p4504_p13, %p4503_p12 }
  0x25   :  { %p4506_p1 = pnand %p4505_p0, %p4499_p11 }
  0x27   :  { %4509 = shalt.err (!%p4506_p1)
}
  0x28   :  { %66 = dma.hbm_to_vmem [thread:$0]  %s5081_s3, 320, %s64_s13, [#allocation9]  }
  0x29   :  { %s4510_s29 = scalar_lea.hbm %s5083_s5, 64 }
  0x2a   :  { %p4511_p2 = scmp.ne.s32.totalorder %s5083_s5, %s4510_s29  ;;  %p4514_p3 = scmp.lt.u32.totalorder %s4510_s29, %s5083_s5 }
  0x2c   :  { %p4516_p4 = pnand %p4514_p3, %p4511_p2 }
  0x2e   :  { %4519 = shalt.err (!%p4516_p4)
}
  0x2f   :  { %s4520_s17 = scalar_lea.vmem %s86_s15, 64  ;;  %p4525_p6 = scmp.lt.s32.totalorder %s86_s15, %s86_s15 }
  0x30   :  { %p4521_p5 = scmp.ne.s32.totalorder %s86_s15, %s4520_s17  ;;  %p4526_p7 = scmp.lt.s32.totalorder %s4520_s17, %s4520_s17 }
  0x32   :  { %p4527_p8 = por %p4526_p7, %p4525_p6 }
  0x34   :  { %p4528_p9 = pnand %p4527_p8, %p4521_p5 }
  0x36   :  { %4531 = shalt.err (!%p4528_p9)
}
  0x37   :  { %88 = dma.hbm_to_vmem [thread:$0]  %s5083_s5, 64, %s86_s15, [#allocation12]  }
  0x38   :  { %s4751_s19 = smov [#allocation14]   ;;  %s4752_s21 = smov [#allocation2]  }
  0x39   :  { %s107_s20 = sshll.u32 %s4751_s19, 4  ;;  %s31_s22 = sshll.u32 %s4752_s21, 4  ;;  %s108_s20 = int_to_ptr.vmem [resolvable:$true] %s107_s20  ;;  %s32_s22 = int_to_ptr.vmem [resolvable:$true] %s31_s22 }
  0x3a   :  { %s4532_s18 = scalar_lea.hbm %s5085_s7, 32 }
  0x3b   :  { %p4533_p10 = scmp.ne.s32.totalorder %s5085_s7, %s4532_s18  ;;  %p4536_p11 = scmp.lt.u32.totalorder %s4532_s18, %s5085_s7 }
  0x3d   :  { %p4538_p12 = pnand %p4536_p11, %p4533_p10 }
  0x3f   :  { %4541 = shalt.err (!%p4538_p12)
}
  0x40   :  { %s4542_s5 = scalar_lea.vmem %s108_s20, 32  ;;  %p4547_p0 = scmp.lt.s32.totalorder %s108_s20, %s108_s20 }
  0x41   :  { %p4543_p13 = scmp.ne.s32.totalorder %s108_s20, %s4542_s5  ;;  %p4548_p1 = scmp.lt.s32.totalorder %s4542_s5, %s4542_s5 }
  0x43   :  { %p4549_p2 = por %p4548_p1, %p4547_p0 }
  0x45   :  { %p4550_p3 = pnand %p4549_p2, %p4543_p13 }
  0x47   :  { %4553 = shalt.err (!%p4550_p3)
}
  0x48   :  { %110 = dma.hbm_to_vmem [thread:$0]  %s5085_s7, 32, %s108_s20, [#allocation15]  }
  0x49   :  { %s4554_s16 = scalar_lea.hbm %s5078_s0, 32 }
  0x4a   :  { %p4555_p4 = scmp.ne.s32.totalorder %s5078_s0, %s4554_s16  ;;  %p4558_p5 = scmp.lt.u32.totalorder %s4554_s16, %s5078_s0 }
  0x4c   :  { %p4560_p6 = pnand %p4558_p5, %p4555_p4 }
  0x4e   :  { %4563 = shalt.err (!%p4560_p6)
}
  0x4f   :  { %s4564_s21 = scalar_lea.vmem %s32_s22, 32  ;;  %p4569_p8 = scmp.lt.s32.totalorder %s32_s22, %s32_s22 }
  0x50   :  { %p4565_p7 = scmp.ne.s32.totalorder %s32_s22, %s4564_s21  ;;  %p4570_p9 = scmp.lt.s32.totalorder %s4564_s21, %s4564_s21 }
  0x52   :  { %p4571_p10 = por %p4570_p9, %p4569_p8 }
  0x54   :  { %p4572_p11 = pnand %p4571_p10, %p4565_p7 }
  0x56   :  { %4575 = shalt.err (!%p4572_p11)
}
  0x57   :  { %34 = dma.hbm_to_vmem [thread:$0]  %s5078_s0, 32, %s32_s22, [#allocation3]  }
  0x58   :  { %s4753_s23 = smov [#allocation7]   ;;  %s4754_s18 = smov [#allocation10]  }
  0x59   :  { %s53_s1 = sshll.u32 %s4753_s23, 4  ;;  %s72_s24 = sshll.u32 %s4754_s18, 4  ;;  %s54_s1 = int_to_ptr.vmem [resolvable:$true] %s53_s1  ;;  %s73_s24 = int_to_ptr.vmem [resolvable:$true] %s72_s24 }
  0x5a   :  { %s4576_s29 = scalar_lea.hbm %s5080_s2, 16 }
  0x5b   :  { %p4577_p12 = scmp.ne.s32.totalorder %s5080_s2, %s4576_s29  ;;  %p4580_p13 = scmp.lt.u32.totalorder %s4576_s29, %s5080_s2 }
  0x5d   :  { %p4582_p0 = pnand %p4580_p13, %p4577_p12 }
  0x5f   :  { %4585 = shalt.err (!%p4582_p0)
}
  0x60   :  { %s4586_s0 = scalar_lea.vmem %s54_s1, 16  ;;  %s4590_s22 = scalar_lea.vmem %s54_s1, 32 }
  0x61   :  { %p4587_p1 = scmp.ne.s32.totalorder %s54_s1, %s4586_s0  ;;  %p4591_p2 = scmp.lt.s32.totalorder %s54_s1, %s54_s1 }
  0x62   :  { %p4592_p3 = scmp.lt.s32.totalorder %s4590_s22, %s4586_s0 }
  0x64   :  { %p4593_p4 = por %p4592_p3, %p4591_p2 }
  0x66   :  { %p4594_p5 = pnand %p4593_p4, %p4587_p1 }
  0x68   :  { %4597 = shalt.err (!%p4594_p5)
}
  0x69   :  { %56 = dma.hbm_to_vmem [thread:$0]  %s5080_s2, 16, %s54_s1, [#allocation6]  }
  0x6a   :  { %s4598_s13 = scalar_lea.hbm %s5082_s4, 40960 }
  0x6b   :  { %p4599_p6 = scmp.ne.s32.totalorder %s5082_s4, %s4598_s13  ;;  %p4602_p7 = scmp.lt.u32.totalorder %s4598_s13, %s5082_s4 }
  0x6d   :  { %p4604_p8 = pnand %p4602_p7, %p4599_p6 }
  0x6f   :  { %4607 = shalt.err (!%p4604_p8)
}
  0x70   :  { %s4608_s23 = scalar_lea.vmem %s73_s24, 40960  ;;  %p4613_p10 = scmp.lt.s32.totalorder %s73_s24, %s73_s24 }
  0x71   :  { %p4609_p9 = scmp.ne.s32.totalorder %s73_s24, %s4608_s23  ;;  %p4614_p11 = scmp.lt.s32.totalorder %s4608_s23, %s4608_s23 }
  0x73   :  { %p4615_p12 = por %p4614_p11, %p4613_p10 }
  0x75   :  { %p4616_p13 = pnand %p4615_p12, %p4609_p9 }
  0x77   :  { %4619 = shalt.err (!%p4616_p13)
}
  0x78   :  { %s4755_s2 = smov 256   ;;  %s4756_s1 = smov 16  }
  0x79   :  { %78 = dma.hbm_to_vmem [thread:$0]  %s5082_s4, 40960, %s73_s24, [#allocation9], %s4755_s2, %s4755_s2, %s4756_s1  }
  0x7a   :  { %s4757_s26 = smov [#allocation13]   ;;  %s4620_s30 = scalar_lea.hbm %s5084_s6, 8192 }
  0x7b   :  { %s94_s29 = sshll.u32 %s4757_s26, 4  ;;  %p4621_p0 = scmp.ne.s32.totalorder %s5084_s6, %s4620_s30  ;;  %s95_s29 = int_to_ptr.vmem [resolvable:$true] %s94_s29 }
  0x7c   :  { %p4624_p1 = scmp.lt.u32.totalorder %s4620_s30, %s5084_s6 }
  0x7e   :  { %p4626_p2 = pnand %p4624_p1, %p4621_p0 }
  0x80   :  { %4629 = shalt.err (!%p4626_p2)
}
  0x81   :  { %s4630_s16 = scalar_lea.vmem %s95_s29, 8192  ;;  %p4635_p4 = scmp.lt.s32.totalorder %s95_s29, %s95_s29 }
  0x82   :  { %p4631_p3 = scmp.ne.s32.totalorder %s95_s29, %s4630_s16  ;;  %p4636_p5 = scmp.lt.s32.totalorder %s4630_s16, %s4630_s16 }
  0x84   :  { %p4637_p6 = por %p4636_p5, %p4635_p4 }
  0x86   :  { %p4638_p7 = pnand %p4637_p6, %p4631_p3 }
  0x88   :  { %4641 = shalt.err (!%p4638_p7)
}
  0x89   :  { %s4758_s4 = smov 128   ;;  %s4759_s24 = smov 8  }
  0x8a   :  { %100 = dma.hbm_to_vmem [thread:$0]  %s5084_s6, 8192, %s95_s29, [#allocation12], %s4758_s4, %s4758_s4, %s4759_s24  }
  0x8b   :  { %s4760_s13 = smov [#allocation16]   ;;  %s4761_s21 = smov [#allocation17]  }
  0x8c   :  { %s116_s19 = sshll.u32 %s4760_s13, 4  ;;  %s129_s7 = sshll.u32 %s4761_s21, 4  ;;  %s117_s19 = int_to_ptr.vmem [resolvable:$true] %s116_s19  ;;  %s130_s7 = int_to_ptr.vmem [resolvable:$true] %s129_s7 }
  0x8d   :  { %s4642_s2 = scalar_lea.hbm %s5086_s8, 2048 }
  0x8e   :  { %p4643_p8 = scmp.ne.s32.totalorder %s5086_s8, %s4642_s2  ;;  %p4646_p9 = scmp.lt.u32.totalorder %s4642_s2, %s5086_s8 }
  0x90   :  { %p4648_p10 = pnand %p4646_p9, %p4643_p8 }
  0x92   :  { %4651 = shalt.err (!%p4648_p10)
}
  0x93   :  { %s4652_s6 = scalar_lea.vmem %s117_s19, 2048  ;;  %p4657_p12 = scmp.lt.s32.totalorder %s117_s19, %s117_s19 }
  0x94   :  { %p4653_p11 = scmp.ne.s32.totalorder %s117_s19, %s4652_s6  ;;  %p4658_p13 = scmp.lt.s32.totalorder %s4652_s6, %s4652_s6 }
  0x96   :  { %p4659_p0 = por %p4658_p13, %p4657_p12 }
  0x98   :  { %p4660_p1 = pnand %p4659_p0, %p4653_p11 }
  0x9a   :  { %4663 = shalt.err (!%p4660_p1)
}
  0x9b   :  { %122 = dma.hbm_to_vmem [thread:$0]  %s5086_s8, 2048, %s117_s19, [#allocation15], %s4747_s27, %s4747_s27, %s4748_s28  }
  0x9c   :  { %s4664_s12 = scalar_lea.hbm %s5087_s9, 16 }
  0x9d   :  { %p4665_p2 = scmp.ne.s32.totalorder %s5087_s9, %s4664_s12  ;;  %p4668_p3 = scmp.lt.u32.totalorder %s4664_s12, %s5087_s9 }
  0x9f   :  { %p4670_p4 = pnand %p4668_p3, %p4665_p2 }
  0xa1   :  { %4673 = shalt.err (!%p4670_p4)
}
  0xa2   :  { %s4674_s4 = scalar_lea.vmem %s130_s7, 16  ;;  %s4678_s24 = scalar_lea.vmem %s130_s7, 32 }
  0xa3   :  { %p4675_p5 = scmp.ne.s32.totalorder %s130_s7, %s4674_s4  ;;  %p4679_p6 = scmp.lt.s32.totalorder %s130_s7, %s130_s7 }
  0xa4   :  { %p4680_p7 = scmp.lt.s32.totalorder %s4678_s24, %s4674_s4 }
  0xa6   :  { %p4681_p8 = por %p4680_p7, %p4679_p6 }
  0xa8   :  { %p4682_p9 = pnand %p4681_p8, %p4675_p5 }
  0xaa   :  { %4685 = shalt.err (!%p4682_p9)
}
  0xab   :  { %132 = dma.hbm_to_vmem [thread:$0]  %s5087_s9, 16, %s130_s7, [#allocation18]  }
  0xac   :  { %4730 = dma.done.wait [#allocation3], 32  }
  0xad   :  { %4731 = vsyncadd [#allocation3], 4294967264 }
  0xae   :  { %4732 = dma.done.wait [#allocation6], 272  }
  0xaf   :  { %4733 = vsyncadd [#allocation6], 4294967024 }
  0xb0   :  { %4734 = dma.done.wait [#allocation9], 41280  }
  0xb1   :  { %4735 = vsyncadd [#allocation9], 4294926016 }
  0xb2   :  { %4736 = dma.done.wait [#allocation12], 8256  }
  0xb3   :  { %4737 = vsyncadd [#allocation12], 4294959040 }
  0xb4   :  { %4738 = dma.done.wait [#allocation15], 2080  }
  0xb5   :  { %4739 = vsyncadd [#allocation15], 4294965216 }
  0xb6   :  { %4740 = dma.done.wait [#allocation18], 16  }
  0xb7   :  { %4741 = vsyncadd [#allocation18], 4294967280  ;;  %v4762_v0 = vmov 0.0   ;;  %vm4763_vm0 = vmmov 0   ;;  %v3864_v1 = vld [vmem:[#allocation10 + $0x4] ss:$16 sps:$4 sm:$0xff]   ;;  %v261_v49 = vlaneseq }
  0xb8   :  { %3795 = vmatprep.subr.bf16.mxu1 %v4762_v0  ;;  %3799 = vmatprep.mubr.msk.bf16.mxu1 %vm4763_vm0, %v4762_v0  ;;  %v3866_v2 = vld [vmem:[#allocation10] ss:$16 sps:$4 sm:$0xff]   ;;  %v3867_v3 = vld [vmem:[#allocation10 + $0x24] ss:$16 sps:$4 sm:$0xff]   ;;  %v164_v11 = vld [vmem:[#allocation2] sm:$0x3] }
  0xb9   :  { %2261 = vmatprep.subr.bf16.mxu0 %v3864_v1  ;;  %v3869_v4 = vld [vmem:[#allocation10 + $0x20] ss:$16 sps:$4 sm:$0xff]   ;;  %v3870_v5 = vld [vmem:[#allocation10 + $0x44] ss:$16 sps:$4 sm:$0xff]   ;;  %v165_v12 = vmul.f32 0.5, %v164_v11  ;;  %vm193_vm1 = vcmask 261120  }
  0xba   :  { %2262 = vmatpush1.bf16.msra.mxu0 %v3866_v2  ;;  %v3872_v6 = vld [vmem:[#allocation5] sm:$0xff]   ;;  %v3876_v7 = vld [vmem:[#allocation5 + $0x8] sm:$0xff]   ;;  %v239_v40 = vld [vmem:[#allocation8] sm:$0xff]  ;;  %v4764_v47 = vmov 1983009808   ;;  %v4953_v55 = vshrl.u32 %v261_v49, 7 }
  0xbb   :  { %2263 = vmatprep.subr.bf16.mxu0 %v3867_v3  ;;  %3796 = vmatpush3.bf16.msra.mxu1 %v3872_v6  ;;  %v3873_v8 = vld [vmem:[#allocation10 + $0x40] ss:$16 sps:$4 sm:$0xff]   ;;  %v3874_v9 = vld [vmem:[#allocation10 + $0x64] ss:$16 sps:$4 sm:$0xff]   ;;  %4458 = vtanh.f32 %v165_v12  ;;  %v242_v42 = vmul.f32 0.5, %v239_v40  ;;  %v259_v48 = vunpack.c.l.s4 %v4764_v47  ;;  %vm237_vm2 = vcmask 58368  }
  0xbc   :  { %3797 = vmatprep.subr.bf16.mxu1 %v4762_v0  ;;  %v3882_v10 = vld [vmem:[#allocation10 + $0x204] ss:$16 sps:$4 sm:$0xff]   ;;  %v3877_v13 = vld [vmem:[#allocation10 + $0x60] ss:$16 sps:$4 sm:$0xff]   ;;  %v3955_v11 = vld [vmem:[#allocation10 + $0xc] ss:$16 sps:$4 sm:$0xff]  }
  0xbd   :  { %v3878_v14 = vld [vmem:[#allocation10 + $0x84] ss:$16 sps:$4 sm:$0xff]   ;;  %v3883_v15 = vld [vmem:[#allocation10 + $0x80] ss:$16 sps:$4 sm:$0xff]   ;;  %4460 = vtanh.f32 %v242_v42  ;;  %v260_v54 = vunpack.c.0.s8 %v259_v48  ;;  %v3995_v47 = vld [vmem:[#allocation10 + $0xe8] ss:$16 sps:$4 sm:$0xff]  }
  0xbe   :  { %2264 = vmatpush1.bf16.msra.mxu0 %v3869_v4  ;;  %v3884_v16 = vld [vmem:[#allocation10 + $0xa4] ss:$16 sps:$4 sm:$0xff]   ;;  %v3889_v17 = vld [vmem:[#allocation10 + $0xa0] ss:$16 sps:$4 sm:$0xff]   ;;  %v4003_v48 = vld [vmem:[#allocation10 + $0x10c] ss:$16 sps:$4 sm:$0xff]  }
  0xbf   :  { %2265 = vmatprep.subr.bf16.mxu0 %v3870_v5  ;;  %3798 = vmatpush3.bf16.msra.mxu1 %v3876_v7  ;;  %v3890_v18 = vld [vmem:[#allocation10 + $0xc4] ss:$16 sps:$4 sm:$0xff]   ;;  %v3895_v21 = vld [vmem:[#allocation10 + $0xc0] ss:$16 sps:$4 sm:$0xff]   ;;  %v4956_v62 = vsub.s32 %v260_v54, %v4953_v55  ;;  %v4009_v54 = vld [vmem:[#allocation10 + $0x12c] ss:$16 sps:$4 sm:$0xff]  }
  0xc0   :  { %2302 = vmatprep.subr.bf16.mxu1 %v3882_v10  ;;  %v3896_v22 = vld [vmem:[#allocation10 + $0xe4] ss:$16 sps:$4 sm:$0xff]   ;;  %v3880_v23 = vld [vmem:[#allocation10 + $0x200] ss:$16 sps:$4 sm:$0xff]   ;;  %s4765_s9 = smov [#allocation19]  }
  0xc1   :  { %v3888_v25 = vld [vmem:[#allocation10 + $0x224] ss:$16 sps:$4 sm:$0xff]   ;;  %v3901_v27 = vld [vmem:[#allocation10 + $0xe0] ss:$16 sps:$4 sm:$0xff]   ;;  %s3337_s28 = sshll.u32 %s4765_s9, 4  ;;  %s3338_s28 = int_to_ptr.vmem [resolvable:$true] %s3337_s28 }
  0xc2   :  { %2266 = vmatpush1.bf16.msra.mxu0 %v3873_v8  ;;  %v3902_v28 = vld [vmem:[#allocation10 + $0x104] ss:$16 sps:$4 sm:$0xff]   ;;  %v3886_v29 = vld [vmem:[#allocation10 + $0x220] ss:$16 sps:$4 sm:$0xff]   ;;  %s4686_s17 = scalar_lea.vmem %s3338_s28, 32  ;;  %p4691_p11 = scmp.lt.s32.totalorder %s3338_s28, %s3338_s28 }
  0xc3   :  { %2267 = vmatprep.subr.bf16.mxu0 %v3874_v9  ;;  %v3894_v30 = vld [vmem:[#allocation10 + $0x244] ss:$16 sps:$4 sm:$0xff]   ;;  %v3907_v31 = vld [vmem:[#allocation10 + $0x100] ss:$16 sps:$4 sm:$0xff]   ;;  %p4687_p10 = scmp.ne.s32.totalorder %s3338_s28, %s4686_s17  ;;  %p4692_p12 = scmp.lt.s32.totalorder %s4686_s17, %s4686_s17 }
  0xc4   :  { %v3908_v32 = vld [vmem:[#allocation10 + $0x124] ss:$16 sps:$4 sm:$0xff]   ;;  %v3892_v33 = vld [vmem:[#allocation10 + $0x240] ss:$16 sps:$4 sm:$0xff]  }
  0xc5   :  { %v4459_v19 = vpop.eup %4458  ;;  %v3900_v34 = vld [vmem:[#allocation10 + $0x264] ss:$16 sps:$4 sm:$0xff]   ;;  %v3913_v35 = vld [vmem:[#allocation10 + $0x120] ss:$16 sps:$4 sm:$0xff]   ;;  %p4693_p13 = por %p4692_p12, %p4691_p11 }
  0xc6   :  { %2268 = vmatpush1.bf16.msra.mxu0 %v3877_v13  ;;  %v167_v20 = vadd.f32 1.0, %v4459_v19  ;;  %v3914_v36 = vld [vmem:[#allocation10 + $0x144] ss:$16 sps:$4 sm:$0xff]   ;;  %v3898_v37 = vld [vmem:[#allocation10 + $0x260] ss:$16 sps:$4 sm:$0xff]  }
  0xc7   :  { %2269 = vmatprep.subr.bf16.mxu0 %v3878_v14  ;;  %v3906_v38 = vld [vmem:[#allocation10 + $0x284] ss:$16 sps:$4 sm:$0xff]   ;;  %v3919_v39 = vld [vmem:[#allocation10 + $0x140] ss:$16 sps:$4 sm:$0xff]   ;;  %v4461_v59 = vpop.eup %4460  ;;  %v3961_v19 = vld [vmem:[#allocation10 + $0x2c] ss:$16 sps:$4 sm:$0xff]   ;;  %p4694_p0 = pnand %p4693_p13, %p4687_p10 }
  0xc8   :  { %v168_v24 = vmul.f32 %v167_v20, %v165_v12  ;;  %v3920_v41 = vld [vmem:[#allocation10 + $0x164] ss:$16 sps:$4 sm:$0xff]   ;;  %v3904_v43 = vld [vmem:[#allocation10 + $0x280] ss:$16 sps:$4 sm:$0xff]   ;;  %v248_v61 = vadd.f32 1.0, %v4461_v59 }
  0xc9   :  { %v3912_v44 = vld [vmem:[#allocation10 + $0x2a4] ss:$16 sps:$4 sm:$0xff]   ;;  %v3925_v45 = vld [vmem:[#allocation10 + $0x160] ss:$16 sps:$4 sm:$0xff]   ;;  %v4015_v59 = vld [vmem:[#allocation10 + $0x14c] ss:$16 sps:$4 sm:$0xff]  }
  0xca   :  { %2270 = vmatpush1.bf16.msra.mxu0 %v3883_v15  ;;  %v169_v26 = vpack.c.bf16 %v168_v24, %v168_v24  ;;  %v3926_v46 = vld [vmem:[#allocation10 + $0x184] ss:$16 sps:$4 sm:$0xff]   ;;  %v3910_v50 = vld [vmem:[#allocation10 + $0x2a0] ss:$16 sps:$4 sm:$0xff]   ;;  %v251_v2 = vmul.f32 %v248_v61, %v242_v42  ;;  %v3989_v42 = vld [vmem:[#allocation10 + $0xc8] ss:$16 sps:$4 sm:$0xff]  }
  0xcb   :  { %2271 = vmatprep.subr.bf16.mxu0 %v3884_v16  ;;  %v3918_v51 = vld [vmem:[#allocation10 + $0x2c4] ss:$16 sps:$4 sm:$0xff]   ;;  %v3931_v52 = vld [vmem:[#allocation10 + $0x180] ss:$16 sps:$4 sm:$0xff]  }
  0xcc   :  { %3800 = vmatmul.mubr.msk.bf16.vlgmr.msra.gmra.mrb[0].mxu1 %vm193_vm1, %v169_v26  ;;  %v3932_v53 = vld [vmem:[#allocation10 + $0x1a4] ss:$16 sps:$4 sm:$0xff]   ;;  %v3916_v56 = vld [vmem:[#allocation10 + $0x2c0] ss:$16 sps:$4 sm:$0xff]   ;;  %v257_v4 = vcombine.high %v251_v2, %v251_v2  ;;  %v264_v5 = vrot.slane %v251_v2, %v4956_v62  ;;  %v3965_v26 = vld [vmem:[#allocation10 + $0x48] ss:$16 sps:$4 sm:$0xff]  }
  0xcd   :  { %2303 = vmatpush1.bf16.msra.mxu1 %v3880_v23  ;;  %v3924_v57 = vld [vmem:[#allocation10 + $0x2e4] ss:$16 sps:$4 sm:$0xff]   ;;  %v3937_v58 = vld [vmem:[#allocation10 + $0x1a0] ss:$16 sps:$4 sm:$0xff]   ;;  %v3967_v23 = vld [vmem:[#allocation10 + $0x4c] ss:$16 sps:$4 sm:$0xff]  }
  0xce   :  { %2272 = vmatpush1.bf16.msra.mxu0 %v3889_v17  ;;  %2304 = vmatprep.subr.bf16.mxu1 %v3888_v25  ;;  %v3938_v60 = vld [vmem:[#allocation10 + $0x1c4] ss:$16 sps:$4 sm:$0xff]   ;;  %v3922_v63 = vld [vmem:[#allocation10 + $0x2e0] ss:$16 sps:$4 sm:$0xff]   ;;  %v272_v9 = vcombine.high %v264_v5, %v264_v5  ;;  %v4960_v10 = vrot.slane %v257_v4, %v4956_v62  ;;  %v4964_v15 = vpack.c.bf16 %v264_v5, %v264_v5  ;;  %v3953_v17 = vld [vmem:[#allocation10 + $0x8] ss:$16 sps:$4 sm:$0xff]  }
  0xcf   :  { %2273 = vmatprep.subr.bf16.mxu0 %v3890_v18  ;;  %v3930_v0 = vld [vmem:[#allocation10 + $0x304] ss:$16 sps:$4 sm:$0xff]   ;;  %v3943_v1 = vld [vmem:[#allocation10 + $0x1c0] ss:$16 sps:$4 sm:$0xff]   ;;  %v4019_v4 = vld [vmem:[#allocation10 + $0x168] ss:$16 sps:$4 sm:$0xff]  }
  0xd0   :  { %v3944_v3 = vld [vmem:[#allocation10 + $0x1e4] ss:$16 sps:$4 sm:$0xff]   ;;  %v3928_v6 = vld [vmem:[#allocation10 + $0x300] ss:$16 sps:$4 sm:$0xff]   ;;  %v310_v12 = vpack.c.bf16 %v272_v9, %v272_v9  ;;  %v273_v13 = vcombine.high %v4960_v10, %v4960_v10 }
  0xd1   :  { %2305 = vmatpush1.bf16.msra.mxu1 %v3886_v29  ;;  %v3936_v7 = vld [vmem:[#allocation10 + $0x324] ss:$16 sps:$4 sm:$0xff]   ;;  %v3949_v8 = vld [vmem:[#allocation10 + $0x1e0] ss:$16 sps:$4 sm:$0xff]  }
  0xd2   :  { %2274 = vmatpush1.bf16.msra.mxu0 %v3895_v21  ;;  %2306 = vmatprep.subr.bf16.mxu1 %v3894_v30  ;;  %v3934_v14 = vld [vmem:[#allocation10 + $0x320] ss:$16 sps:$4 sm:$0xff]   ;;  %v3942_v16 = vld [vmem:[#allocation10 + $0x344] ss:$16 sps:$4 sm:$0xff]   ;;  %v4966_v18 = vpack.c.bf16 %v273_v13, %v273_v13  ;;  %v3971_v30 = vld [vmem:[#allocation10 + $0x68] ss:$16 sps:$4 sm:$0xff]  }
  0xd3   :  { %2275 = vmatprep.subr.bf16.mxu0 %v3896_v22  ;;  %2293 = vmatprep.mubr.bf16.mxu0 %v310_v12  ;;  %v3940_v20 = vld [vmem:[#allocation10 + $0x340] ss:$16 sps:$4 sm:$0xff]   ;;  %v3948_v21 = vld [vmem:[#allocation10 + $0x364] ss:$16 sps:$4 sm:$0xff]   ;;  %v3959_v22 = vld [vmem:[#allocation10 + $0x28] ss:$16 sps:$4 sm:$0xff]  }
  0xd4   :  { %2334 = vmatprep.mubr.bf16.mxu1 %v4966_v18  ;;  %v3946_v24 = vld [vmem:[#allocation10 + $0x360] ss:$16 sps:$4 sm:$0xff]   ;;  %v3952_v25 = vld [vmem:[#allocation10 + $0x384] ss:$16 sps:$4 sm:$0xff]  }
  0xd5   :  { %2307 = vmatpush1.bf16.msra.mxu1 %v3892_v33  ;;  %v3958_v29 = vld [vmem:[#allocation10 + $0x3a4] ss:$16 sps:$4 sm:$0xff]   ;;  %v3968_v40 = vld [vmem:[#allocation10 + $0x3e0] ss:$16 sps:$4 sm:$0xff]  }
  0xd6   :  { %2276 = vmatpush1.bf16.msra.mxu0 %v3901_v27  ;;  %2308 = vmatprep.subr.bf16.mxu1 %v3900_v34  ;;  %v3973_v27 = vld [vmem:[#allocation10 + $0x6c] ss:$16 sps:$4 sm:$0xff]   ;;  %v3964_v33 = vld [vmem:[#allocation10 + $0x3c4] ss:$16 sps:$4 sm:$0xff]   ;;  %v3977_v34 = vld [vmem:[#allocation10 + $0x88] ss:$16 sps:$4 sm:$0xff]  }
  0xd7   :  { %2277 = vmatprep.subr.bf16.mxu0 %v3902_v28  ;;  %v3950_v28 = vld [vmem:[#allocation10 + $0x380] ss:$16 sps:$4 sm:$0xff]   ;;  %v240_v49 = vld [vmem:[#allocation8 + $0x8] sm:$0xff] }
  0xd8   :  { %v4000_v61 = vld [vmem:[#allocation10 + $0x484] ss:$16 sps:$4 sm:$0xff]   ;;  %v3998_v2 = vld [vmem:[#allocation10 + $0x480] ss:$16 sps:$4 sm:$0xff]  }
  0xd9   :  { %2309 = vmatpush1.bf16.msra.mxu1 %v3898_v37  ;;  %v3970_v37 = vld [vmem:[#allocation10 + $0x3e4] ss:$16 sps:$4 sm:$0xff]  }
  0xda   :  { %2278 = vmatpush1.bf16.msra.mxu0 %v3907_v31  ;;  %2310 = vmatprep.subr.bf16.mxu1 %v3906_v38  ;;  %v3979_v31 = vld [vmem:[#allocation10 + $0x8c] ss:$16 sps:$4 sm:$0xff]   ;;  %v3983_v38 = vld [vmem:[#allocation10 + $0xa8] ss:$16 sps:$4 sm:$0xff]   ;;  %v4012_v9 = vld [vmem:[#allocation10 + $0x4c4] ss:$16 sps:$4 sm:$0xff]  }
  0xdb   :  { %2279 = vmatprep.subr.bf16.mxu0 %v3908_v32  ;;  %v3956_v32 = vld [vmem:[#allocation10 + $0x3a0] ss:$16 sps:$4 sm:$0xff]  }
  0xdd   :  { %2311 = vmatpush1.bf16.msra.mxu1 %v3904_v43  ;;  %v3997_v43 = vld [vmem:[#allocation10 + $0xec] ss:$16 sps:$4 sm:$0xff]  }
  0xde   :  { %2280 = vmatpush1.bf16.msra.mxu0 %v3913_v35  ;;  %2312 = vmatprep.subr.bf16.mxu1 %v3912_v44  ;;  %v3985_v35 = vld [vmem:[#allocation10 + $0xac] ss:$16 sps:$4 sm:$0xff]   ;;  %v4972_v44 = vpack.c.bf16 %v4960_v10, %v4960_v10  ;;  %v4025_v10 = vld [vmem:[#allocation10 + $0x188] ss:$16 sps:$4 sm:$0xff]  }
  0xdf   :  { %2281 = vmatprep.subr.bf16.mxu0 %v3914_v36  ;;  %v3962_v36 = vld [vmem:[#allocation10 + $0x3c0] ss:$16 sps:$4 sm:$0xff]  }
  0xe1   :  { %2313 = vmatpush1.bf16.msra.mxu1 %v3910_v50  ;;  %v3980_v50 = vld [vmem:[#allocation10 + $0x420] ss:$16 sps:$4 sm:$0xff]  }
  0xe2   :  { %2282 = vmatpush1.bf16.msra.mxu0 %v3919_v39  ;;  %2314 = vmatprep.subr.bf16.mxu1 %v3918_v51  ;;  %v3991_v39 = vld [vmem:[#allocation10 + $0xcc] ss:$16 sps:$4 sm:$0xff]   ;;  %v3988_v51 = vld [vmem:[#allocation10 + $0x444] ss:$16 sps:$4 sm:$0xff]  }
  0xe3   :  { %2283 = vmatprep.subr.bf16.mxu0 %v3920_v41  ;;  %v3976_v41 = vld [vmem:[#allocation10 + $0x404] ss:$16 sps:$4 sm:$0xff]  }
  0xe5   :  { %2315 = vmatpush1.bf16.msra.mxu1 %v3916_v56  ;;  %v3986_v56 = vld [vmem:[#allocation10 + $0x440] ss:$16 sps:$4 sm:$0xff]  }
  0xe6   :  { %2284 = vmatpush1.bf16.msra.mxu0 %v3925_v45  ;;  %2316 = vmatprep.subr.bf16.mxu1 %v3924_v57  ;;  %v3974_v45 = vld [vmem:[#allocation10 + $0x400] ss:$16 sps:$4 sm:$0xff]   ;;  %v3994_v57 = vld [vmem:[#allocation10 + $0x464] ss:$16 sps:$4 sm:$0xff]  }
  0xe7   :  { %2285 = vmatprep.subr.bf16.mxu0 %v3926_v46  ;;  %v3982_v46 = vld [vmem:[#allocation10 + $0x424] ss:$16 sps:$4 sm:$0xff]  }
  0xe9   :  { %2317 = vmatpush1.bf16.msra.mxu1 %v3922_v63  ;;  %v4013_v63 = vld [vmem:[#allocation10 + $0x148] ss:$16 sps:$4 sm:$0xff]  }
  0xea   :  { %2286 = vmatpush1.bf16.msra.mxu0 %v3931_v52  ;;  %2318 = vmatprep.subr.bf16.mxu1 %v3930_v0  ;;  %v243_v52 = vmul.f32 0.5, %v240_v49  ;;  %v4021_v0 = vld [vmem:[#allocation10 + $0x16c] ss:$16 sps:$4 sm:$0xff]   ;;  %v4058_v49 = vld [vmem:[#allocation10 + $0x5c0] ss:$16 sps:$4 sm:$0xff]  }
  0xeb   :  { %2287 = vmatprep.subr.bf16.mxu0 %v3932_v53  ;;  %v4001_v53 = vld [vmem:[#allocation10 + $0x108] ss:$16 sps:$4 sm:$0xff]  }
  0xec   :  { %4462 = vtanh.f32 %v243_v52 }
  0xed   :  { %2319 = vmatpush1.bf16.msra.mxu1 %v3928_v6  ;;  %v4027_v6 = vld [vmem:[#allocation10 + $0x18c] ss:$16 sps:$4 sm:$0xff]  }
  0xee   :  { %2288 = vmatpush1.bf16.msra.mxu0 %v3937_v58  ;;  %2320 = vmatprep.subr.bf16.mxu1 %v3936_v7  ;;  %v4007_v58 = vld [vmem:[#allocation10 + $0x128] ss:$16 sps:$4 sm:$0xff]  }
  0xef   :  { %2289 = vmatprep.subr.bf16.mxu0 %v3938_v60  ;;  %v3992_v60 = vld [vmem:[#allocation10 + $0x460] ss:$16 sps:$4 sm:$0xff]  }
  0xf1   :  { %2321 = vmatpush1.bf16.msra.mxu1 %v3934_v14  ;;  %v4010_v14 = vld [vmem:[#allocation10 + $0x4c0] ss:$16 sps:$4 sm:$0xff]  }
  0xf2   :  { %2290 = vmatpush1.bf16.msra.mxu0 %v3943_v1  ;;  %2322 = vmatprep.subr.bf16.mxu1 %v3942_v16  ;;  %v4018_v16 = vld [vmem:[#allocation10 + $0x4e4] ss:$16 sps:$4 sm:$0xff]  }
  0xf3   :  { %2291 = vmatprep.subr.bf16.mxu0 %v3944_v3  ;;  %v4006_v3 = vld [vmem:[#allocation10 + $0x4a4] ss:$16 sps:$4 sm:$0xff]  }
  0xf5   :  { %2323 = vmatpush1.bf16.msra.mxu1 %v3940_v20  ;;  %v4039_v20 = vld [vmem:[#allocation10 + $0x1cc] ss:$16 sps:$4 sm:$0xff]  }
  0xf6   :  { %2292 = vmatpush1.bf16.msra.mxu0 %v3949_v8  ;;  %2324 = vmatprep.subr.bf16.mxu1 %v3948_v21  ;;  %v4463_v1 = vpop.eup %4462  ;;  %v4004_v8 = vld [vmem:[#allocation10 + $0x4a0] ss:$16 sps:$4 sm:$0xff]  }
  0xf7   :  { %2466 = vmatprep.subr.bf16.mxu0 %v3955_v11  ;;  %v249_v5 = vadd.f32 1.0, %v4463_v1  ;;  %v4016_v21 = vld [vmem:[#allocation10 + $0x4e0] ss:$16 sps:$4 sm:$0xff]   ;;  %v4091_v1 = vld [vmem:[#allocation10 + $0x2e8] ss:$16 sps:$4 sm:$0xff]  }
  0xf9   :  { %2294 = vmatmul.mubr.bf16.vlgmr.msra.gmra.mrb[0].mxu0 %v4964_v15  ;;  %2325 = vmatpush1.bf16.msra.mxu1 %v3946_v24  ;;  %v4975_v7 = vmul.f32 %v249_v5, %v243_v52  ;;  %v4045_v24 = vld [vmem:[#allocation10 + $0x1ec] ss:$16 sps:$4 sm:$0xff]   ;;  %v4079_v52 = vld [vmem:[#allocation10 + $0x2a8] ss:$16 sps:$4 sm:$0xff]  }
  0xfa   :  { %2467 = vmatpush1.bf16.msra.mxu0 %v3953_v17  ;;  %2498 = vmatprep.mubr.bf16.mxu0 %v310_v12  ;;  %v4033_v12 = vld [vmem:[#allocation10 + $0x1ac] ss:$16 sps:$4 sm:$0xff]   ;;  %v4031_v17 = vld [vmem:[#allocation10 + $0x1a8] ss:$16 sps:$4 sm:$0xff]  }
  0xfb   :  { %2468 = vmatprep.subr.bf16.mxu0 %v3961_v19  ;;  %2326 = vmatprep.subr.bf16.mxu1 %v3952_v25  ;;  %v4979_v11 = vrot.slane %v4975_v7, %v4956_v62  ;;  %v4022_v25 = vld [vmem:[#allocation10 + $0x500] ss:$16 sps:$4 sm:$0xff]   ;;  %v4097_v5 = vld [vmem:[#allocation10 + $0x308] ss:$16 sps:$4 sm:$0xff]  }
  0xfd   :  { %2327 = vmatpush1.bf16.msra.mxu1 %v3950_v28  ;;  %v289_v13 = vcombine.high %v4979_v11, %v4979_v11  ;;  %v4051_v28 = vld [vmem:[#allocation10 + $0x20c] ss:$16 sps:$4 sm:$0xff]  }
  0xfe   :  { %2469 = vmatpush1.bf16.msra.mxu0 %v3959_v22  ;;  %2328 = vmatprep.subr.bf16.mxu1 %v3958_v29  ;;  %v4024_v22 = vld [vmem:[#allocation10 + $0x504] ss:$16 sps:$4 sm:$0xff]   ;;  %v4028_v29 = vld [vmem:[#allocation10 + $0x520] ss:$16 sps:$4 sm:$0xff]  }
  0xff   :  { %2470 = vmatprep.subr.bf16.mxu0 %v3967_v23  ;;  %v4983_v19 = vpack.c.bf16 %v289_v13, %v289_v13  ;;  %v4037_v23 = vld [vmem:[#allocation10 + $0x1c8] ss:$16 sps:$4 sm:$0xff]  }
 0x100   :  { %v4109_v13 = vld [vmem:[#allocation10 + $0x348] ss:$16 sps:$4 sm:$0xff]  }
 0x101   :  { %2329 = vmatpush1.bf16.msra.mxu1 %v3956_v32  ;;  %v4057_v32 = vld [vmem:[#allocation10 + $0x22c] ss:$16 sps:$4 sm:$0xff]  }
 0x102   :  { %2471 = vmatpush1.bf16.msra.mxu0 %v3965_v26  ;;  %2330 = vmatprep.subr.bf16.mxu1 %v3964_v33  ;;  %v4030_v26 = vld [vmem:[#allocation10 + $0x524] ss:$16 sps:$4 sm:$0xff]   ;;  %v4034_v33 = vld [vmem:[#allocation10 + $0x540] ss:$16 sps:$4 sm:$0xff]  }
 0x103   :  { %2472 = vmatprep.subr.bf16.mxu0 %v3973_v27  ;;  %v4043_v27 = vld [vmem:[#allocation10 + $0x1e8] ss:$16 sps:$4 sm:$0xff]  }
 0x105   :  { %2331 = vmatpush1.bf16.msra.mxu1 %v3962_v36  ;;  %v4063_v36 = vld [vmem:[#allocation10 + $0x24c] ss:$16 sps:$4 sm:$0xff]  }
 0x106   :  { %2473 = vmatpush1.bf16.msra.mxu0 %v3971_v30  ;;  %2332 = vmatprep.subr.bf16.mxu1 %v3970_v37  ;;  %v4036_v30 = vld [vmem:[#allocation10 + $0x544] ss:$16 sps:$4 sm:$0xff]   ;;  %v4040_v37 = vld [vmem:[#allocation10 + $0x560] ss:$16 sps:$4 sm:$0xff]  }
 0x107   :  { %2474 = vmatprep.subr.bf16.mxu0 %v3979_v31  ;;  %v4049_v31 = vld [vmem:[#allocation10 + $0x208] ss:$16 sps:$4 sm:$0xff]  }
 0x109   :  { %2333 = vmatpush1.bf16.msra.mxu1 %v3968_v40  ;;  %v4069_v40 = vld [vmem:[#allocation10 + $0x26c] ss:$16 sps:$4 sm:$0xff]  }
 0x10a   :  { %2475 = vmatpush1.bf16.msra.mxu0 %v3977_v34  ;;  %2343 = vmatprep.subr.bf16.mxu1 %v3976_v41  ;;  %v4042_v34 = vld [vmem:[#allocation10 + $0x564] ss:$16 sps:$4 sm:$0xff]   ;;  %v4046_v41 = vld [vmem:[#allocation10 + $0x580] ss:$16 sps:$4 sm:$0xff]  }
 0x10b   :  { %2476 = vmatprep.subr.bf16.mxu0 %v3985_v35  ;;  %v4055_v35 = vld [vmem:[#allocation10 + $0x228] ss:$16 sps:$4 sm:$0xff]  }
 0x10c   :  { %2335 = vmatmul.mubr.bf16.vlgmr.msra.gmra.mrb[4].mxu1 %v4972_v44 }
 0x10d   :  { %2344 = vmatpush1.bf16.msra.mxu1 %v3974_v45  ;;  %2375 = vmatprep.mubr.bf16.mxu1 %v4983_v19  ;;  %v4052_v45 = vld [vmem:[#allocation10 + $0x5a0] ss:$16 sps:$4 sm:$0xff]  }
 0x10e   :  { %2477 = vmatpush1.bf16.msra.mxu0 %v3983_v38  ;;  %2345 = vmatprep.subr.bf16.mxu1 %v3982_v46  ;;  %v4048_v38 = vld [vmem:[#allocation10 + $0x584] ss:$16 sps:$4 sm:$0xff]  }
 0x10f   :  { %2478 = vmatprep.subr.bf16.mxu0 %v3991_v39  ;;  %v4061_v39 = vld [vmem:[#allocation10 + $0x248] ss:$16 sps:$4 sm:$0xff]   ;;  %v4060_v46 = vld [vmem:[#allocation10 + $0x5c4] ss:$16 sps:$4 sm:$0xff]  }
 0x111   :  { %2346 = vmatpush1.bf16.msra.mxu1 %v3980_v50  ;;  %v4066_v50 = vld [vmem:[#allocation10 + $0x5e4] ss:$16 sps:$4 sm:$0xff]  }
 0x112   :  { %2479 = vmatpush1.bf16.msra.mxu0 %v3989_v42  ;;  %2347 = vmatprep.subr.bf16.mxu1 %v3988_v51  ;;  %v4054_v42 = vld [vmem:[#allocation10 + $0x5a4] ss:$16 sps:$4 sm:$0xff]  }
 0x113   :  { %2480 = vmatprep.subr.bf16.mxu0 %v3997_v43  ;;  %v4075_v43 = vld [vmem:[#allocation10 + $0x28c] ss:$16 sps:$4 sm:$0xff]  }
 0x115   :  { %2348 = vmatpush1.bf16.msra.mxu1 %v3986_v56  ;;  %v4072_v56 = vld [vmem:[#allocation10 + $0x604] ss:$16 sps:$4 sm:$0xff]  }
 0x116   :  { %2481 = vmatpush1.bf16.msra.mxu0 %v3995_v47  ;;  %2349 = vmatprep.subr.bf16.mxu1 %v3994_v57  ;;  %v4073_v47 = vld [vmem:[#allocation10 + $0x288] ss:$16 sps:$4 sm:$0xff]  }
 0x117   :  { %2482 = vmatprep.subr.bf16.mxu0 %v4003_v48  ;;  %v4081_v48 = vld [vmem:[#allocation10 + $0x2ac] ss:$16 sps:$4 sm:$0xff]  }
 0x119   :  { %2350 = vmatpush1.bf16.msra.mxu1 %v3992_v60  ;;  %v4997_v60 = vpack.c.bf16 %v4979_v11, %v4979_v11  ;;  %v4088_v11 = vld [vmem:[#allocation10 + $0x660] ss:$16 sps:$4 sm:$0xff]  }
 0x11a   :  { %2483 = vmatpush1.bf16.msra.mxu0 %v4001_v53  ;;  %2351 = vmatprep.subr.bf16.mxu1 %v4000_v61  ;;  %v4087_v53 = vld [vmem:[#allocation10 + $0x2cc] ss:$16 sps:$4 sm:$0xff]   ;;  %v4070_v61 = vld [vmem:[#allocation10 + $0x600] ss:$16 sps:$4 sm:$0xff]  }
 0x11b   :  { %2484 = vmatprep.subr.bf16.mxu0 %v4009_v54  ;;  %v4064_v54 = vld [vmem:[#allocation10 + $0x5e0] ss:$16 sps:$4 sm:$0xff]  }
 0x11d   :  { %2352 = vmatpush1.bf16.msra.mxu1 %v3998_v2  ;;  %v4099_v2 = vld [vmem:[#allocation10 + $0x30c] ss:$16 sps:$4 sm:$0xff]  }
 0x11e   :  { %2485 = vmatpush1.bf16.msra.mxu0 %v4007_v58  ;;  %2353 = vmatprep.subr.bf16.mxu1 %v4006_v3  ;;  %v4085_v58 = vld [vmem:[#allocation10 + $0x2c8] ss:$16 sps:$4 sm:$0xff]   ;;  %v4076_v3 = vld [vmem:[#allocation10 + $0x620] ss:$16 sps:$4 sm:$0xff]  }
 0x11f   :  { %2486 = vmatprep.subr.bf16.mxu0 %v4015_v59  ;;  %v4093_v59 = vld [vmem:[#allocation10 + $0x2ec] ss:$16 sps:$4 sm:$0xff]  }
 0x121   :  { %2354 = vmatpush1.bf16.msra.mxu1 %v4004_v8  ;;  %v4090_v8 = vld [vmem:[#allocation10 + $0x664] ss:$16 sps:$4 sm:$0xff]  }
 0x122   :  { %2487 = vmatpush1.bf16.msra.mxu0 %v4013_v63  ;;  %2355 = vmatprep.subr.bf16.mxu1 %v4012_v9  ;;  %v4078_v63 = vld [vmem:[#allocation10 + $0x624] ss:$16 sps:$4 sm:$0xff]   ;;  %v4103_v9 = vld [vmem:[#allocation10 + $0x328] ss:$16 sps:$4 sm:$0xff]  }
 0x123   :  { %2488 = vmatprep.subr.bf16.mxu0 %v4021_v0 }
 0x125   :  { %2356 = vmatpush1.bf16.msra.mxu1 %v4010_v14  ;;  %v4117_v14 = vld [vmem:[#allocation10 + $0x36c] ss:$16 sps:$4 sm:$0xff]  }
 0x126   :  { %2489 = vmatpush1.bf16.msra.mxu0 %v4019_v4  ;;  %2357 = vmatprep.subr.bf16.mxu1 %v4018_v16  ;;  %v4084_v4 = vld [vmem:[#allocation10 + $0x644] ss:$16 sps:$4 sm:$0xff]   ;;  %v4094_v16 = vld [vmem:[#allocation10 + $0x680] ss:$16 sps:$4 sm:$0xff]  }
 0x127   :  { %2490 = vmatprep.subr.bf16.mxu0 %v4027_v6  ;;  %v4105_v6 = vld [vmem:[#allocation10 + $0x32c] ss:$16 sps:$4 sm:$0xff]  }
 0x129   :  { %2358 = vmatpush1.bf16.msra.mxu1 %v4016_v21  ;;  %v4123_v21 = vld [vmem:[#allocation10 + $0x38c] ss:$16 sps:$4 sm:$0xff]  }
 0x12a   :  { %2491 = vmatpush1.bf16.msra.mxu0 %v4025_v10  ;;  %2359 = vmatprep.subr.bf16.mxu1 %v4024_v22  ;;  %v4111_v10 = vld [vmem:[#allocation10 + $0x34c] ss:$16 sps:$4 sm:$0xff]   ;;  %v4100_v22 = vld [vmem:[#allocation10 + $0x6a0] ss:$16 sps:$4 sm:$0xff]  }
 0x12b   :  { %2492 = vmatprep.subr.bf16.mxu0 %v4033_v12  ;;  %v4096_v12 = vld [vmem:[#allocation10 + $0x684] ss:$16 sps:$4 sm:$0xff]  }
 0x12d   :  { %2360 = vmatpush1.bf16.msra.mxu1 %v4022_v25  ;;  %v4129_v25 = vld [vmem:[#allocation10 + $0x3ac] ss:$16 sps:$4 sm:$0xff]  }
 0x12e   :  { %2493 = vmatpush1.bf16.msra.mxu0 %v4031_v17  ;;  %2361 = vmatprep.subr.bf16.mxu1 %v4030_v26  ;;  %v4102_v17 = vld [vmem:[#allocation10 + $0x6a4] ss:$16 sps:$4 sm:$0xff]   ;;  %v4106_v26 = vld [vmem:[#allocation10 + $0x6c0] ss:$16 sps:$4 sm:$0xff]  }
 0x12f   :  { %2494 = vmatprep.subr.bf16.mxu0 %v4039_v20  ;;  %v4115_v20 = vld [vmem:[#allocation10 + $0x368] ss:$16 sps:$4 sm:$0xff]  }
 0x131   :  { %2362 = vmatpush1.bf16.msra.mxu1 %v4028_v29  ;;  %v4135_v29 = vld [vmem:[#allocation10 + $0x3cc] ss:$16 sps:$4 sm:$0xff]  }
 0x132   :  { %2495 = vmatpush1.bf16.msra.mxu0 %v4037_v23  ;;  %2363 = vmatprep.subr.bf16.mxu1 %v4036_v30  ;;  %v4108_v23 = vld [vmem:[#allocation10 + $0x6c4] ss:$16 sps:$4 sm:$0xff]   ;;  %v4112_v30 = vld [vmem:[#allocation10 + $0x6e0] ss:$16 sps:$4 sm:$0xff]  }
 0x133   :  { %2496 = vmatprep.subr.bf16.mxu0 %v4045_v24  ;;  %v4121_v24 = vld [vmem:[#allocation10 + $0x388] ss:$16 sps:$4 sm:$0xff]  }
 0x135   :  { %2364 = vmatpush1.bf16.msra.mxu1 %v4034_v33  ;;  %v4133_v33 = vld [vmem:[#allocation10 + $0x3c8] ss:$16 sps:$4 sm:$0xff]  }
 0x136   :  { %2497 = vmatpush1.bf16.msra.mxu0 %v4043_v27  ;;  %2365 = vmatprep.subr.bf16.mxu1 %v4042_v34  ;;  %v4114_v27 = vld [vmem:[#allocation10 + $0x6e4] ss:$16 sps:$4 sm:$0xff]   ;;  %v4141_v34 = vld [vmem:[#allocation10 + $0x3ec] ss:$16 sps:$4 sm:$0xff]  }
 0x137   :  { %2507 = vmatprep.subr.bf16.mxu0 %v4051_v28  ;;  %v4127_v28 = vld [vmem:[#allocation10 + $0x3a8] ss:$16 sps:$4 sm:$0xff]  }
 0x139   :  { %2499 = vmatmul.mubr.bf16.vlgmr.msra.gmra.mrb[4].mxu0 %v4964_v15  ;;  %2366 = vmatpush1.bf16.msra.mxu1 %v4040_v37  ;;  %v4067_v15 = vld [vmem:[#allocation10 + $0x268] ss:$16 sps:$4 sm:$0xff]   ;;  %v4126_v37 = vld [vmem:[#allocation10 + $0x724] ss:$16 sps:$4 sm:$0xff]  }
 0x13a   :  { %2508 = vmatpush1.bf16.msra.mxu0 %v4049_v31  ;;  %2539 = vmatprep.mubr.bf16.mxu0 %v4966_v18  ;;  %v274_v18 = vcombine.high %v4975_v7, %v4975_v7  ;;  %v4082_v7 = vld [vmem:[#allocation10 + $0x640] ss:$16 sps:$4 sm:$0xff]   ;;  %v241_v31 = vld [vmem:[#allocation8 + $0x10] sm:$0xf] }
 0x13b   :  { %2509 = vmatprep.subr.bf16.mxu0 %v4057_v32  ;;  %2367 = vmatprep.subr.bf16.mxu1 %v4048_v38  ;;  %v4120_v32 = vld [vmem:[#allocation10 + $0x704] ss:$16 sps:$4 sm:$0xff]   ;;  %v4139_v38 = vld [vmem:[#allocation10 + $0x3e8] ss:$16 sps:$4 sm:$0xff]  }
 0x13c   :  { %v4991_v51 = vrot.slane %v274_v18, %v4956_v62  ;;  %v4159_v18 = vld [vmem:[#allocation10 + $0x44c] ss:$16 sps:$4 sm:$0xff]  }
 0x13d   :  { %2368 = vmatpush1.bf16.msra.mxu1 %v4046_v41  ;;  %v4132_v41 = vld [vmem:[#allocation10 + $0x744] ss:$16 sps:$4 sm:$0xff]  }
 0x13e   :  { %2510 = vmatpush1.bf16.msra.mxu0 %v4055_v35  ;;  %2369 = vmatprep.subr.bf16.mxu1 %v4054_v42  ;;  %v290_v57 = vcombine.high %v4991_v51, %v4991_v51  ;;  %v244_v35 = vmul.f32 0.5, %v241_v31  ;;  %v4145_v42 = vld [vmem:[#allocation10 + $0x408] ss:$16 sps:$4 sm:$0xff]   ;;  %v4198_v31 = vld [vmem:[#allocation10 + $0x8a4] ss:$16 sps:$4 sm:$0xff]  }
 0x13f   :  { %2511 = vmatprep.subr.bf16.mxu0 %v4063_v36  ;;  %v4118_v36 = vld [vmem:[#allocation10 + $0x700] ss:$16 sps:$4 sm:$0xff]  }
 0x140   :  { %v4999_v0 = vpack.c.bf16 %v290_v57, %v290_v57  ;;  %4464 = vtanh.f32 %v244_v35  ;;  %v4171_v57 = vld [vmem:[#allocation10 + $0x48c] ss:$16 sps:$4 sm:$0xff]  }
 0x141   :  { %2370 = vmatpush1.bf16.msra.mxu1 %v4052_v45  ;;  %v4138_v45 = vld [vmem:[#allocation10 + $0x764] ss:$16 sps:$4 sm:$0xff]  }
 0x142   :  { %2512 = vmatpush1.bf16.msra.mxu0 %v4061_v39  ;;  %2371 = vmatprep.subr.bf16.mxu1 %v4060_v46  ;;  %v4147_v39 = vld [vmem:[#allocation10 + $0x40c] ss:$16 sps:$4 sm:$0xff]   ;;  %v4151_v46 = vld [vmem:[#allocation10 + $0x428] ss:$16 sps:$4 sm:$0xff]  }
 0x143   :  { %2513 = vmatprep.subr.bf16.mxu0 %v4069_v40  ;;  %v4124_v40 = vld [vmem:[#allocation10 + $0x720] ss:$16 sps:$4 sm:$0xff]  }
 0x145   :  { %2372 = vmatpush1.bf16.msra.mxu1 %v4058_v49 }
 0x146   :  { %2514 = vmatpush1.bf16.msra.mxu0 %v4067_v15  ;;  %2373 = vmatprep.subr.bf16.mxu1 %v4066_v50  ;;  %v4153_v15 = vld [vmem:[#allocation10 + $0x42c] ss:$16 sps:$4 sm:$0xff]   ;;  %v4157_v50 = vld [vmem:[#allocation10 + $0x448] ss:$16 sps:$4 sm:$0xff]  }
 0x147   :  { %2515 = vmatprep.subr.bf16.mxu0 %v4075_v43  ;;  %v4130_v43 = vld [vmem:[#allocation10 + $0x740] ss:$16 sps:$4 sm:$0xff]  }
 0x149   :  { %2374 = vmatpush1.bf16.msra.mxu1 %v4064_v54  ;;  %v4150_v54 = vld [vmem:[#allocation10 + $0x7a4] ss:$16 sps:$4 sm:$0xff]  }
 0x14a   :  { %2516 = vmatpush1.bf16.msra.mxu0 %v4073_v47  ;;  %2384 = vmatprep.subr.bf16.mxu1 %v4072_v56  ;;  %v4136_v47 = vld [vmem:[#allocation10 + $0x760] ss:$16 sps:$4 sm:$0xff]   ;;  %v4465_v49 = vpop.eup %4464  ;;  %v4163_v56 = vld [vmem:[#allocation10 + $0x468] ss:$16 sps:$4 sm:$0xff]  }
 0x14b   :  { %2517 = vmatprep.subr.bf16.mxu0 %v4081_v48  ;;  %v4144_v48 = vld [vmem:[#allocation10 + $0x784] ss:$16 sps:$4 sm:$0xff]  }
 0x14c   :  { %2376 = vmatmul.mubr.bf16.vlgmr.msra.gmra.mrb[4].mxu1 %v4997_v60 }
 0x14d   :  { %2385 = vmatpush1.bf16.msra.mxu1 %v4070_v61  ;;  %2416 = vmatprep.mubr.bf16.mxu1 %v4999_v0  ;;  %v4169_v61 = vld [vmem:[#allocation10 + $0x488] ss:$16 sps:$4 sm:$0xff]  }
 0x14e   :  { %2518 = vmatpush1.bf16.msra.mxu0 %v4079_v52  ;;  %2386 = vmatprep.subr.bf16.mxu1 %v4078_v63  ;;  %v4165_v52 = vld [vmem:[#allocation10 + $0x46c] ss:$16 sps:$4 sm:$0xff]  }
 0x14f   :  { %2519 = vmatprep.subr.bf16.mxu0 %v4087_v53  ;;  %v4142_v53 = vld [vmem:[#allocation10 + $0x780] ss:$16 sps:$4 sm:$0xff]   ;;  %v4177_v63 = vld [vmem:[#allocation10 + $0x4ac] ss:$16 sps:$4 sm:$0xff]  }
 0x151   :  { %2387 = vmatpush1.bf16.msra.mxu1 %v4076_v3 }
 0x152   :  { %2520 = vmatpush1.bf16.msra.mxu0 %v4085_v58  ;;  %2388 = vmatprep.subr.bf16.mxu1 %v4084_v4  ;;  %v4148_v58 = vld [vmem:[#allocation10 + $0x7a0] ss:$16 sps:$4 sm:$0xff]   ;;  %v4175_v4 = vld [vmem:[#allocation10 + $0x4a8] ss:$16 sps:$4 sm:$0xff]  }
 0x153   :  { %2521 = vmatprep.subr.bf16.mxu0 %v4093_v59 }
 0x155   :  { %2389 = vmatpush1.bf16.msra.mxu1 %v4082_v7  ;;  %v4168_v7 = vld [vmem:[#allocation10 + $0x804] ss:$16 sps:$4 sm:$0xff]  }
 0x156   :  { %2522 = vmatpush1.bf16.msra.mxu0 %v4091_v1  ;;  %2390 = vmatprep.subr.bf16.mxu1 %v4090_v8  ;;  %v4154_v1 = vld [vmem:[#allocation10 + $0x7c0] ss:$16 sps:$4 sm:$0xff]  }
 0x157   :  { %2523 = vmatprep.subr.bf16.mxu0 %v4099_v2  ;;  %v4162_v2 = vld [vmem:[#allocation10 + $0x7e4] ss:$16 sps:$4 sm:$0xff]  }
 0x159   :  { %2391 = vmatpush1.bf16.msra.mxu1 %v4088_v11  ;;  %v4166_v11 = vld [vmem:[#allocation10 + $0x800] ss:$16 sps:$4 sm:$0xff]  }
 0x15a   :  { %2524 = vmatpush1.bf16.msra.mxu0 %v4097_v5  ;;  %2392 = vmatprep.subr.bf16.mxu1 %v4096_v12  ;;  %v4183_v5 = vld [vmem:[#allocation10 + $0x4cc] ss:$16 sps:$4 sm:$0xff]   ;;  %v4174_v12 = vld [vmem:[#allocation10 + $0x824] ss:$16 sps:$4 sm:$0xff]  }
 0x15b   :  { %2525 = vmatprep.subr.bf16.mxu0 %v4105_v6  ;;  %v4160_v6 = vld [vmem:[#allocation10 + $0x7e0] ss:$16 sps:$4 sm:$0xff]  }
 0x15d   :  { %2393 = vmatpush1.bf16.msra.mxu1 %v4094_v16  ;;  %v4195_v16 = vld [vmem:[#allocation10 + $0x50c] ss:$16 sps:$4 sm:$0xff]  }
 0x15e   :  { %2526 = vmatpush1.bf16.msra.mxu0 %v4103_v9  ;;  %2394 = vmatprep.subr.bf16.mxu1 %v4102_v17  ;;  %v4181_v9 = vld [vmem:[#allocation10 + $0x4c8] ss:$16 sps:$4 sm:$0xff]   ;;  %v4172_v17 = vld [vmem:[#allocation10 + $0x820] ss:$16 sps:$4 sm:$0xff]  }
 0x15f   :  { %2527 = vmatprep.subr.bf16.mxu0 %v4111_v10  ;;  %v4189_v10 = vld [vmem:[#allocation10 + $0x4ec] ss:$16 sps:$4 sm:$0xff]  }
 0x161   :  { %2395 = vmatpush1.bf16.msra.mxu1 %v4100_v22  ;;  %v4178_v22 = vld [vmem:[#allocation10 + $0x840] ss:$16 sps:$4 sm:$0xff]  }
 0x162   :  { %2528 = vmatpush1.bf16.msra.mxu0 %v4109_v13  ;;  %2396 = vmatprep.subr.bf16.mxu1 %v4108_v23  ;;  %v4186_v23 = vld [vmem:[#allocation10 + $0x864] ss:$16 sps:$4 sm:$0xff]  }
 0x163   :  { %2529 = vmatprep.subr.bf16.mxu0 %v4117_v14  ;;  %v4187_v14 = vld [vmem:[#allocation10 + $0x4e8] ss:$16 sps:$4 sm:$0xff]  }
 0x165   :  { %2397 = vmatpush1.bf16.msra.mxu1 %v4106_v26  ;;  %v4184_v26 = vld [vmem:[#allocation10 + $0x860] ss:$16 sps:$4 sm:$0xff]  }
 0x166   :  { %2530 = vmatpush1.bf16.msra.mxu0 %v4115_v20  ;;  %2398 = vmatprep.subr.bf16.mxu1 %v4114_v27  ;;  %v4180_v20 = vld [vmem:[#allocation10 + $0x844] ss:$16 sps:$4 sm:$0xff]  }
 0x167   :  { %2531 = vmatprep.subr.bf16.mxu0 %v4123_v21  ;;  %v4201_v21 = vld [vmem:[#allocation10 + $0x52c] ss:$16 sps:$4 sm:$0xff]   ;;  %v4192_v27 = vld [vmem:[#allocation10 + $0x884] ss:$16 sps:$4 sm:$0xff]  }
 0x169   :  { %2399 = vmatpush1.bf16.msra.mxu1 %v4112_v30  ;;  %v4190_v30 = vld [vmem:[#allocation10 + $0x880] ss:$16 sps:$4 sm:$0xff]  }
 0x16a   :  { %2532 = vmatpush1.bf16.msra.mxu0 %v4121_v24  ;;  %2400 = vmatprep.subr.bf16.mxu1 %v4120_v32  ;;  %v4199_v24 = vld [vmem:[#allocation10 + $0x528] ss:$16 sps:$4 sm:$0xff]  }
 0x16b   :  { %2533 = vmatprep.subr.bf16.mxu0 %v4129_v25  ;;  %v4207_v25 = vld [vmem:[#allocation10 + $0x54c] ss:$16 sps:$4 sm:$0xff]   ;;  %v4211_v32 = vld [vmem:[#allocation10 + $0x568] ss:$16 sps:$4 sm:$0xff]  }
 0x16d   :  { %2401 = vmatpush1.bf16.msra.mxu1 %v4118_v36  ;;  %v4204_v36 = vld [vmem:[#allocation10 + $0x8c4] ss:$16 sps:$4 sm:$0xff]  }
 0x16e   :  { %2534 = vmatpush1.bf16.msra.mxu0 %v4127_v28  ;;  %2402 = vmatprep.subr.bf16.mxu1 %v4126_v37  ;;  %v4205_v28 = vld [vmem:[#allocation10 + $0x548] ss:$16 sps:$4 sm:$0xff]  }
 0x16f   :  { %2535 = vmatprep.subr.bf16.mxu0 %v4135_v29  ;;  %v4213_v29 = vld [vmem:[#allocation10 + $0x56c] ss:$16 sps:$4 sm:$0xff]   ;;  %v4217_v37 = vld [vmem:[#allocation10 + $0x588] ss:$16 sps:$4 sm:$0xff]  }
 0x171   :  { %2403 = vmatpush1.bf16.msra.mxu1 %v4124_v40 }
 0x172   :  { %2536 = vmatpush1.bf16.msra.mxu0 %v4133_v33  ;;  %2404 = vmatprep.subr.bf16.mxu1 %v4132_v41  ;;  %v4219_v33 = vld [vmem:[#allocation10 + $0x58c] ss:$16 sps:$4 sm:$0xff]   ;;  %v4210_v41 = vld [vmem:[#allocation10 + $0x8e4] ss:$16 sps:$4 sm:$0xff]  }
 0x173   :  { %2537 = vmatprep.subr.bf16.mxu0 %v4141_v34  ;;  %v4196_v34 = vld [vmem:[#allocation10 + $0x8a0] ss:$16 sps:$4 sm:$0xff]  }
 0x175   :  { %2405 = vmatpush1.bf16.msra.mxu1 %v4130_v43 }
 0x176   :  { %2538 = vmatpush1.bf16.msra.mxu0 %v4139_v38  ;;  %2406 = vmatprep.subr.bf16.mxu1 %v4138_v45  ;;  %v4225_v38 = vld [vmem:[#allocation10 + $0x5ac] ss:$16 sps:$4 sm:$0xff]   ;;  %v4223_v45 = vld [vmem:[#allocation10 + $0x5a8] ss:$16 sps:$4 sm:$0xff]  }
 0x177   :  { %2548 = vmatprep.subr.bf16.mxu0 %v4147_v39  ;;  %v4202_v39 = vld [vmem:[#allocation10 + $0x8c0] ss:$16 sps:$4 sm:$0xff]  }
 0x179   :  { %2540 = vmatmul.mubr.bf16.vlgmr.msra.gmra.mrb[4].mxu0 %v4972_v44  ;;  %2407 = vmatpush1.bf16.msra.mxu1 %v4136_v47  ;;  %v250_v44 = vadd.f32 1.0, %v4465_v49  ;;  %v4208_v47 = vld [vmem:[#allocation10 + $0x8e0] ss:$16 sps:$4 sm:$0xff]   ;;  %v4229_v49 = vld [vmem:[#allocation10 + $0x5c8] ss:$16 sps:$4 sm:$0xff]  }
 0x17a   :  { %2549 = vmatpush1.bf16.msra.mxu0 %v4145_v42  ;;  %2580 = vmatprep.mubr.bf16.mxu0 %v4983_v19  ;;  %v4156_v19 = vld [vmem:[#allocation10 + $0x7c4] ss:$16 sps:$4 sm:$0xff]  }
 0x17b   :  { %2550 = vmatprep.subr.bf16.mxu0 %v4153_v15  ;;  %2408 = vmatprep.subr.bf16.mxu1 %v4144_v48  ;;  %v253_v59 = vmul.f32 %v250_v44, %v244_v35  ;;  %v3365_v35 = vld [vmem:[#allocation7] ss:$0 sm:$0xff]  ;;  %v4216_v48 = vld [vmem:[#allocation10 + $0x904] ss:$16 sps:$4 sm:$0xff]   ;;  %v4243_v44 = vld [vmem:[#allocation10 + $0x60c] ss:$16 sps:$4 sm:$0xff]  }
 0x17d   :  { %2409 = vmatpush1.bf16.msra.mxu1 %v4142_v53  ;;  %v5006_v3 = vrot.slane %v253_v59, %v4956_v62  ;;  %v5012_v62 = vpack.c.bf16 %v4991_v51, %v4991_v51  ;;  %v4193_v51 = vld [vmem:[#allocation10 + $0x508] ss:$16 sps:$4 sm:$0xff]   ;;  %v4222_v53 = vld [vmem:[#allocation10 + $0x924] ss:$16 sps:$4 sm:$0xff]   ;;  %v4226_v59 = vld [vmem:[#allocation10 + $0x940] ss:$16 sps:$4 sm:$0xff]  }
 0x17e   :  { %2551 = vmatpush1.bf16.msra.mxu0 %v4151_v46  ;;  %2410 = vmatprep.subr.bf16.mxu1 %v4150_v54  ;;  %v4231_v46 = vld [vmem:[#allocation10 + $0x5cc] ss:$16 sps:$4 sm:$0xff]   ;;  %v4235_v54 = vld [vmem:[#allocation10 + $0x5e8] ss:$16 sps:$4 sm:$0xff]  }
 0x17f   :  { %2552 = vmatprep.subr.bf16.mxu0 %v4159_v18  ;;  %v298_v8 = vcombine.high %v5006_v3, %v5006_v3 }
 0x181   :  { %2411 = vmatpush1.bf16.msra.mxu1 %v4148_v58  ;;  %v5014_v13 = vpack.c.bf16 %v298_v8, %v298_v8  ;;  %v4241_v58 = vld [vmem:[#allocation10 + $0x608] ss:$16 sps:$4 sm:$0xff]  }
 0x182   :  { %2553 = vmatpush1.bf16.msra.mxu0 %v4157_v50  ;;  %2412 = vmatprep.subr.bf16.mxu1 %v4156_v19  ;;  %v4237_v50 = vld [vmem:[#allocation10 + $0x5ec] ss:$16 sps:$4 sm:$0xff]   ;;  %v4259_v8 = vld [vmem:[#allocation10 + $0x668] ss:$16 sps:$4 sm:$0xff]  }
 0x183   :  { %2554 = vmatprep.subr.bf16.mxu0 %v4165_v52  ;;  %v4214_v52 = vld [vmem:[#allocation10 + $0x900] ss:$16 sps:$4 sm:$0xff]   ;;  %v4249_v19 = vld [vmem:[#allocation10 + $0x62c] ss:$16 sps:$4 sm:$0xff]  }
 0x185   :  { %2413 = vmatpush1.bf16.msra.mxu1 %v4154_v1  ;;  %v4255_v1 = vld [vmem:[#allocation10 + $0x64c] ss:$16 sps:$4 sm:$0xff]  }
 0x186   :  { %2555 = vmatpush1.bf16.msra.mxu0 %v4163_v56  ;;  %2414 = vmatprep.subr.bf16.mxu1 %v4162_v2  ;;  %v4220_v56 = vld [vmem:[#allocation10 + $0x920] ss:$16 sps:$4 sm:$0xff]  }
 0x187   :  { %2556 = vmatprep.subr.bf16.mxu0 %v4171_v57  ;;  %v4228_v57 = vld [vmem:[#allocation10 + $0x944] ss:$16 sps:$4 sm:$0xff]   ;;  %v4232_v2 = vld [vmem:[#allocation10 + $0x960] ss:$16 sps:$4 sm:$0xff]  }
 0x189   :  { %2415 = vmatpush1.bf16.msra.mxu1 %v4160_v6  ;;  %v4261_v6 = vld [vmem:[#allocation10 + $0x66c] ss:$16 sps:$4 sm:$0xff]  }
 0x18a   :  { %2557 = vmatpush1.bf16.msra.mxu0 %v4169_v61  ;;  %2425 = vmatprep.subr.bf16.mxu1 %v4168_v7  ;;  %v4234_v61 = vld [vmem:[#allocation10 + $0x964] ss:$16 sps:$4 sm:$0xff]   ;;  %v4238_v7 = vld [vmem:[#allocation10 + $0x980] ss:$16 sps:$4 sm:$0xff]  }
 0x18b   :  { %2558 = vmatprep.subr.bf16.mxu0 %v4177_v63  ;;  %v4247_v63 = vld [vmem:[#allocation10 + $0x628] ss:$16 sps:$4 sm:$0xff]  }
 0x18c   :  { %2417 = vmatmul.mubr.bf16.vlgmr.msra.gmra.mrb[4].mxu1 %v5012_v62 }
 0x18d   :  { %2426 = vmatpush1.bf16.msra.mxu1 %v4166_v11  ;;  %2457 = vmatprep.mubr.bf16.mxu1 %v5014_v13  ;;  %v4262_v11 = vld [vmem:[#allocation10 + $0x688] ss:$16 sps:$4 sm:$0xff]  }
 0x18e   :  { %2559 = vmatpush1.bf16.msra.mxu0 %v4175_v4  ;;  %2427 = vmatprep.subr.bf16.mxu1 %v4174_v12  ;;  %v4240_v4 = vld [vmem:[#allocation10 + $0x984] ss:$16 sps:$4 sm:$0xff]   ;;  %v4267_v12 = vld [vmem:[#allocation10 + $0x6ac] ss:$16 sps:$4 sm:$0xff]  }
 0x18f   :  { %2560 = vmatprep.subr.bf16.mxu0 %v4183_v5  ;;  %v4253_v5 = vld [vmem:[#allocation10 + $0x648] ss:$16 sps:$4 sm:$0xff]  }
 0x191   :  { %2428 = vmatpush1.bf16.msra.mxu1 %v4172_v17  ;;  %v4265_v17 = vld [vmem:[#allocation10 + $0x6a8] ss:$16 sps:$4 sm:$0xff]  }
 0x192   :  { %2561 = vmatpush1.bf16.msra.mxu0 %v4181_v9  ;;  %2429 = vmatprep.subr.bf16.mxu1 %v4180_v20  ;;  %v4264_v9 = vld [vmem:[#allocation10 + $0x68c] ss:$16 sps:$4 sm:$0xff]  }
 0x193   :  { %2562 = vmatprep.subr.bf16.mxu0 %v4189_v10  ;;  %v4244_v10 = vld [vmem:[#allocation10 + $0x9a0] ss:$16 sps:$4 sm:$0xff]   ;;  %v4270_v20 = vld [vmem:[#allocation10 + $0x6cc] ss:$16 sps:$4 sm:$0xff]  }
 0x195   :  { %2430 = vmatpush1.bf16.msra.mxu1 %v4178_v22 }
 0x196   :  { %2563 = vmatpush1.bf16.msra.mxu0 %v4187_v14  ;;  %2431 = vmatprep.subr.bf16.mxu1 %v4186_v23  ;;  %v4250_v14 = vld [vmem:[#allocation10 + $0x9c0] ss:$16 sps:$4 sm:$0xff]  }
 0x197   :  { %2564 = vmatprep.subr.bf16.mxu0 %v4195_v16  ;;  %v4258_v16 = vld [vmem:[#allocation10 + $0x9e4] ss:$16 sps:$4 sm:$0xff]  }
 0x199   :  { %2432 = vmatpush1.bf16.msra.mxu1 %v4184_v26 }
 0x19a   :  { %2565 = vmatpush1.bf16.msra.mxu0 %v4193_v51  ;;  %2433 = vmatprep.subr.bf16.mxu1 %v4192_v27  ;;  %v4273_v27 = vld [vmem:[#allocation10 + $0x6ec] ss:$16 sps:$4 sm:$0xff]  }
 0x19b   :  { %2566 = vmatprep.subr.bf16.mxu0 %v4201_v21  ;;  %v4256_v21 = vld [vmem:[#allocation10 + $0x9e0] ss:$16 sps:$4 sm:$0xff]  }
 0x19d   :  { %2434 = vmatpush1.bf16.msra.mxu1 %v4190_v30  ;;  %v4271_v30 = vld [vmem:[#allocation10 + $0x6e8] ss:$16 sps:$4 sm:$0xff]  }
 0x19e   :  { %2567 = vmatpush1.bf16.msra.mxu0 %v4199_v24  ;;  %2435 = vmatprep.subr.bf16.mxu1 %v4198_v31  ;;  %v4268_v24 = vld [vmem:[#allocation10 + $0x6c8] ss:$16 sps:$4 sm:$0xff]  }
 0x19f   :  { %2568 = vmatprep.subr.bf16.mxu0 %v4207_v25  ;;  %v231_v40 = vpop.f32.mrb[0].mxu1  ;;  %v4348_v25 = vld [vmem:[#allocation13 + $0x4] ss:$8 sps:$4 sm:$0xff]   ;;  %v4351_v31 = vld [vmem:[#allocation13 + $0x14] ss:$8 sps:$4 sm:$0xff]  }
 0x1a0   :  { %v232_v42 = vadd.f32 %v3365_v35, %v231_v40  ;;  %v3801_v15 = vpop.f32.mrb[1].mxu1  ;;  %v4354_v35 = vld [vmem:[#allocation13 + $0x24] ss:$8 sps:$4 sm:$0xff]   ;;  %v4355_v40 = vld [vmem:[#allocation13 + $0x30] ss:$8 sps:$4 sm:$0xff]  }
 0x1a1   :  { %2436 = vmatpush1.bf16.msra.mxu1 %v4196_v34  ;;  %v234_v43 = vpop.f32.mrb[2].mxu1  ;;  %v4274_v34 = vld [vmem:[#allocation10 + $0x708] ss:$16 sps:$4 sm:$0xff]   ;;  %v4285_v15 = vld [vmem:[#allocation10 + $0x76c] ss:$16 sps:$4 sm:$0xff]  }
 0x1a2   :  { %2569 = vmatpush1.bf16.msra.mxu0 %v4205_v28  ;;  %2437 = vmatprep.subr.bf16.mxu1 %v4204_v36  ;;  %v3802_v18 = vpop.f32.mrb[3].mxu1  ;;  %238 = vst.msk [vmem:[#allocation19] sm:$0x3] %vm237_vm2, %v232_v42  ;;  %v5027_v28 = vpack.c.bf16 %v5006_v3, %v5006_v3  ;;  %v4279_v36 = vld [vmem:[#allocation10 + $0x72c] ss:$16 sps:$4 sm:$0xff]  }
 0x1a3   :  { %2570 = vmatprep.subr.bf16.mxu0 %v4213_v29  ;;  %v4346_v29 = vld [vmem:[#allocation13] ss:$8 sps:$4 sm:$0xff]   ;;  %v4360_v42 = vld [vmem:[#allocation13 + $0x44] ss:$8 sps:$4 sm:$0xff]  }
 0x1a4   :  { %v4352_v3 = vld [vmem:[#allocation13 + $0x20] ss:$8 sps:$4 sm:$0xff]  }
 0x1a5   :  { %2438 = vmatpush1.bf16.msra.mxu1 %v4202_v39  ;;  %v4282_v39 = vld [vmem:[#allocation10 + $0x74c] ss:$16 sps:$4 sm:$0xff]  }
 0x1a6   :  { %2571 = vmatpush1.bf16.msra.mxu0 %v4211_v32  ;;  %2439 = vmatprep.subr.bf16.mxu1 %v4210_v41  ;;  %v4276_v32 = vld [vmem:[#allocation10 + $0x70c] ss:$16 sps:$4 sm:$0xff]   ;;  %v4280_v41 = vld [vmem:[#allocation10 + $0x748] ss:$16 sps:$4 sm:$0xff]  }
 0x1a7   :  { %2572 = vmatprep.subr.bf16.mxu0 %v4219_v33  ;;  %v4349_v33 = vld [vmem:[#allocation13 + $0x10] ss:$8 sps:$4 sm:$0xff]   ;;  %v4358_v43 = vld [vmem:[#allocation13 + $0x40] ss:$8 sps:$4 sm:$0xff]  }
 0x1a8   :  { %v4288_v18 = vld [vmem:[#allocation10 + $0x78c] ss:$16 sps:$4 sm:$0xff]  }
 0x1a9   :  { %2440 = vmatpush1.bf16.msra.mxu1 %v4208_v47  ;;  %v4361_v47 = vld [vmem:[#allocation13 + $0x50] ss:$8 sps:$4 sm:$0xff]  }
 0x1aa   :  { %2573 = vmatpush1.bf16.msra.mxu0 %v4217_v37  ;;  %2441 = vmatprep.subr.bf16.mxu1 %v4216_v48  ;;  %v4277_v37 = vld [vmem:[#allocation10 + $0x728] ss:$16 sps:$4 sm:$0xff]  }
 0x1ab   :  { %2574 = vmatprep.subr.bf16.mxu0 %v4225_v38  ;;  %v4357_v38 = vld [vmem:[#allocation13 + $0x34] ss:$8 sps:$4 sm:$0xff]  }
 0x1ac   :  { %v4286_v48 = vld [vmem:[#allocation10 + $0x788] ss:$16 sps:$4 sm:$0xff]  }
 0x1ad   :  { %2442 = vmatpush1.bf16.msra.mxu1 %v4214_v52  ;;  %v4364_v52 = vld [vmem:[#allocation13 + $0x60] ss:$8 sps:$4 sm:$0xff]  }
 0x1ae   :  { %2575 = vmatpush1.bf16.msra.mxu0 %v4223_v45  ;;  %2443 = vmatprep.subr.bf16.mxu1 %v4222_v53  ;;  %v4283_v45 = vld [vmem:[#allocation10 + $0x768] ss:$16 sps:$4 sm:$0xff]  }
 0x1af   :  { %2576 = vmatprep.subr.bf16.mxu0 %v4231_v46  ;;  %v4363_v46 = vld [vmem:[#allocation13 + $0x54] ss:$8 sps:$4 sm:$0xff]  }
 0x1b0   :  { %v4289_v53 = vld [vmem:[#allocation10 + $0x7a8] ss:$16 sps:$4 sm:$0xff]  }
 0x1b1   :  { %2444 = vmatpush1.bf16.msra.mxu1 %v4220_v56  ;;  %v4367_v56 = vld [vmem:[#allocation13 + $0x70] ss:$8 sps:$4 sm:$0xff]  }
 0x1b2   :  { %2577 = vmatpush1.bf16.msra.mxu0 %v4229_v49  ;;  %2445 = vmatprep.subr.bf16.mxu1 %v4228_v57  ;;  %v4366_v49 = vld [vmem:[#allocation13 + $0x64] ss:$8 sps:$4 sm:$0xff]  }
 0x1b3   :  { %2578 = vmatprep.subr.bf16.mxu0 %v4237_v50  ;;  %v4291_v50 = vld [vmem:[#allocation10 + $0x7ac] ss:$16 sps:$4 sm:$0xff]   ;;  %v4292_v57 = vld [vmem:[#allocation10 + $0x7c8] ss:$16 sps:$4 sm:$0xff]  }
 0x1b5   :  { %2446 = vmatpush1.bf16.msra.mxu1 %v4226_v59  ;;  %v4370_v59 = vld [vmem:[#allocation13 + $0x80] ss:$8 sps:$4 sm:$0xff]  }
 0x1b6   :  { %2579 = vmatpush1.bf16.msra.mxu0 %v4235_v54  ;;  %2447 = vmatprep.subr.bf16.mxu1 %v4234_v61  ;;  %v4369_v54 = vld [vmem:[#allocation13 + $0x74] ss:$8 sps:$4 sm:$0xff]  }
 0x1b7   :  { %2589 = vmatprep.subr.bf16.mxu0 %v4243_v44  ;;  %v4294_v44 = vld [vmem:[#allocation10 + $0x7cc] ss:$16 sps:$4 sm:$0xff]   ;;  %v4295_v61 = vld [vmem:[#allocation10 + $0x7e8] ss:$16 sps:$4 sm:$0xff]  }
 0x1b9   :  { %2581 = vmatmul.mubr.bf16.vlgmr.msra.gmra.mrb[4].mxu0 %v4997_v60  ;;  %2448 = vmatpush1.bf16.msra.mxu1 %v4232_v2  ;;  %v4246_v60 = vld [vmem:[#allocation10 + $0x9a4] ss:$16 sps:$4 sm:$0xff]  }
 0x1ba   :  { %2590 = vmatpush1.bf16.msra.mxu0 %v4241_v58  ;;  %2621 = vmatprep.mubr.bf16.mxu0 %v4999_v0  ;;  %v4252_v0 = vld [vmem:[#allocation10 + $0x9c4] ss:$16 sps:$4 sm:$0xff]   ;;  %v4372_v58 = vld [vmem:[#allocation13 + $0x84] ss:$8 sps:$4 sm:$0xff]  }
 0x1bb   :  { %2591 = vmatprep.subr.bf16.mxu0 %v4249_v19  ;;  %2449 = vmatprep.subr.bf16.mxu1 %v4240_v4  ;;  %v4297_v19 = vld [vmem:[#allocation10 + $0x7ec] ss:$16 sps:$4 sm:$0xff]   ;;  %v4298_v4 = vld [vmem:[#allocation10 + $0x808] ss:$16 sps:$4 sm:$0xff]  }
 0x1bc   :  { %v4373_v2 = vld [vmem:[#allocation13 + $0x90] ss:$8 sps:$4 sm:$0xff]  }
 0x1bd   :  { %2450 = vmatpush1.bf16.msra.mxu1 %v4238_v7  ;;  %v4376_v7 = vld [vmem:[#allocation13 + $0xa0] ss:$8 sps:$4 sm:$0xff]  }
 0x1be   :  { %2592 = vmatpush1.bf16.msra.mxu0 %v4247_v63  ;;  %2451 = vmatprep.subr.bf16.mxu1 %v4246_v60  ;;  %v4375_v63 = vld [vmem:[#allocation13 + $0x94] ss:$8 sps:$4 sm:$0xff]  }
 0x1bf   :  { %2593 = vmatprep.subr.bf16.mxu0 %v4255_v1  ;;  %v4300_v1 = vld [vmem:[#allocation10 + $0x80c] ss:$16 sps:$4 sm:$0xff]   ;;  %v4301_v60 = vld [vmem:[#allocation10 + $0x828] ss:$16 sps:$4 sm:$0xff]  }
 0x1c1   :  { %2452 = vmatpush1.bf16.msra.mxu1 %v4244_v10  ;;  %v4379_v10 = vld [vmem:[#allocation13 + $0xb0] ss:$8 sps:$4 sm:$0xff]  }
 0x1c2   :  { %2594 = vmatpush1.bf16.msra.mxu0 %v4253_v5  ;;  %2453 = vmatprep.subr.bf16.mxu1 %v4252_v0  ;;  %v4303_v5 = vld [vmem:[#allocation10 + $0x82c] ss:$16 sps:$4 sm:$0xff]   ;;  %v4304_v0 = vld [vmem:[#allocation10 + $0x848] ss:$16 sps:$4 sm:$0xff]  }
 0x1c3   :  { %2595 = vmatprep.subr.bf16.mxu0 %v4261_v6  ;;  %v4378_v6 = vld [vmem:[#allocation13 + $0xa4] ss:$8 sps:$4 sm:$0xff]  }
 0x1c5   :  { %2454 = vmatpush1.bf16.msra.mxu1 %v4250_v14  ;;  %v4307_v14 = vld [vmem:[#allocation10 + $0x868] ss:$16 sps:$4 sm:$0xff]  }
 0x1c6   :  { %2596 = vmatpush1.bf16.msra.mxu0 %v4259_v8  ;;  %2455 = vmatprep.subr.bf16.mxu1 %v4258_v16  ;;  %v4381_v8 = vld [vmem:[#allocation13 + $0xb4] ss:$8 sps:$4 sm:$0xff]  }
 0x1c7   :  { %2597 = vmatprep.subr.bf16.mxu0 %v4264_v9  ;;  %v4306_v9 = vld [vmem:[#allocation10 + $0x84c] ss:$16 sps:$4 sm:$0xff]   ;;  %v4387_v16 = vld [vmem:[#allocation13 + $0xd4] ss:$8 sps:$4 sm:$0xff]  }
 0x1c9   :  { %2456 = vmatpush1.bf16.msra.mxu1 %v4256_v21  ;;  %v4390_v21 = vld [vmem:[#allocation13 + $0xe4] ss:$8 sps:$4 sm:$0xff]  }
 0x1ca   :  { %2598 = vmatpush1.bf16.msra.mxu0 %v4262_v11  ;;  %3071 = vmatprep.subr.bf16.mxu1 %v4348_v25  ;;  %v4384_v11 = vld [vmem:[#allocation13 + $0xc4] ss:$8 sps:$4 sm:$0xff]  }
 0x1cb   :  { %2599 = vmatprep.subr.bf16.mxu0 %v4267_v12  ;;  %v4309_v12 = vld [vmem:[#allocation10 + $0x86c] ss:$16 sps:$4 sm:$0xff]   ;;  %v4313_v25 = vld [vmem:[#allocation10 + $0x8a8] ss:$16 sps:$4 sm:$0xff]  }
 0x1cc   :  { %v5021_v51 = vpop.f32.mrb[0].mxu0  ;;  %2458 = vmatmul.mubr.bf16.vlgmr.msra.gmra.mrb[4].mxu1 %v5027_v28 }
 0x1cd   :  { %v5023_v22 = vpop.f32.mrb[1].mxu0  ;;  %3072 = vmatpush1.bf16.msra.mxu1 %v4346_v29  ;;  %v4321_v29 = vld [vmem:[#allocation10 + $0x8ec] ss:$16 sps:$4 sm:$0xff]  }
 0x1ce   :  { %v2299_v23 = vpop.f32.mrb[2].mxu0  ;;  %2600 = vmatpush1.bf16.msra.mxu0 %v4265_v17  ;;  %3073 = vmatprep.subr.bf16.mxu1 %v4351_v31  ;;  %v4385_v17 = vld [vmem:[#allocation13 + $0xd0] ss:$8 sps:$4 sm:$0xff]  }
 0x1cf   :  { %v2300_v26 = vpop.f32.mrb[3].mxu0  ;;  %2601 = vmatprep.subr.bf16.mxu0 %v4270_v20  ;;  %v4310_v20 = vld [vmem:[#allocation10 + $0x888] ss:$16 sps:$4 sm:$0xff]   ;;  %v4315_v23 = vld [vmem:[#allocation10 + $0x8ac] ss:$16 sps:$4 sm:$0xff]  }
 0x1d0   :  { %v4318_v26 = vld [vmem:[#allocation10 + $0x8cc] ss:$16 sps:$4 sm:$0xff]  }
 0x1d1   :  { %3074 = vmatpush1.bf16.msra.mxu1 %v4349_v33  ;;  %v4324_v31 = vld [vmem:[#allocation10 + $0x90c] ss:$16 sps:$4 sm:$0xff]  }
 0x1d2   :  { %2602 = vmatpush1.bf16.msra.mxu0 %v4268_v24  ;;  %3075 = vmatprep.subr.bf16.mxu1 %v4354_v35  ;;  %v4388_v24 = vld [vmem:[#allocation13 + $0xe0] ss:$8 sps:$4 sm:$0xff]  }
 0x1d3   :  { %2603 = vmatprep.subr.bf16.mxu0 %v4273_v27  ;;  %v4316_v27 = vld [vmem:[#allocation10 + $0x8c8] ss:$16 sps:$4 sm:$0xff]   ;;  %v4327_v33 = vld [vmem:[#allocation10 + $0x92c] ss:$16 sps:$4 sm:$0xff]  }
 0x1d4   :  { %v4330_v35 = vld [vmem:[#allocation10 + $0x94c] ss:$16 sps:$4 sm:$0xff]  }
 0x1d5   :  { %3076 = vmatpush1.bf16.msra.mxu1 %v4352_v3  ;;  %v4333_v3 = vld [vmem:[#allocation10 + $0x96c] ss:$16 sps:$4 sm:$0xff]  }
 0x1d6   :  { %2604 = vmatpush1.bf16.msra.mxu0 %v4271_v30  ;;  %3077 = vmatprep.subr.bf16.mxu1 %v4357_v38  ;;  %v4319_v30 = vld [vmem:[#allocation10 + $0x8e8] ss:$16 sps:$4 sm:$0xff]   ;;  %v4336_v38 = vld [vmem:[#allocation10 + $0x98c] ss:$16 sps:$4 sm:$0xff]  }
 0x1d7   :  { %2605 = vmatprep.subr.bf16.mxu0 %v4276_v32  ;;  %v4322_v32 = vld [vmem:[#allocation10 + $0x908] ss:$16 sps:$4 sm:$0xff]  }
 0x1d9   :  { %3078 = vmatpush1.bf16.msra.mxu1 %v4355_v40  ;;  %v4339_v40 = vld [vmem:[#allocation10 + $0x9ac] ss:$16 sps:$4 sm:$0xff]  }
 0x1da   :  { %2606 = vmatpush1.bf16.msra.mxu0 %v4274_v34  ;;  %3079 = vmatprep.subr.bf16.mxu1 %v4360_v42  ;;  %v4325_v34 = vld [vmem:[#allocation10 + $0x928] ss:$16 sps:$4 sm:$0xff]   ;;  %v4391_v42 = vld [vmem:[#allocation13 + $0xf0] ss:$8 sps:$4 sm:$0xff]  }
 0x1db   :  { %2607 = vmatprep.subr.bf16.mxu0 %v4279_v36  ;;  %v4328_v36 = vld [vmem:[#allocation10 + $0x948] ss:$16 sps:$4 sm:$0xff]  }
 0x1dd   :  { %3080 = vmatpush1.bf16.msra.mxu1 %v4358_v43  ;;  %v4342_v43 = vld [vmem:[#allocation10 + $0x9cc] ss:$16 sps:$4 sm:$0xff]  }
 0x1de   :  { %2608 = vmatpush1.bf16.msra.mxu0 %v4277_v37  ;;  %3081 = vmatprep.subr.bf16.mxu1 %v4363_v46  ;;  %v4331_v37 = vld [vmem:[#allocation10 + $0x968] ss:$16 sps:$4 sm:$0xff]  }
 0x1df   :  { %2609 = vmatprep.subr.bf16.mxu0 %v4282_v39  ;;  %v4334_v39 = vld [vmem:[#allocation10 + $0x988] ss:$16 sps:$4 sm:$0xff]  }
 0x1e0   :  { %v4396_v46 = vld [vmem:[#allocation13 + $0x104] ss:$8 sps:$4 sm:$0xff]  }
 0x1e1   :  { %3082 = vmatpush1.bf16.msra.mxu1 %v4361_v47  ;;  %v4343_v47 = vld [vmem:[#allocation10 + $0x9e8] ss:$16 sps:$4 sm:$0xff]  }
 0x1e2   :  { %2610 = vmatpush1.bf16.msra.mxu0 %v4280_v41  ;;  %3083 = vmatprep.subr.bf16.mxu1 %v4366_v49  ;;  %v4393_v41 = vld [vmem:[#allocation13 + $0xf4] ss:$8 sps:$4 sm:$0xff]   ;;  %v4443_v49 = vld [vmem:[#allocation16] sm:$0xff]  }
 0x1e3   :  { %2611 = vmatprep.subr.bf16.mxu0 %v4285_v15  ;;  %v4337_v15 = vld [vmem:[#allocation10 + $0x9a8] ss:$16 sps:$4 sm:$0xff]  }
 0x1e5   :  { %3084 = vmatpush1.bf16.msra.mxu1 %v4364_v52  ;;  %v4445_v52 = vld [vmem:[#allocation16 + $0x8] sm:$0xff]  }
 0x1e6   :  { %2612 = vmatpush1.bf16.msra.mxu0 %v4283_v45  ;;  %3085 = vmatprep.subr.bf16.mxu1 %v4369_v54  ;;  %v4340_v45 = vld [vmem:[#allocation10 + $0x9c8] ss:$16 sps:$4 sm:$0xff]  }
 0x1e7   :  { %2613 = vmatprep.subr.bf16.mxu0 %v4288_v18  ;;  %v4345_v18 = vld [vmem:[#allocation10 + $0x9ec] ss:$16 sps:$4 sm:$0xff]  }
 0x1e8   :  { %v4447_v54 = vld [vmem:[#allocation16 + $0x10] sm:$0xff]  }
 0x1e9   :  { %3086 = vmatpush1.bf16.msra.mxu1 %v4367_v56  ;;  %v643_v56 = vsub.s32 0, %v4953_v55 }
 0x1ea   :  { %2614 = vmatpush1.bf16.msra.mxu0 %v4286_v48  ;;  %3087 = vmatprep.subr.bf16.mxu1 %v4372_v58  ;;  %v4442_v48 = vld [vmem:[#allocation16 + $0x40] sm:$0xff]   ;;  %v5034_v58 = vld [vmem:[#allocation11] sm:$0xf] }
 0x1eb   :  { %2615 = vmatprep.subr.bf16.mxu0 %v4291_v50  ;;  %v4444_v50 = vld [vmem:[#allocation16 + $0x48] sm:$0xff]  }
 0x1ed   :  { %3088 = vmatpush1.bf16.msra.mxu1 %v4370_v59  ;;  %v644_v59 = vrot.slane %v5034_v58, %v643_v56 }
 0x1ee   :  { %2616 = vmatpush1.bf16.msra.mxu0 %v4289_v53  ;;  %3089 = vmatprep.subr.bf16.mxu1 %v4375_v63  ;;  %v4446_v53 = vld [vmem:[#allocation16 + $0x50] sm:$0xff]  }
 0x1ef   :  { %2617 = vmatprep.subr.bf16.mxu0 %v4294_v44  ;;  %v4448_v44 = vld [vmem:[#allocation16 + $0x58] sm:$0xff]  }
 0x1f1   :  { %3090 = vmatpush1.bf16.msra.mxu1 %v4373_v2  ;;  %v2296_v2 = vadd.f32 %v5021_v51, %v644_v59  ;;  %v4397_v51 = vld [vmem:[#allocation13 + $0x110] ss:$8 sps:$4 sm:$0xff]  }
 0x1f2   :  { %2618 = vmatpush1.bf16.msra.mxu0 %v4292_v57  ;;  %3091 = vmatprep.subr.bf16.mxu1 %v4378_v6  ;;  %v4449_v57 = vld [vmem:[#allocation16 + $0x18] sm:$0xff]  }
 0x1f3   :  { %2619 = vmatprep.subr.bf16.mxu0 %v4297_v19  ;;  %v4450_v19 = vld [vmem:[#allocation16 + $0x60] sm:$0xff]   ;;  %v4456_v59 = vld [vmem:[#allocation16 + $0x78] sm:$0xff]  }
 0x1f5   :  { %3092 = vmatpush1.bf16.msra.mxu1 %v4376_v7  ;;  %v4454_v7 = vld [vmem:[#allocation16 + $0x70] sm:$0xff]  }
 0x1f6   :  { %2620 = vmatpush1.bf16.msra.mxu0 %v4295_v61  ;;  %3093 = vmatprep.subr.bf16.mxu1 %v4381_v8  ;;  %v4451_v61 = vld [vmem:[#allocation16 + $0x20] sm:$0xff]  }
 0x1f7   :  { %2630 = vmatprep.subr.bf16.mxu0 %v4300_v1  ;;  %v4452_v1 = vld [vmem:[#allocation16 + $0x68] sm:$0xff]  }
 0x1f9   :  { %2622 = vmatmul.mubr.bf16.vlgmr.msra.gmra.mrb[4].mxu0 %v5012_v62  ;;  %3094 = vmatpush1.bf16.msra.mxu1 %v4379_v10  ;;  %v4382_v62 = vld [vmem:[#allocation13 + $0xc0] ss:$8 sps:$4 sm:$0xff]  }
 0x1fa   :  { %2631 = vmatpush1.bf16.msra.mxu0 %v4298_v4  ;;  %2662 = vmatprep.mubr.bf16.mxu0 %v5014_v13  ;;  %v4312_v13 = vld [vmem:[#allocation10 + $0x88c] ss:$16 sps:$4 sm:$0xff]  }
 0x1fb   :  { %2632 = vmatprep.subr.bf16.mxu0 %v4303_v5  ;;  %3095 = vmatprep.subr.bf16.mxu1 %v4384_v11  ;;  %v4453_v4 = vld [vmem:[#allocation16 + $0x28] sm:$0xff]  }
 0x1fd   :  { %3096 = vmatpush1.bf16.msra.mxu1 %v4382_v62 }
 0x1fe   :  { %2633 = vmatpush1.bf16.msra.mxu0 %v4301_v60  ;;  %3097 = vmatprep.subr.bf16.mxu1 %v4387_v16  ;;  %v4400_v16 = vld [vmem:[#allocation13 + $0x120] ss:$8 sps:$4 sm:$0xff]  }
 0x1ff   :  { %2634 = vmatprep.subr.bf16.mxu0 %v4306_v9 }
 0x201   :  { %3098 = vmatpush1.bf16.msra.mxu1 %v4385_v17  ;;  %v4403_v17 = vld [vmem:[#allocation13 + $0x130] ss:$8 sps:$4 sm:$0xff]  }
 0x202   :  { %2635 = vmatpush1.bf16.msra.mxu0 %v4304_v0  ;;  %3099 = vmatprep.subr.bf16.mxu1 %v4390_v21  ;;  %v4406_v21 = vld [vmem:[#allocation13 + $0x140] ss:$8 sps:$4 sm:$0xff]  }
 0x203   :  { %2636 = vmatprep.subr.bf16.mxu0 %v4309_v12  ;;  %v4394_v12 = vld [vmem:[#allocation13 + $0x100] ss:$8 sps:$4 sm:$0xff]  }
 0x205   :  { %3100 = vmatpush1.bf16.msra.mxu1 %v4388_v24  ;;  %v4409_v24 = vld [vmem:[#allocation13 + $0x150] ss:$8 sps:$4 sm:$0xff]  }
 0x206   :  { %2637 = vmatpush1.bf16.msra.mxu0 %v4307_v14  ;;  %3101 = vmatprep.subr.bf16.mxu1 %v4393_v41  ;;  %v4399_v14 = vld [vmem:[#allocation13 + $0x114] ss:$8 sps:$4 sm:$0xff]   ;;  %v4438_v41 = vld [vmem:[#allocation13 + $0x1e4] ss:$8 sps:$4 sm:$0xff]  }
 0x207   :  { %2638 = vmatprep.subr.bf16.mxu0 %v4312_v13  ;;  %v4405_v13 = vld [vmem:[#allocation13 + $0x134] ss:$8 sps:$4 sm:$0xff]  }
 0x209   :  { %3102 = vmatpush1.bf16.msra.mxu1 %v4391_v42  ;;  %v4436_v42 = vld [vmem:[#allocation13 + $0x1e0] ss:$8 sps:$4 sm:$0xff]  }
 0x20a   :  { %2639 = vmatpush1.bf16.msra.mxu0 %v4310_v20  ;;  %3112 = vmatprep.subr.bf16.mxu1 %v4396_v46  ;;  %v4408_v20 = vld [vmem:[#allocation13 + $0x144] ss:$8 sps:$4 sm:$0xff]   ;;  %v655_v46 = vsub.s32 3, %v4953_v55 }
 0x20b   :  { %2640 = vmatprep.subr.bf16.mxu0 %v4315_v23  ;;  %v4411_v23 = vld [vmem:[#allocation13 + $0x154] ss:$8 sps:$4 sm:$0xff]  }
 0x20e   :  { %2641 = vmatpush1.bf16.msra.mxu0 %v4313_v25  ;;  %v4414_v25 = vld [vmem:[#allocation13 + $0x164] ss:$8 sps:$4 sm:$0xff]  }
 0x20f   :  { %2642 = vmatprep.subr.bf16.mxu0 %v4318_v26  ;;  %v4412_v26 = vld [vmem:[#allocation13 + $0x160] ss:$8 sps:$4 sm:$0xff]  }
 0x212   :  { %2643 = vmatpush1.bf16.msra.mxu0 %v4316_v27  ;;  %v4417_v27 = vld [vmem:[#allocation13 + $0x174] ss:$8 sps:$4 sm:$0xff]  }
 0x213   :  { %2644 = vmatprep.subr.bf16.mxu0 %v4321_v29  ;;  %v4415_v29 = vld [vmem:[#allocation13 + $0x170] ss:$8 sps:$4 sm:$0xff]  }
 0x216   :  { %2645 = vmatpush1.bf16.msra.mxu0 %v4319_v30  ;;  %v4420_v30 = vld [vmem:[#allocation13 + $0x184] ss:$8 sps:$4 sm:$0xff]  }
 0x217   :  { %2646 = vmatprep.subr.bf16.mxu0 %v4324_v31  ;;  %v4418_v31 = vld [vmem:[#allocation13 + $0x180] ss:$8 sps:$4 sm:$0xff]  }
 0x21a   :  { %2647 = vmatpush1.bf16.msra.mxu0 %v4322_v32  ;;  %v4423_v32 = vld [vmem:[#allocation13 + $0x194] ss:$8 sps:$4 sm:$0xff]  }
 0x21b   :  { %2648 = vmatprep.subr.bf16.mxu0 %v4327_v33  ;;  %v4421_v33 = vld [vmem:[#allocation13 + $0x190] ss:$8 sps:$4 sm:$0xff]  }
 0x21e   :  { %2649 = vmatpush1.bf16.msra.mxu0 %v4325_v34  ;;  %v4426_v34 = vld [vmem:[#allocation13 + $0x1a4] ss:$8 sps:$4 sm:$0xff]  }
 0x21f   :  { %2650 = vmatprep.subr.bf16.mxu0 %v4330_v35  ;;  %v4424_v35 = vld [vmem:[#allocation13 + $0x1a0] ss:$8 sps:$4 sm:$0xff]  }
 0x222   :  { %2651 = vmatpush1.bf16.msra.mxu0 %v4328_v36  ;;  %v4429_v36 = vld [vmem:[#allocation13 + $0x1b4] ss:$8 sps:$4 sm:$0xff]  }
 0x223   :  { %2652 = vmatprep.subr.bf16.mxu0 %v4333_v3  ;;  %v4427_v3 = vld [vmem:[#allocation13 + $0x1b0] ss:$8 sps:$4 sm:$0xff]  }
 0x226   :  { %2653 = vmatpush1.bf16.msra.mxu0 %v4331_v37  ;;  %v4432_v37 = vld [vmem:[#allocation13 + $0x1c4] ss:$8 sps:$4 sm:$0xff]  }
 0x227   :  { %2654 = vmatprep.subr.bf16.mxu0 %v4336_v38  ;;  %v4430_v38 = vld [vmem:[#allocation13 + $0x1c0] ss:$8 sps:$4 sm:$0xff]  }
 0x22a   :  { %2655 = vmatpush1.bf16.msra.mxu0 %v4334_v39  ;;  %v4435_v39 = vld [vmem:[#allocation13 + $0x1d4] ss:$8 sps:$4 sm:$0xff]  }
 0x22b   :  { %2656 = vmatprep.subr.bf16.mxu0 %v4339_v40  ;;  %v4433_v40 = vld [vmem:[#allocation13 + $0x1d0] ss:$8 sps:$4 sm:$0xff]  }
 0x22e   :  { %2657 = vmatpush1.bf16.msra.mxu0 %v4337_v15  ;;  %v4441_v15 = vld [vmem:[#allocation13 + $0x1f4] ss:$8 sps:$4 sm:$0xff]  }
 0x22f   :  { %2658 = vmatprep.subr.bf16.mxu0 %v4342_v43  ;;  %v4439_v43 = vld [vmem:[#allocation13 + $0x1f0] ss:$8 sps:$4 sm:$0xff]  }
 0x232   :  { %2659 = vmatpush1.bf16.msra.mxu0 %v4340_v45  ;;  %v651_v45 = vsub.s32 2, %v4953_v55 }
 0x233   :  { %2660 = vmatprep.subr.bf16.mxu0 %v4345_v18 }
 0x234   :  { %v652_v18 = vrot.slane %v5034_v58, %v651_v45 }
 0x236   :  { %2661 = vmatpush1.bf16.msra.mxu0 %v4343_v47  ;;  %v656_v47 = vrot.slane %v5034_v58, %v655_v46 }
 0x237   :  { %3773 = vmatprep.subr.bf16.mxu0 %v4442_v48 }
 0x239   :  { %2663 = vmatmul.mubr.bf16.vlgmr.msra.gmra.mrb[4].mxu0 %v5027_v28  ;;  %v647_v28 = vsub.s32 1, %v4953_v55 }
 0x23a   :  { %3774 = vmatpush3.bf16.msra.mxu0 %v4443_v49 }
 0x23b   :  { %3775 = vmatprep.subr.bf16.mxu0 %v4444_v50  ;;  %v648_v63 = vrot.slane %v5034_v58, %v647_v28 }
 0x23d   :  { %v2298_v5 = vadd.f32 %v5023_v22, %v648_v63  ;;  %v4402_v22 = vld [vmem:[#allocation13 + $0x124] ss:$8 sps:$4 sm:$0xff]   ;;  %v2739_v63 = vld [vmem:[#allocation14] sm:$0x3] }
 0x23e   :  { %3776 = vmatpush3.bf16.msra.mxu0 %v4445_v52  ;;  %v2744_v58 = vrot.slane %v2739_v63, %v643_v56 }
 0x23f   :  { %3777 = vmatprep.subr.bf16.mxu0 %v4446_v53 }
 0x242   :  { %3778 = vmatpush3.bf16.msra.mxu0 %v4447_v54 }
 0x243   :  { %3779 = vmatprep.subr.bf16.mxu0 %v4448_v44 }
 0x246   :  { %3780 = vmatpush3.bf16.msra.mxu0 %v4449_v57 }
 0x247   :  { %3781 = vmatprep.subr.bf16.mxu0 %v4450_v19  ;;  %v4455_v19 = vld [vmem:[#allocation16 + $0x30] sm:$0xff]  }
 0x24a   :  { %3782 = vmatpush3.bf16.msra.mxu0 %v4451_v61  ;;  %v4457_v61 = vld [vmem:[#allocation16 + $0x38] sm:$0xff]  }
 0x24b   :  { %3783 = vmatprep.subr.bf16.mxu0 %v4452_v1  ;;  %v2748_v1 = vrot.slane %v2739_v63, %v647_v28 }
 0x24e   :  { %3784 = vmatpush3.bf16.msra.mxu0 %v4453_v4 }
 0x24f   :  { %3785 = vmatprep.subr.bf16.mxu0 %v4454_v7 }
 0x252   :  { %3786 = vmatpush3.bf16.msra.mxu0 %v4455_v19 }
 0x253   :  { %3787 = vmatprep.subr.bf16.mxu0 %v4456_v59 }
 0x256   :  { %3788 = vmatpush3.bf16.msra.mxu0 %v4457_v61 }
 0x29f   :  { %v2459_v6 = vpop.f32.mrb[4].mxu1 }
 0x2a0   :  { %v3804_v60 = vadd.f32 %v2459_v6, %v2296_v2  ;;  %v2461_v8 = vpop.f32.mrb[5].mxu1 }
 0x2a1   :  { %v3806_v9 = vadd.f32 %v2461_v8, %v2298_v5  ;;  %v2463_v10 = vpop.f32.mrb[6].mxu1 }
 0x2a2   :  { %v2464_v0 = vpop.f32.mrb[7].mxu1  ;;  %v2671_v62 = vpack.c.bf16 %v3804_v60, %v3804_v60 }
 0x2a3   :  { %v2672_v11 = vpack.c.bf16 %v3806_v9, %v3806_v9 }
 0x2a5   :  { %3103 = vmatprep.mubr.bf16.mxu1 %v2672_v11 }
 0x2a6   :  { %3104 = vmatmul.mubr.bf16.vlgmr.msra.gmra.mrb[8].mxu1 %v2671_v62 }
 0x2a7   :  { %3113 = vmatpush1.bf16.msra.mxu1 %v4394_v12 }
 0x2a8   :  { %3114 = vmatprep.subr.bf16.mxu1 %v4399_v14 }
 0x2ab   :  { %3115 = vmatpush1.bf16.msra.mxu1 %v4397_v51 }
 0x2ac   :  { %3116 = vmatprep.subr.bf16.mxu1 %v4402_v22 }
 0x2af   :  { %3117 = vmatpush1.bf16.msra.mxu1 %v4400_v16 }
 0x2b0   :  { %3118 = vmatprep.subr.bf16.mxu1 %v4405_v13 }
 0x2b3   :  { %3119 = vmatpush1.bf16.msra.mxu1 %v4403_v17 }
 0x2b4   :  { %3120 = vmatprep.subr.bf16.mxu1 %v4408_v20 }
 0x2b7   :  { %3121 = vmatpush1.bf16.msra.mxu1 %v4406_v21 }
 0x2b8   :  { %3122 = vmatprep.subr.bf16.mxu1 %v4411_v23 }
 0x2bb   :  { %3123 = vmatpush1.bf16.msra.mxu1 %v4409_v24 }
 0x2bc   :  { %3124 = vmatprep.subr.bf16.mxu1 %v4414_v25 }
 0x2bf   :  { %3125 = vmatpush1.bf16.msra.mxu1 %v4412_v26 }
 0x2c0   :  { %3126 = vmatprep.subr.bf16.mxu1 %v4417_v27 }
 0x2c3   :  { %3127 = vmatpush1.bf16.msra.mxu1 %v4415_v29 }
 0x2c4   :  { %3128 = vmatprep.subr.bf16.mxu1 %v4420_v30 }
 0x2c7   :  { %3129 = vmatpush1.bf16.msra.mxu1 %v4418_v31 }
 0x2c8   :  { %3130 = vmatprep.subr.bf16.mxu1 %v4423_v32 }
 0x2cb   :  { %3131 = vmatpush1.bf16.msra.mxu1 %v4421_v33 }
 0x2cc   :  { %3132 = vmatprep.subr.bf16.mxu1 %v4426_v34 }
 0x2cf   :  { %3133 = vmatpush1.bf16.msra.mxu1 %v4424_v35 }
 0x2d0   :  { %3134 = vmatprep.subr.bf16.mxu1 %v4429_v36 }
 0x2d3   :  { %3135 = vmatpush1.bf16.msra.mxu1 %v4427_v3 }
 0x2d4   :  { %3136 = vmatprep.subr.bf16.mxu1 %v4432_v37 }
 0x2d7   :  { %3137 = vmatpush1.bf16.msra.mxu1 %v4430_v38 }
 0x2d8   :  { %3138 = vmatprep.subr.bf16.mxu1 %v4435_v39 }
 0x2db   :  { %3139 = vmatpush1.bf16.msra.mxu1 %v4433_v40 }
 0x2dc   :  { %3140 = vmatprep.subr.bf16.mxu1 %v4438_v41 }
 0x2df   :  { %3141 = vmatpush1.bf16.msra.mxu1 %v4436_v42 }
 0x2e0   :  { %3142 = vmatprep.subr.bf16.mxu1 %v4441_v15 }
 0x2e3   :  { %3143 = vmatpush1.bf16.msra.mxu1 %v4439_v43 }
 0x30c   :  { %v2664_v48 = vpop.f32.mrb[4].mxu0 }
 0x30d   :  { %v3807_v49 = vadd.f32 %v2664_v48, %v652_v18  ;;  %v2666_v50 = vpop.f32.mrb[5].mxu0 }
 0x30e   :  { %v3808_v52 = vadd.f32 %v2666_v50, %v656_v47  ;;  %v2668_v53 = vpop.f32.mrb[6].mxu0 }
 0x30f   :  { %v2669_v54 = vpop.f32.mrb[7].mxu0  ;;  %v2673_v57 = vpack.c.bf16 %v3807_v49, %v3807_v49 }
 0x310   :  { %v2674_v44 = vpack.c.bf16 %v3808_v52, %v3808_v52 }
 0x312   :  { %3144 = vmatprep.mubr.bf16.mxu1 %v2674_v44 }
 0x313   :  { %3145 = vmatmul.mubr.bf16.vlgmr.msra.gmra.mrb[8].mxu1 %v2673_v57 }
 0x3e6   :  { %v3146_v2 = vpop.f32.mrb[8].mxu1 }
 0x3e7   :  { %v3809_v4 = vadd.f32 %v3146_v2, %v2744_v58  ;;  %v3148_v5 = vpop.f32.mrb[9].mxu1 }
 0x3e8   :  { %v3810_v6 = vadd.f32 %v3148_v5, %v2748_v1  ;;  %v3150_v7 = vpop.f32.mrb[10].mxu1 }
 0x3e9   :  { %v3151_v60 = vpop.f32.mrb[11].mxu1  ;;  %v3153_v9 = vpack.c.bf16 %v3809_v4, %v3809_v4 }
 0x3ea   :  { %v3154_v8 = vpack.c.bf16 %v3810_v6, %v3810_v6 }
 0x3ec   :  { %3322 = vmatprep.mubr.bf16.mxu0 %v3154_v8 }
 0x3ed   :  { %3323 = vmatmul.mubr.bf16.vlgmr.msra.gmra.mrb[8].mxu0 %v3153_v9 }
 0x3ee   :  { %4697 = shalt.err (!%p4694_p0)
}
 0x3ef   :  { %s4698_s19 = scalar_lea.hbm %s5088_s10, 32 }
 0x3f0   :  { %p4699_p1 = scmp.ne.s32.totalorder %s5088_s10, %s4698_s19  ;;  %p4702_p2 = scmp.lt.u32.totalorder %s4698_s19, %s5088_s10 }
 0x3f2   :  { %p4704_p3 = pnand %p4702_p2, %p4699_p1 }
 0x3f4   :  { %4707 = shalt.err (!%p4704_p3)
}
 0x3f5   :  { %3340 = dma.vmem_to_hbm [thread:$0]  %s3338_s28, 32, %s5088_s10, [#allocation4]   ;;  %v3753_v56 = vld [vmem:[#allocation17] ss:$0 sm:$0xff] }
 0x3f6   :  { %s4766_s18 = smov [#allocation20]  }
 0x3f7   :  { %s3347_s25 = sshll.u32 %s4766_s18, 4  ;;  %s3348_s25 = int_to_ptr.vmem [resolvable:$true] %s3347_s25 }
 0x3f8   :  { %s4708_s26 = scalar_lea.vmem %s3348_s25, 32  ;;  %p4713_p5 = scmp.lt.s32.totalorder %s3348_s25, %s3348_s25 }
 0x3f9   :  { %p4709_p4 = scmp.ne.s32.totalorder %s3348_s25, %s4708_s26  ;;  %p4714_p6 = scmp.lt.s32.totalorder %s4708_s26, %s4708_s26 }
 0x3fb   :  { %p4715_p7 = por %p4714_p6, %p4713_p5 }
 0x3fd   :  { %p4716_p8 = pnand %p4715_p7, %p4709_p4 }
 0x4c0   :  { %v3789_v55 = vpop.f32.mrb[8].mxu0 }
 0x4c1   :  { %v3790_v28 = vpop.f32.mrb[9].mxu0 }
 0x4c2   :  { %v3791_v10 = vadd.f32 %v3790_v28, %v3789_v55  ;;  %v3792_v0 = vpop.f32.mrb[10].mxu0 }
 0x4c3   :  { %v3793_v11 = vpop.f32.mrb[11].mxu0 }
 0x4c4   :  { %v3325_v12 = vadd.f32 %v3791_v10, %v3753_v56 }
 0x4c6   :  { %3330 = vst.msk [vmem:[#allocation20] sm:$0x3] %vm237_vm2, %v3325_v12 }
 0x4c7   :  { %4719 = shalt.err (!%p4716_p8)
}
 0x4c8   :  { %s4720_s29 = scalar_lea.hbm %s5089_s11, 32 }
 0x4c9   :  { %p4721_p9 = scmp.ne.s32.totalorder %s5089_s11, %s4720_s29  ;;  %p4724_p10 = scmp.lt.u32.totalorder %s4720_s29, %s5089_s11 }
 0x4cb   :  { %p4726_p11 = pnand %p4724_p10, %p4721_p9 }
 0x4cd   :  { %4729 = shalt.err (!%p4726_p11)
}
 0x4ce   :  { %3350 = dma.vmem_to_hbm [thread:$0]  %s3348_s25, 32, %s5089_s11, [#allocation21]  }
 0x4cf   :  { %4742 = dma.done.wait [#allocation4], 32  }
 0x4d0   :  { %4743 = vsyncadd [#allocation4], 4294967264 }
 0x4d1   :  { %4744 = dma.done.wait [#allocation21], 32  }
 0x4d2   :  { %4745 = vsyncadd [#allocation21], 4294967264 }
 0x4d3   :  { %3357 = vsyncpa [#allocation3], 1 }
 0x4d4   :  { %3358 = vsyncpa [#allocation6], 1 }
 0x4d5   :  { %3359 = vsyncpa [#allocation9], 1 }
 0x4d6   :  { %3360 = vsyncpa [#allocation12], 1 }
 0x4d7   :  { %3361 = vsyncpa [#allocation15], 1 }
 0x4d8   :  { %3362 = vsyncpa [#allocation18], 1 }
 0x4d9   :  { %3363 = vsyncpa [#allocation4], 1 }
 0x4da   :  { %3364 = vsyncpa [#allocation21], 1 }

</bundles_post_ra>
